<compile_context>
chip_gen: v7x
topology: tpu7x:2x2x1
jax: 0.10.0
libtpu: 0.0.40
codegen_flags: <defaults>
</compile_context>

<pallas_src>
import functools
import math

import jax
import jax.numpy as jnp
from jax.experimental import pallas as pl
from jax.experimental.pallas import tpu as pltpu

LN_EPS = 1e-5  # PyTorch nn.LayerNorm default


def _layernorm(x, gamma, beta):
    x = x.astype(jnp.float32)
    mu = jnp.mean(x, axis=-1, keepdims=True)
    var = jnp.mean(jnp.square(x - mu), axis=-1, keepdims=True)
    return (x - mu) * jax.lax.rsqrt(var + LN_EPS) * gamma + beta


def _gelu(x, *, approx):
    if approx:
        # tanh approximation: goes to the (otherwise idle) EUP slot.
        c = 0.7978845608028654  # sqrt(2/pi)
        return 0.5 * x * (1.0 + jnp.tanh(c * (x + 0.044715 * x * x * x)))
    # PyTorch nn.GELU default: exact erf-based GELU.
    return 0.5 * x * (1.0 + jax.lax.erf(x * (1.0 / math.sqrt(2.0))))


def _mha_into(ctx_ref, qp, k_ref, v_ref, *, num_heads, cdt, exact_softmax):
    """Multi-head attention; per-head contexts written into ctx_ref slices.

    qp: (TQ, D) compute-dtype (scale already folded into Wq).
    k_ref/v_ref: (1, NKV, D) compute-dtype input refs.
    Only one (TQ, NKV) f32 score tile is ever live; per-head outputs go
    straight into VMEM scratch (no lane concat / XLU retiling).
    """
    tq, d = qp.shape
    hd = d // num_heads
    for h in range(num_heads):             # static unroll, num_heads is small
        lo = h * hd
        qh = qp[:, lo:lo + hd]
        kh = k_ref[0, :, lo:lo + hd]
        vh = v_ref[0, :, lo:lo + hd]
        s = jax.lax.dot_general(qh, kh, (((1,), (1,)), ((), ())),
                                preferred_element_type=jnp.float32)
        s = s - jnp.max(s, axis=-1, keepdims=True)
        p = jnp.exp(s)
        denom = jnp.sum(p, axis=-1, keepdims=True)
        if exact_softmax:
            p = p / denom
        else:
            p = p * pl.reciprocal(denom, approx=True)
        ctx_ref[:, lo:lo + hd] = jnp.dot(
            p.astype(cdt), vh, preferred_element_type=jnp.float32).astype(cdt)


def _block_kernel(q_ref, ks_ref, vs_ref, kc_ref, vc_ref,
                  g1_ref, b1_ref, wqs_ref, wps_ref, bps_ref,
                  gq_ref, bq_ref, wqc_ref, wpc_ref, bpc_ref,
                  g2_ref, b2_ref, wfc1_ref, bfc1_ref, wfc2_ref, bfc2_ref,
                  o_ref,
                  ctx_ref,
                  *, num_heads, compute_dtype, gelu_approx, exact_softmax):
    cdt = compute_dtype
    x = q_ref[0].astype(jnp.float32)                     # (TQ, D) residual

    # ---- 1) self-attention: x += proj(MHA(norm1(x_tile); K_s, V_s)) ----
    xn = _layernorm(x, g1_ref[0], b1_ref[0]).astype(cdt)
    qp = jnp.dot(xn, wqs_ref[...], preferred_element_type=jnp.float32).astype(cdt)
    _mha_into(ctx_ref, qp, ks_ref, vs_ref, num_heads=num_heads, cdt=cdt,
              exact_softmax=exact_softmax)
    x = x + jnp.dot(ctx_ref[...], wps_ref[...],
                    preferred_element_type=jnp.float32) + bps_ref[0]

    # ---- 2) cross-attention: x += proj(MHA(norm_q(x_tile); K_c, V_c)) ----
    xn = _layernorm(x, gq_ref[0], bq_ref[0]).astype(cdt)
    qp = jnp.dot(xn, wqc_ref[...], preferred_element_type=jnp.float32).astype(cdt)
    _mha_into(ctx_ref, qp, kc_ref, vc_ref, num_heads=num_heads, cdt=cdt,
              exact_softmax=exact_softmax)
    x = x + jnp.dot(ctx_ref[...], wpc_ref[...],
                    preferred_element_type=jnp.float32) + bpc_ref[0]

    # ---- 3) MLP: x += fc2(gelu(fc1(norm2(x)))) ----
    xn = _layernorm(x, g2_ref[0], b2_ref[0]).astype(cdt)
    h = jnp.dot(xn, wfc1_ref[...], preferred_element_type=jnp.float32) + bfc1_ref[0]
    h = _gelu(h, approx=gelu_approx).astype(cdt)
    x = x + jnp.dot(h, wfc2_ref[...], preferred_element_type=jnp.float32) + bfc2_ref[0]

    o_ref[0] = x.astype(o_ref.dtype)


def cross_attn_block(q, v, q_pos, v_pos, params, *, num_heads,
                     tq=None, compute_dtype=jnp.bfloat16, gelu_approx=False,
                     single_buffer_weights=True,
                     self_attn_idx=None, cross_attn_idx=None,
                     denoise_length=None):
    """Pallas implementation of CrossAttnBlockAPI.forward ('attn'/'attn')."""
    # q_pos / v_pos / *_idx only feed the deformable & graph branches, which
    # are not part of the 'attn'/'attn' configuration.
    del q_pos, v_pos, self_attn_idx, cross_attn_idx
    if denoise_length is not None:
        # TODO(synk): denoise_length attention mask not implemented.
        raise NotImplementedError("denoise_length mask not supported")

    B, NQ, D = q.shape
    _, NV, _ = v.shape
    assert D % num_heads == 0
    hd = D // num_heads
    scale = float(hd) ** -0.5

    cdt = jnp.dtype(compute_dtype)
    f32 = jnp.float32
    exact_softmax = (cdt == jnp.dtype(jnp.float32))

    # ---- query-tile size: big tiles feed the MXU; pl.cdiv grid handles
    # ---- non-divisible NQ via Pallas boundary padding/masking.
    if tq is None:
        tq = 256
    tq = min(tq, NQ)
    if tq % 8 != 0:
        tq = NQ                      # full-dim block is always legal
    nqt = pl.cdiv(NQ, tq)

    def w(a):                        # MXU weights -> compute dtype
        return a.astype(cdt)

    # ---- host-side weight prep: split fused qkv, fold softmax scale into Wq.
    wq_s, wk_s, wv_s = jnp.split(params['wqkv_s'], 3, axis=1)
    wq_s_sc = w(wq_s * scale)
    wq_c_sc = w(params['wq_c'] * scale)

    # ---- hoisted KV path (once per batch, plain XLA): LN + 4 projections.
    def ln3(x, g, b):
        x = x.astype(f32)
        mu = jnp.mean(x, axis=-1, keepdims=True)
        var = jnp.mean(jnp.square(x - mu), axis=-1, keepdims=True)
        return (x - mu) * jax.lax.rsqrt(var + LN_EPS) * g + b

    q_ln1 = ln3(q, params['g1'], params['b1'])           # (B, NQ, D) f32
    v_lnv = ln3(v, params['gv'], params['bv'])           # (B, NV, D) f32
    ks = (q_ln1 @ wk_s).astype(cdt)                      # self-attn K
    vs = (q_ln1 @ wv_s).astype(cdt)                      # self-attn V
    kc = (v_lnv @ params['wk_c']).astype(cdt)            # cross-attn K
    vc = (v_lnv @ params['wv_c']).astype(cdt)            # cross-attn V

    operands = (
        q, ks, vs, kc, vc,
        # self-attention
        params['g1'], params['b1'], wq_s_sc, w(params['wp_s']), params['bp_s'],
        # cross-attention
        params['gq'], params['bq'], wq_c_sc, w(params['wp_c']), params['bp_c'],
        # MLP
        params['g2'], params['b2'],
        w(params['wfc1']), params['bfc1'], w(params['wfc2']), params['bfc2'],
    )
    weight_ops = operands[5:]
    hidden = params['wfc1'].shape[1]

    # ---- generation-aware VMEM budget (honest footprint, no flat cap).
    def nbytes(shape, dtype):
        return math.prod(shape) * jnp.dtype(dtype).itemsize

    def footprint(weight_bufs):
        fp = 0
        fp += 2 * nbytes((1, tq, D), q.dtype)                       # q blocks
        fp += 2 * 2 * nbytes((1, NQ, D), cdt)                       # ks, vs
        fp += 2 * 2 * nbytes((1, NV, D), cdt)                       # kc, vc
        fp += weight_bufs * sum(nbytes(o.shape, o.dtype) for o in weight_ops)
        fp += 2 * nbytes((1, tq, D), q.dtype)                       # out blocks
        fp += nbytes((tq, D), cdt)                                  # ctx scratch
        # in-kernel temporaries: residual/LN/Q tiles, one score tile, MLP hidden
        fp += 4 * nbytes((tq, D), f32)
        fp += nbytes((tq, max(NQ, NV)), f32)
        fp += 2 * nbytes((tq, hidden), f32)
        return fp

    try:
        info = pltpu.get_tpu_info()
        cap = getattr(info, 'vmem_capacity_bytes', None) or (64 << 20)
    except Exception:  # not on TPU / API unavailable -> conservative default
        cap = 64 << 20
    cap = min(cap - (8 << 20), int(cap * 0.875))        # ~56 MiB v7x, ~112 MiB v5e/v6e

    kernel = functools.partial(_block_kernel, num_heads=num_heads,
                               compute_dtype=cdt, gelu_approx=gelu_approx,
                               exact_softmax=exact_softmax)

    def build(single_buffer):
        def cst(shape):
            zeros = (0,) * len(shape)
            idx = lambda b, t, _z=zeros: _z
            if single_buffer:
                # constant index_map -> no pipelining needed; halve VMEM.
                return pl.BlockSpec(shape, idx, pipeline_mode=pl.Buffered(1))
            return pl.BlockSpec(shape, idx)

        in_specs = [
            pl.BlockSpec((1, tq, D), lambda b, t: (b, t, 0)),   # residual q tile
            pl.BlockSpec((1, NQ, D), lambda b, t: (b, 0, 0)),   # self-attn K
            pl.BlockSpec((1, NQ, D), lambda b, t: (b, 0, 0)),   # self-attn V
            pl.BlockSpec((1, NV, D), lambda b, t: (b, 0, 0)),   # cross-attn K
            pl.BlockSpec((1, NV, D), lambda b, t: (b, 0, 0)),   # cross-attn V
        ] + [cst(op.shape) for op in weight_ops]

        fp = footprint(1 if single_buffer else 2)
        vmem_limit = int(min(cap, max(fp * 3 // 2 + (8 << 20), 32 << 20)))

        return pl.pallas_call(
            kernel,
            out_shape=jax.ShapeDtypeStruct((B, NQ, D), q.dtype),
            grid_spec=pltpu.PrefetchScalarGridSpec(
                num_scalar_prefetch=0,
                grid=(B, nqt),
                in_specs=in_specs,
                out_specs=pl.BlockSpec((1, tq, D), lambda b, t: (b, t, 0)),
                scratch_shapes=[pltpu.VMEM((tq, D), cdt)],   # per-head ctx slab
            ),
            compiler_params=pltpu.CompilerParams(
                # No cross-tile dependence remains: both axes shard across TCs.
                dimension_semantics=("parallel", "parallel"),
                vmem_limit_bytes=vmem_limit),
        )(*operands)

    if single_buffer_weights:
        try:
            return build(True)
        except Exception:
            pass  # pipeline_mode=Buffered(1) unsupported -> default buffering
    return build(False)


def _reference(q, v, params, num_heads):
    """Plain-JAX reference for the same forward pass (correctness guard)."""
    D = q.shape[-1]
    hd = D // num_heads
    scale = hd ** -0.5

    def ln(x, g, b):
        mu = x.mean(-1, keepdims=True)
        var = ((x - mu) ** 2).mean(-1, keepdims=True)
        return (x - mu) * jax.lax.rsqrt(var + LN_EPS) * g + b

    def mha(qn, kvn, wq, wk, wv, wp, bp):
        B, Nq, _ = qn.shape
        Nk = kvn.shape[1]
        Q = (qn @ wq).reshape(B, Nq, num_heads, hd)
        K = (kvn @ wk).reshape(B, Nk, num_heads, hd)
        V = (kvn @ wv).reshape(B, Nk, num_heads, hd)
        att = jnp.einsum('bnhd,bmhd->bhnm', Q, K) * scale
        p = jax.nn.softmax(att, axis=-1)
        ctx = jnp.einsum('bhnm,bmhd->bnhd', p, V).reshape(B, Nq, D)
        return ctx @ wp + bp[0]

    wq_s, wk_s, wv_s = jnp.split(params['wqkv_s'], 3, axis=1)

    x = q
    n1 = ln(x, params['g1'][0], params['b1'][0])
    x = x + mha(n1, n1, wq_s, wk_s, wv_s, params['wp_s'], params['bp_s'])
    nq_ = ln(x, params['gq'][0], params['bq'][0])
    nv_ = ln(v, params['gv'][0], params['bv'][0])
    x = x + mha(nq_, nv_, params['wq_c'], params['wk_c'], params['wv_c'],
                params['wp_c'], params['bp_c'])
    n2 = ln(x, params['g2'][0], params['b2'][0])
    h = _gelu(n2 @ params['wfc1'] + params['bfc1'][0], approx=False)
    return x + h @ params['wfc2'] + params['bfc2'][0]


def make_params(key, dim, num_heads, mlp_ratio=4.0):
    hidden = int(dim * mlp_ratio)
    ks = jax.random.split(key, 24)
    std = 0.02

    def w(k, shape):
        return std * jax.random.normal(k, shape, jnp.float32)

    def gamma(k):
        return 1.0 + 0.1 * jax.random.normal(k, (1, dim), jnp.float32)

    def beta(k):
        return 0.1 * jax.random.normal(k, (1, dim), jnp.float32)

    return {
        # self-attention (timm Attention, qkv_bias=False, proj has bias)
        'g1': gamma(ks[0]), 'b1': beta(ks[1]),
        'wqkv_s': w(ks[2], (dim, 3 * dim)),
        'wp_s': w(ks[3], (dim, dim)),
        'bp_s': 0.02 * jax.random.normal(ks[4], (1, dim), jnp.float32),
        # cross-attention (CrossAttention(dim, dim), qkv_bias=False)
        'gq': gamma(ks[5]), 'bq': beta(ks[6]),
        'gv': gamma(ks[7]), 'bv': beta(ks[8]),
        'wq_c': w(ks[9], (dim, dim)), 'wk_c': w(ks[10], (dim, dim)),
        'wv_c': w(ks[11], (dim, dim)),
        'wp_c': w(ks[12], (dim, dim)),
        'bp_c': 0.02 * jax.random.normal(ks[13], (1, dim), jnp.float32),
        # MLP
        'g2': gamma(ks[14]), 'b2': beta(ks[15]),
        'wfc1': w(ks[16], (dim, hidden)),
        'bfc1': 0.02 * jax.random.normal(ks[17], (1, hidden), jnp.float32),
        'wfc2': w(ks[18], (hidden, dim)),
        'bfc2': 0.02 * jax.random.normal(ks[19], (1, dim), jnp.float32),
    }


if __name__ == "__main__":
    B, NQ, NV, D, HEADS = 2, 16, 24, 32, 4

    key = jax.random.PRNGKey(0)
    kq, kv, kqp, kvp, kparam = jax.random.split(key, 5)
    q = jax.random.normal(kq, (B, NQ, D), jnp.float32)
    v = jax.random.normal(kv, (B, NV, D), jnp.float32)
    q_pos = jax.random.normal(kqp, (B, NQ, 3), jnp.float32)   # unused ('attn' config)
    v_pos = jax.random.normal(kvp, (B, NV, 3), jnp.float32)   # unused ('attn' config)
    params = make_params(kparam, D, HEADS)

    ref = _reference(q, v, params, HEADS)

    # f32 compute path with tq < NQ (exercises the multi-tile grid): tight check.
    out_f32 = cross_attn_block(q, v, q_pos, v_pos, params, num_heads=HEADS,
                               tq=8, compute_dtype=jnp.float32)
    out_f32 = jax.block_until_ready(out_f32)
    assert out_f32.shape == (B, NQ, D)
    assert jnp.allclose(out_f32, ref, atol=3e-3, rtol=3e-3), "f32 kernel mismatch"

    # Default path (bf16 at the MXU, default tile size): looser tolerance.
    out_bf16 = cross_attn_block(q, v, q_pos, v_pos, params, num_heads=HEADS)
    out_bf16 = jax.block_until_ready(out_bf16)
    assert out_bf16.shape == (B, NQ, D)
    assert jnp.allclose(out_bf16, ref, atol=5e-2, rtol=5e-2), "bf16 kernel mismatch"

    print("KERNEL_OK")
</pallas_src>

<mosaic_0001>
module attributes {stable_mosaic.version = 11 : i64} {
  func.func @_block_kernel(%arg0: i32, %arg1: i32, %arg2: memref<1x8x32xf32, #tpu.memory_space<vmem>>, %arg3: memref<1x16x32xf32, #tpu.memory_space<vmem>>, %arg4: memref<1x16x32xf32, #tpu.memory_space<vmem>>, %arg5: memref<1x24x32xf32, #tpu.memory_space<vmem>>, %arg6: memref<1x24x32xf32, #tpu.memory_space<vmem>>, %arg7: memref<1x32xf32, #tpu.memory_space<vmem>>, %arg8: memref<1x32xf32, #tpu.memory_space<vmem>>, %arg9: memref<32x32xf32, #tpu.memory_space<vmem>>, %arg10: memref<32x32xf32, #tpu.memory_space<vmem>>, %arg11: memref<1x32xf32, #tpu.memory_space<vmem>>, %arg12: memref<1x32xf32, #tpu.memory_space<vmem>>, %arg13: memref<1x32xf32, #tpu.memory_space<vmem>>, %arg14: memref<32x32xf32, #tpu.memory_space<vmem>>, %arg15: memref<32x32xf32, #tpu.memory_space<vmem>>, %arg16: memref<1x32xf32, #tpu.memory_space<vmem>>, %arg17: memref<1x32xf32, #tpu.memory_space<vmem>>, %arg18: memref<1x32xf32, #tpu.memory_space<vmem>>, %arg19: memref<32x128xf32, #tpu.memory_space<vmem>>, %arg20: memref<1x128xf32, #tpu.memory_space<vmem>>, %arg21: memref<128x32xf32, #tpu.memory_space<vmem>>, %arg22: memref<1x32xf32, #tpu.memory_space<vmem>>, %arg23: memref<1x8x32xf32, #tpu.memory_space<vmem>>, %arg24: memref<8x32xf32, #tpu.memory_space<vmem>>) attributes {dimension_semantics = [#tpu.dimension_semantics<parallel>, #tpu.dimension_semantics<parallel>], iteration_bounds = array<i64: 2, 2>, scalar_prefetch = 0 : i64, scratch_operands = 1 : i64, tpu.core_type = #tpu.core_type<tc>, window_params = [{transform_indices = @transform_0, window_bounds = array<i64: 1, 8, 32>}, {transform_indices = @transform_1, window_bounds = array<i64: 1, 16, 32>}, {transform_indices = @transform_2, window_bounds = array<i64: 1, 16, 32>}, {transform_indices = @transform_3, window_bounds = array<i64: 1, 24, 32>}, {transform_indices = @transform_4, window_bounds = array<i64: 1, 24, 32>}, {pipeline_mode = #tpu.pipeline_mode<synchronous>, transform_indices = @transform_5, window_bounds = array<i64: 1, 32>}, {pipeline_mode = #tpu.pipeline_mode<synchronous>, transform_indices = @transform_6, window_bounds = array<i64: 1, 32>}, {pipeline_mode = #tpu.pipeline_mode<synchronous>, transform_indices = @transform_7, window_bounds = array<i64: 32, 32>}, {pipeline_mode = #tpu.pipeline_mode<synchronous>, transform_indices = @transform_8, window_bounds = array<i64: 32, 32>}, {pipeline_mode = #tpu.pipeline_mode<synchronous>, transform_indices = @transform_9, window_bounds = array<i64: 1, 32>}, {pipeline_mode = #tpu.pipeline_mode<synchronous>, transform_indices = @transform_10, window_bounds = array<i64: 1, 32>}, {pipeline_mode = #tpu.pipeline_mode<synchronous>, transform_indices = @transform_11, window_bounds = array<i64: 1, 32>}, {pipeline_mode = #tpu.pipeline_mode<synchronous>, transform_indices = @transform_12, window_bounds = array<i64: 32, 32>}, {pipeline_mode = #tpu.pipeline_mode<synchronous>, transform_indices = @transform_13, window_bounds = array<i64: 32, 32>}, {pipeline_mode = #tpu.pipeline_mode<synchronous>, transform_indices = @transform_14, window_bounds = array<i64: 1, 32>}, {pipeline_mode = #tpu.pipeline_mode<synchronous>, transform_indices = @transform_15, window_bounds = array<i64: 1, 32>}, {pipeline_mode = #tpu.pipeline_mode<synchronous>, transform_indices = @transform_16, window_bounds = array<i64: 1, 32>}, {pipeline_mode = #tpu.pipeline_mode<synchronous>, transform_indices = @transform_17, window_bounds = array<i64: 32, 128>}, {pipeline_mode = #tpu.pipeline_mode<synchronous>, transform_indices = @transform_18, window_bounds = array<i64: 1, 128>}, {pipeline_mode = #tpu.pipeline_mode<synchronous>, transform_indices = @transform_19, window_bounds = array<i64: 128, 32>}, {pipeline_mode = #tpu.pipeline_mode<synchronous>, transform_indices = @transform_20, window_bounds = array<i64: 1, 32>}, {transform_indices = @transform_21, window_bounds = array<i64: 1, 8, 32>}]} {
    %c0 = arith.constant 0 : index
    %c0_0 = arith.constant 0 : index
    %c0_1 = arith.constant 0 : index
    %0 = vector.load %arg2[%c0, %c0_0, %c0_1] : memref<1x8x32xf32, #tpu.memory_space<vmem>>, vector<1x8x32xf32>
    %1 = vector.shape_cast %0 : vector<1x8x32xf32> to vector<8x32xf32>
    %c0_2 = arith.constant 0 : index
    %c0_3 = arith.constant 0 : index
    %2 = vector.load %arg7[%c0_2, %c0_3] : memref<1x32xf32, #tpu.memory_space<vmem>>, vector<1x32xf32>
    %3 = vector.shape_cast %2 : vector<1x32xf32> to vector<32xf32>
    %c0_4 = arith.constant 0 : index
    %c0_5 = arith.constant 0 : index
    %4 = vector.load %arg8[%c0_4, %c0_5] : memref<1x32xf32, #tpu.memory_space<vmem>>, vector<1x32xf32>
    %5 = vector.shape_cast %4 : vector<1x32xf32> to vector<32xf32>
    %cst = arith.constant dense<0.000000e+00> : vector<8xf32>
    %6 = vector.multi_reduction <add>, %1, %cst [1] : vector<8x32xf32> to vector<8xf32>
    %7 = vector.shape_cast %6 : vector<8xf32> to vector<8x1xf32>
    %cst_6 = arith.constant 3.200000e+01 : f32
    %8 = vector.broadcast %cst_6 : f32 to vector<8x1xf32>
    %9 = arith.divf %7, %8 : vector<8x1xf32>
    %10 = vector.broadcast %9 : vector<8x1xf32> to vector<8x32xf32>
    %11 = arith.subf %1, %10 : vector<8x32xf32>
    %12 = arith.mulf %11, %11 : vector<8x32xf32>
    %cst_7 = arith.constant dense<0.000000e+00> : vector<8xf32>
    %13 = vector.multi_reduction <add>, %12, %cst_7 [1] : vector<8x32xf32> to vector<8xf32>
    %14 = vector.shape_cast %13 : vector<8xf32> to vector<8x1xf32>
    %cst_8 = arith.constant 3.200000e+01 : f32
    %15 = vector.broadcast %cst_8 : f32 to vector<8x1xf32>
    %16 = arith.divf %14, %15 : vector<8x1xf32>
    %17 = vector.broadcast %9 : vector<8x1xf32> to vector<8x32xf32>
    %18 = arith.subf %1, %17 : vector<8x32xf32>
    %cst_9 = arith.constant 9.99999974E-6 : f32
    %19 = vector.broadcast %cst_9 : f32 to vector<8x1xf32>
    %20 = arith.addf %16, %19 : vector<8x1xf32>
    %21 = math.rsqrt %20 : vector<8x1xf32>
    %22 = vector.broadcast %21 : vector<8x1xf32> to vector<8x32xf32>
    %23 = arith.mulf %18, %22 : vector<8x32xf32>
    %24 = vector.shape_cast %3 : vector<32xf32> to vector<1x32xf32>
    %25 = vector.broadcast %24 : vector<1x32xf32> to vector<8x32xf32>
    %26 = arith.mulf %23, %25 : vector<8x32xf32>
    %27 = vector.shape_cast %5 : vector<32xf32> to vector<1x32xf32>
    %28 = vector.broadcast %27 : vector<1x32xf32> to vector<8x32xf32>
    %29 = arith.addf %26, %28 : vector<8x32xf32>
    %c0_10 = arith.constant 0 : index
    %c0_11 = arith.constant 0 : index
    %30 = vector.load %arg9[%c0_10, %c0_11] : memref<32x32xf32, #tpu.memory_space<vmem>>, vector<32x32xf32>
    %cst_12 = arith.constant dense<0.000000e+00> : vector<8x32xf32>
    %31 = tpu.matmul %29, %30, %cst_12 {dimension_numbers = #tpu.dot_dimension_numbers<[1], [0], [0], [1], [0, 0, 1, 1], [], []>} : vector<8x32xf32>, vector<32x32xf32>, vector<8x32xf32> -> vector<8x32xf32>
    %32 = vector.extract_strided_slice %31 {offsets = [0, 0], sizes = [8, 8], strides = [1, 1]} : vector<8x32xf32> to vector<8x8xf32>
    %c0_13 = arith.constant 0 : index
    %c0_14 = arith.constant 0 : index
    %c0_15 = arith.constant 0 : index
    %33 = vector.load %arg3[%c0_13, %c0_14, %c0_15] : memref<1x16x32xf32, #tpu.memory_space<vmem>>, vector<1x16x8xf32>
    %34 = vector.shape_cast %33 : vector<1x16x8xf32> to vector<16x8xf32>
    %c0_16 = arith.constant 0 : index
    %c0_17 = arith.constant 0 : index
    %c0_18 = arith.constant 0 : index
    %35 = vector.load %arg4[%c0_16, %c0_17, %c0_18] : memref<1x16x32xf32, #tpu.memory_space<vmem>>, vector<1x16x8xf32>
    %36 = vector.shape_cast %35 : vector<1x16x8xf32> to vector<16x8xf32>
    %cst_19 = arith.constant dense<0.000000e+00> : vector<8x16xf32>
    %37 = tpu.matmul %32, %34, %cst_19 {dimension_numbers = #tpu.dot_dimension_numbers<[1], [1], [0], [0], [0, 0, 1, 0], [], []>} : vector<8x8xf32>, vector<16x8xf32>, vector<8x16xf32> -> vector<8x16xf32>
    %cst_20 = arith.constant dense<0xFF800000> : vector<8xf32>
    %38 = vector.multi_reduction <maximumf>, %37, %cst_20 [1] : vector<8x16xf32> to vector<8xf32>
    %39 = vector.shape_cast %38 : vector<8xf32> to vector<8x1xf32>
    %40 = vector.broadcast %39 : vector<8x1xf32> to vector<8x16xf32>
    %41 = arith.subf %37, %40 : vector<8x16xf32>
    %42 = math.exp %41 : vector<8x16xf32>
    %cst_21 = arith.constant dense<0.000000e+00> : vector<8xf32>
    %43 = vector.multi_reduction <add>, %42, %cst_21 [1] : vector<8x16xf32> to vector<8xf32>
    %44 = vector.shape_cast %43 : vector<8xf32> to vector<8x1xf32>
    %45 = vector.broadcast %44 : vector<8x1xf32> to vector<8x16xf32>
    %46 = arith.divf %42, %45 : vector<8x16xf32>
    %cst_22 = arith.constant dense<0.000000e+00> : vector<8x8xf32>
    %47 = tpu.matmul %46, %36, %cst_22 {dimension_numbers = #tpu.dot_dimension_numbers<[1], [0], [0], [1], [0, 0, 1, 1], [], []>} : vector<8x16xf32>, vector<16x8xf32>, vector<8x8xf32> -> vector<8x8xf32>
    %c0_23 = arith.constant 0 : index
    %c0_24 = arith.constant 0 : index
    %48 = vector.load %arg24[%c0_23, %c0_24] : memref<8x32xf32, #tpu.memory_space<vmem>>, vector<8x8xf32>
    tpu.vector_store %arg24[%c0_23, %c0_24], %47 {strides = array<i32>} : memref<8x32xf32, #tpu.memory_space<vmem>>, vector<8x8xf32>,
    %49 = vector.extract_strided_slice %31 {offsets = [0, 8], sizes = [8, 8], strides = [1, 1]} : vector<8x32xf32> to vector<8x8xf32>
    %c0_25 = arith.constant 0 : index
    %c0_26 = arith.constant 0 : index
    %c8 = arith.constant 8 : index
    %50 = vector.load %arg3[%c0_25, %c0_26, %c8] : memref<1x16x32xf32, #tpu.memory_space<vmem>>, vector<1x16x8xf32>
    %51 = vector.shape_cast %50 : vector<1x16x8xf32> to vector<16x8xf32>
    %c0_27 = arith.constant 0 : index
    %c0_28 = arith.constant 0 : index
    %c8_29 = arith.constant 8 : index
    %52 = vector.load %arg4[%c0_27, %c0_28, %c8_29] : memref<1x16x32xf32, #tpu.memory_space<vmem>>, vector<1x16x8xf32>
    %53 = vector.shape_cast %52 : vector<1x16x8xf32> to vector<16x8xf32>
    %cst_30 = arith.constant dense<0.000000e+00> : vector<8x16xf32>
    %54 = tpu.matmul %49, %51, %cst_30 {dimension_numbers = #tpu.dot_dimension_numbers<[1], [1], [0], [0], [0, 0, 1, 0], [], []>} : vector<8x8xf32>, vector<16x8xf32>, vector<8x16xf32> -> vector<8x16xf32>
    %cst_31 = arith.constant dense<0xFF800000> : vector<8xf32>
    %55 = vector.multi_reduction <maximumf>, %54, %cst_31 [1] : vector<8x16xf32> to vector<8xf32>
    %56 = vector.shape_cast %55 : vector<8xf32> to vector<8x1xf32>
    %57 = vector.broadcast %56 : vector<8x1xf32> to vector<8x16xf32>
    %58 = arith.subf %54, %57 : vector<8x16xf32>
    %59 = math.exp %58 : vector<8x16xf32>
    %cst_32 = arith.constant dense<0.000000e+00> : vector<8xf32>
    %60 = vector.multi_reduction <add>, %59, %cst_32 [1] : vector<8x16xf32> to vector<8xf32>
    %61 = vector.shape_cast %60 : vector<8xf32> to vector<8x1xf32>
    %62 = vector.broadcast %61 : vector<8x1xf32> to vector<8x16xf32>
    %63 = arith.divf %59, %62 : vector<8x16xf32>
    %cst_33 = arith.constant dense<0.000000e+00> : vector<8x8xf32>
    %64 = tpu.matmul %63, %53, %cst_33 {dimension_numbers = #tpu.dot_dimension_numbers<[1], [0], [0], [1], [0, 0, 1, 1], [], []>} : vector<8x16xf32>, vector<16x8xf32>, vector<8x8xf32> -> vector<8x8xf32>
    %c0_34 = arith.constant 0 : index
    %c8_35 = arith.constant 8 : index
    %65 = vector.load %arg24[%c0_34, %c8_35] : memref<8x32xf32, #tpu.memory_space<vmem>>, vector<8x8xf32>
    tpu.vector_store %arg24[%c0_34, %c8_35], %64 {strides = array<i32>} : memref<8x32xf32, #tpu.memory_space<vmem>>, vector<8x8xf32>,
    %66 = vector.extract_strided_slice %31 {offsets = [0, 16], sizes = [8, 8], strides = [1, 1]} : vector<8x32xf32> to vector<8x8xf32>
    %c0_36 = arith.constant 0 : index
    %c0_37 = arith.constant 0 : index
    %c16 = arith.constant 16 : index
    %67 = vector.load %arg3[%c0_36, %c0_37, %c16] : memref<1x16x32xf32, #tpu.memory_space<vmem>>, vector<1x16x8xf32>
    %68 = vector.shape_cast %67 : vector<1x16x8xf32> to vector<16x8xf32>
    %c0_38 = arith.constant 0 : index
    %c0_39 = arith.constant 0 : index
    %c16_40 = arith.constant 16 : index
    %69 = vector.load %arg4[%c0_38, %c0_39, %c16_40] : memref<1x16x32xf32, #tpu.memory_space<vmem>>, vector<1x16x8xf32>
    %70 = vector.shape_cast %69 : vector<1x16x8xf32> to vector<16x8xf32>
    %cst_41 = arith.constant dense<0.000000e+00> : vector<8x16xf32>
    %71 = tpu.matmul %66, %68, %cst_41 {dimension_numbers = #tpu.dot_dimension_numbers<[1], [1], [0], [0], [0, 0, 1, 0], [], []>} : vector<8x8xf32>, vector<16x8xf32>, vector<8x16xf32> -> vector<8x16xf32>
    %cst_42 = arith.constant dense<0xFF800000> : vector<8xf32>
    %72 = vector.multi_reduction <maximumf>, %71, %cst_42 [1] : vector<8x16xf32> to vector<8xf32>
    %73 = vector.shape_cast %72 : vector<8xf32> to vector<8x1xf32>
    %74 = vector.broadcast %73 : vector<8x1xf32> to vector<8x16xf32>
    %75 = arith.subf %71, %74 : vector<8x16xf32>
    %76 = math.exp %75 : vector<8x16xf32>
    %cst_43 = arith.constant dense<0.000000e+00> : vector<8xf32>
    %77 = vector.multi_reduction <add>, %76, %cst_43 [1] : vector<8x16xf32> to vector<8xf32>
    %78 = vector.shape_cast %77 : vector<8xf32> to vector<8x1xf32>
    %79 = vector.broadcast %78 : vector<8x1xf32> to vector<8x16xf32>
    %80 = arith.divf %76, %79 : vector<8x16xf32>
    %cst_44 = arith.constant dense<0.000000e+00> : vector<8x8xf32>
    %81 = tpu.matmul %80, %70, %cst_44 {dimension_numbers = #tpu.dot_dimension_numbers<[1], [0], [0], [1], [0, 0, 1, 1], [], []>} : vector<8x16xf32>, vector<16x8xf32>, vector<8x8xf32> -> vector<8x8xf32>
    %c0_45 = arith.constant 0 : index
    %c16_46 = arith.constant 16 : index
    %82 = vector.load %arg24[%c0_45, %c16_46] : memref<8x32xf32, #tpu.memory_space<vmem>>, vector<8x8xf32>
    tpu.vector_store %arg24[%c0_45, %c16_46], %81 {strides = array<i32>} : memref<8x32xf32, #tpu.memory_space<vmem>>, vector<8x8xf32>,
    %83 = vector.extract_strided_slice %31 {offsets = [0, 24], sizes = [8, 8], strides = [1, 1]} : vector<8x32xf32> to vector<8x8xf32>
    %c0_47 = arith.constant 0 : index
    %c0_48 = arith.constant 0 : index
    %c24 = arith.constant 24 : index
    %84 = vector.load %arg3[%c0_47, %c0_48, %c24] : memref<1x16x32xf32, #tpu.memory_space<vmem>>, vector<1x16x8xf32>
    %85 = vector.shape_cast %84 : vector<1x16x8xf32> to vector<16x8xf32>
    %c0_49 = arith.constant 0 : index
    %c0_50 = arith.constant 0 : index
    %c24_51 = arith.constant 24 : index
    %86 = vector.load %arg4[%c0_49, %c0_50, %c24_51] : memref<1x16x32xf32, #tpu.memory_space<vmem>>, vector<1x16x8xf32>
    %87 = vector.shape_cast %86 : vector<1x16x8xf32> to vector<16x8xf32>
    %cst_52 = arith.constant dense<0.000000e+00> : vector<8x16xf32>
    %88 = tpu.matmul %83, %85, %cst_52 {dimension_numbers = #tpu.dot_dimension_numbers<[1], [1], [0], [0], [0, 0, 1, 0], [], []>} : vector<8x8xf32>, vector<16x8xf32>, vector<8x16xf32> -> vector<8x16xf32>
    %cst_53 = arith.constant dense<0xFF800000> : vector<8xf32>
    %89 = vector.multi_reduction <maximumf>, %88, %cst_53 [1] : vector<8x16xf32> to vector<8xf32>
    %90 = vector.shape_cast %89 : vector<8xf32> to vector<8x1xf32>
    %91 = vector.broadcast %90 : vector<8x1xf32> to vector<8x16xf32>
    %92 = arith.subf %88, %91 : vector<8x16xf32>
    %93 = math.exp %92 : vector<8x16xf32>
    %cst_54 = arith.constant dense<0.000000e+00> : vector<8xf32>
    %94 = vector.multi_reduction <add>, %93, %cst_54 [1] : vector<8x16xf32> to vector<8xf32>
    %95 = vector.shape_cast %94 : vector<8xf32> to vector<8x1xf32>
    %96 = vector.broadcast %95 : vector<8x1xf32> to vector<8x16xf32>
    %97 = arith.divf %93, %96 : vector<8x16xf32>
    %cst_55 = arith.constant dense<0.000000e+00> : vector<8x8xf32>
    %98 = tpu.matmul %97, %87, %cst_55 {dimension_numbers = #tpu.dot_dimension_numbers<[1], [0], [0], [1], [0, 0, 1, 1], [], []>} : vector<8x16xf32>, vector<16x8xf32>, vector<8x8xf32> -> vector<8x8xf32>
    %c0_56 = arith.constant 0 : index
    %c24_57 = arith.constant 24 : index
    %99 = vector.load %arg24[%c0_56, %c24_57] : memref<8x32xf32, #tpu.memory_space<vmem>>, vector<8x8xf32>
    tpu.vector_store %arg24[%c0_56, %c24_57], %98 {strides = array<i32>} : memref<8x32xf32, #tpu.memory_space<vmem>>, vector<8x8xf32>,
    %c0_58 = arith.constant 0 : index
    %c0_59 = arith.constant 0 : index
    %100 = vector.load %arg24[%c0_58, %c0_59] : memref<8x32xf32, #tpu.memory_space<vmem>>, vector<8x32xf32>
    %c0_60 = arith.constant 0 : index
    %c0_61 = arith.constant 0 : index
    %101 = vector.load %arg10[%c0_60, %c0_61] : memref<32x32xf32, #tpu.memory_space<vmem>>, vector<32x32xf32>
    %cst_62 = arith.constant dense<0.000000e+00> : vector<8x32xf32>
    %102 = tpu.matmul %100, %101, %cst_62 {dimension_numbers = #tpu.dot_dimension_numbers<[1], [0], [0], [1], [0, 0, 1, 1], [], []>} : vector<8x32xf32>, vector<32x32xf32>, vector<8x32xf32> -> vector<8x32xf32>
    %103 = arith.addf %1, %102 : vector<8x32xf32>
    %c0_63 = arith.constant 0 : index
    %c0_64 = arith.constant 0 : index
    %104 = vector.load %arg11[%c0_63, %c0_64] : memref<1x32xf32, #tpu.memory_space<vmem>>, vector<1x32xf32>
    %105 = vector.shape_cast %104 : vector<1x32xf32> to vector<32xf32>
    %106 = vector.shape_cast %105 : vector<32xf32> to vector<1x32xf32>
    %107 = vector.broadcast %106 : vector<1x32xf32> to vector<8x32xf32>
    %108 = arith.addf %103, %107 : vector<8x32xf32>
    %c0_65 = arith.constant 0 : index
    %c0_66 = arith.constant 0 : index
    %109 = vector.load %arg12[%c0_65, %c0_66] : memref<1x32xf32, #tpu.memory_space<vmem>>, vector<1x32xf32>
    %110 = vector.shape_cast %109 : vector<1x32xf32> to vector<32xf32>
    %c0_67 = arith.constant 0 : index
    %c0_68 = arith.constant 0 : index
    %111 = vector.load %arg13[%c0_67, %c0_68] : memref<1x32xf32, #tpu.memory_space<vmem>>, vector<1x32xf32>
    %112 = vector.shape_cast %111 : vector<1x32xf32> to vector<32xf32>
    %cst_69 = arith.constant dense<0.000000e+00> : vector<8xf32>
    %113 = vector.multi_reduction <add>, %108, %cst_69 [1] : vector<8x32xf32> to vector<8xf32>
    %114 = vector.shape_cast %113 : vector<8xf32> to vector<8x1xf32>
    %cst_70 = arith.constant 3.200000e+01 : f32
    %115 = vector.broadcast %cst_70 : f32 to vector<8x1xf32>
    %116 = arith.divf %114, %115 : vector<8x1xf32>
    %117 = vector.broadcast %116 : vector<8x1xf32> to vector<8x32xf32>
    %118 = arith.subf %108, %117 : vector<8x32xf32>
    %119 = arith.mulf %118, %118 : vector<8x32xf32>
    %cst_71 = arith.constant dense<0.000000e+00> : vector<8xf32>
    %120 = vector.multi_reduction <add>, %119, %cst_71 [1] : vector<8x32xf32> to vector<8xf32>
    %121 = vector.shape_cast %120 : vector<8xf32> to vector<8x1xf32>
    %cst_72 = arith.constant 3.200000e+01 : f32
    %122 = vector.broadcast %cst_72 : f32 to vector<8x1xf32>
    %123 = arith.divf %121, %122 : vector<8x1xf32>
    %124 = vector.broadcast %116 : vector<8x1xf32> to vector<8x32xf32>
    %125 = arith.subf %108, %124 : vector<8x32xf32>
    %cst_73 = arith.constant 9.99999974E-6 : f32
    %126 = vector.broadcast %cst_73 : f32 to vector<8x1xf32>
    %127 = arith.addf %123, %126 : vector<8x1xf32>
    %128 = math.rsqrt %127 : vector<8x1xf32>
    %129 = vector.broadcast %128 : vector<8x1xf32> to vector<8x32xf32>
    %130 = arith.mulf %125, %129 : vector<8x32xf32>
    %131 = vector.shape_cast %110 : vector<32xf32> to vector<1x32xf32>
    %132 = vector.broadcast %131 : vector<1x32xf32> to vector<8x32xf32>
    %133 = arith.mulf %130, %132 : vector<8x32xf32>
    %134 = vector.shape_cast %112 : vector<32xf32> to vector<1x32xf32>
    %135 = vector.broadcast %134 : vector<1x32xf32> to vector<8x32xf32>
    %136 = arith.addf %133, %135 : vector<8x32xf32>
    %c0_74 = arith.constant 0 : index
    %c0_75 = arith.constant 0 : index
    %137 = vector.load %arg14[%c0_74, %c0_75] : memref<32x32xf32, #tpu.memory_space<vmem>>, vector<32x32xf32>
    %cst_76 = arith.constant dense<0.000000e+00> : vector<8x32xf32>
    %138 = tpu.matmul %136, %137, %cst_76 {dimension_numbers = #tpu.dot_dimension_numbers<[1], [0], [0], [1], [0, 0, 1, 1], [], []>} : vector<8x32xf32>, vector<32x32xf32>, vector<8x32xf32> -> vector<8x32xf32>
    %139 = vector.extract_strided_slice %138 {offsets = [0, 0], sizes = [8, 8], strides = [1, 1]} : vector<8x32xf32> to vector<8x8xf32>
    %c0_77 = arith.constant 0 : index
    %c0_78 = arith.constant 0 : index
    %c0_79 = arith.constant 0 : index
    %140 = vector.load %arg5[%c0_77, %c0_78, %c0_79] : memref<1x24x32xf32, #tpu.memory_space<vmem>>, vector<1x24x8xf32>
    %141 = vector.shape_cast %140 : vector<1x24x8xf32> to vector<24x8xf32>
    %c0_80 = arith.constant 0 : index
    %c0_81 = arith.constant 0 : index
    %c0_82 = arith.constant 0 : index
    %142 = vector.load %arg6[%c0_80, %c0_81, %c0_82] : memref<1x24x32xf32, #tpu.memory_space<vmem>>, vector<1x24x8xf32>
    %143 = vector.shape_cast %142 : vector<1x24x8xf32> to vector<24x8xf32>
    %cst_83 = arith.constant dense<0.000000e+00> : vector<8x24xf32>
    %144 = tpu.matmul %139, %141, %cst_83 {dimension_numbers = #tpu.dot_dimension_numbers<[1], [1], [0], [0], [0, 0, 1, 0], [], []>} : vector<8x8xf32>, vector<24x8xf32>, vector<8x24xf32> -> vector<8x24xf32>
    %cst_84 = arith.constant dense<0xFF800000> : vector<8xf32>
    %145 = vector.multi_reduction <maximumf>, %144, %cst_84 [1] : vector<8x24xf32> to vector<8xf32>
    %146 = vector.shape_cast %145 : vector<8xf32> to vector<8x1xf32>
    %147 = vector.broadcast %146 : vector<8x1xf32> to vector<8x24xf32>
    %148 = arith.subf %144, %147 : vector<8x24xf32>
    %149 = math.exp %148 : vector<8x24xf32>
    %cst_85 = arith.constant dense<0.000000e+00> : vector<8xf32>
    %150 = vector.multi_reduction <add>, %149, %cst_85 [1] : vector<8x24xf32> to vector<8xf32>
    %151 = vector.shape_cast %150 : vector<8xf32> to vector<8x1xf32>
    %152 = vector.broadcast %151 : vector<8x1xf32> to vector<8x24xf32>
    %153 = arith.divf %149, %152 : vector<8x24xf32>
    %cst_86 = arith.constant dense<0.000000e+00> : vector<8x8xf32>
    %154 = tpu.matmul %153, %143, %cst_86 {dimension_numbers = #tpu.dot_dimension_numbers<[1], [0], [0], [1], [0, 0, 1, 1], [], []>} : vector<8x24xf32>, vector<24x8xf32>, vector<8x8xf32> -> vector<8x8xf32>
    %c0_87 = arith.constant 0 : index
    %c0_88 = arith.constant 0 : index
    %155 = vector.load %arg24[%c0_87, %c0_88] : memref<8x32xf32, #tpu.memory_space<vmem>>, vector<8x8xf32>
    tpu.vector_store %arg24[%c0_87, %c0_88], %154 {strides = array<i32>} : memref<8x32xf32, #tpu.memory_space<vmem>>, vector<8x8xf32>,
    %156 = vector.extract_strided_slice %138 {offsets = [0, 8], sizes = [8, 8], strides = [1, 1]} : vector<8x32xf32> to vector<8x8xf32>
    %c0_89 = arith.constant 0 : index
    %c0_90 = arith.constant 0 : index
    %c8_91 = arith.constant 8 : index
    %157 = vector.load %arg5[%c0_89, %c0_90, %c8_91] : memref<1x24x32xf32, #tpu.memory_space<vmem>>, vector<1x24x8xf32>
    %158 = vector.shape_cast %157 : vector<1x24x8xf32> to vector<24x8xf32>
    %c0_92 = arith.constant 0 : index
    %c0_93 = arith.constant 0 : index
    %c8_94 = arith.constant 8 : index
    %159 = vector.load %arg6[%c0_92, %c0_93, %c8_94] : memref<1x24x32xf32, #tpu.memory_space<vmem>>, vector<1x24x8xf32>
    %160 = vector.shape_cast %159 : vector<1x24x8xf32> to vector<24x8xf32>
    %cst_95 = arith.constant dense<0.000000e+00> : vector<8x24xf32>
    %161 = tpu.matmul %156, %158, %cst_95 {dimension_numbers = #tpu.dot_dimension_numbers<[1], [1], [0], [0], [0, 0, 1, 0], [], []>} : vector<8x8xf32>, vector<24x8xf32>, vector<8x24xf32> -> vector<8x24xf32>
    %cst_96 = arith.constant dense<0xFF800000> : vector<8xf32>
    %162 = vector.multi_reduction <maximumf>, %161, %cst_96 [1] : vector<8x24xf32> to vector<8xf32>
    %163 = vector.shape_cast %162 : vector<8xf32> to vector<8x1xf32>
    %164 = vector.broadcast %163 : vector<8x1xf32> to vector<8x24xf32>
    %165 = arith.subf %161, %164 : vector<8x24xf32>
    %166 = math.exp %165 : vector<8x24xf32>
    %cst_97 = arith.constant dense<0.000000e+00> : vector<8xf32>
    %167 = vector.multi_reduction <add>, %166, %cst_97 [1] : vector<8x24xf32> to vector<8xf32>
    %168 = vector.shape_cast %167 : vector<8xf32> to vector<8x1xf32>
    %169 = vector.broadcast %168 : vector<8x1xf32> to vector<8x24xf32>
    %170 = arith.divf %166, %169 : vector<8x24xf32>
    %cst_98 = arith.constant dense<0.000000e+00> : vector<8x8xf32>
    %171 = tpu.matmul %170, %160, %cst_98 {dimension_numbers = #tpu.dot_dimension_numbers<[1], [0], [0], [1], [0, 0, 1, 1], [], []>} : vector<8x24xf32>, vector<24x8xf32>, vector<8x8xf32> -> vector<8x8xf32>
    %c0_99 = arith.constant 0 : index
    %c8_100 = arith.constant 8 : index
    %172 = vector.load %arg24[%c0_99, %c8_100] : memref<8x32xf32, #tpu.memory_space<vmem>>, vector<8x8xf32>
    tpu.vector_store %arg24[%c0_99, %c8_100], %171 {strides = array<i32>} : memref<8x32xf32, #tpu.memory_space<vmem>>, vector<8x8xf32>,
    %173 = vector.extract_strided_slice %138 {offsets = [0, 16], sizes = [8, 8], strides = [1, 1]} : vector<8x32xf32> to vector<8x8xf32>
    %c0_101 = arith.constant 0 : index
    %c0_102 = arith.constant 0 : index
    %c16_103 = arith.constant 16 : index
    %174 = vector.load %arg5[%c0_101, %c0_102, %c16_103] : memref<1x24x32xf32, #tpu.memory_space<vmem>>, vector<1x24x8xf32>
    %175 = vector.shape_cast %174 : vector<1x24x8xf32> to vector<24x8xf32>
    %c0_104 = arith.constant 0 : index
    %c0_105 = arith.constant 0 : index
    %c16_106 = arith.constant 16 : index
    %176 = vector.load %arg6[%c0_104, %c0_105, %c16_106] : memref<1x24x32xf32, #tpu.memory_space<vmem>>, vector<1x24x8xf32>
    %177 = vector.shape_cast %176 : vector<1x24x8xf32> to vector<24x8xf32>
    %cst_107 = arith.constant dense<0.000000e+00> : vector<8x24xf32>
    %178 = tpu.matmul %173, %175, %cst_107 {dimension_numbers = #tpu.dot_dimension_numbers<[1], [1], [0], [0], [0, 0, 1, 0], [], []>} : vector<8x8xf32>, vector<24x8xf32>, vector<8x24xf32> -> vector<8x24xf32>
    %cst_108 = arith.constant dense<0xFF800000> : vector<8xf32>
    %179 = vector.multi_reduction <maximumf>, %178, %cst_108 [1] : vector<8x24xf32> to vector<8xf32>
    %180 = vector.shape_cast %179 : vector<8xf32> to vector<8x1xf32>
    %181 = vector.broadcast %180 : vector<8x1xf32> to vector<8x24xf32>
    %182 = arith.subf %178, %181 : vector<8x24xf32>
    %183 = math.exp %182 : vector<8x24xf32>
    %cst_109 = arith.constant dense<0.000000e+00> : vector<8xf32>
    %184 = vector.multi_reduction <add>, %183, %cst_109 [1] : vector<8x24xf32> to vector<8xf32>
    %185 = vector.shape_cast %184 : vector<8xf32> to vector<8x1xf32>
    %186 = vector.broadcast %185 : vector<8x1xf32> to vector<8x24xf32>
    %187 = arith.divf %183, %186 : vector<8x24xf32>
    %cst_110 = arith.constant dense<0.000000e+00> : vector<8x8xf32>
    %188 = tpu.matmul %187, %177, %cst_110 {dimension_numbers = #tpu.dot_dimension_numbers<[1], [0], [0], [1], [0, 0, 1, 1], [], []>} : vector<8x24xf32>, vector<24x8xf32>, vector<8x8xf32> -> vector<8x8xf32>
    %c0_111 = arith.constant 0 : index
    %c16_112 = arith.constant 16 : index
    %189 = vector.load %arg24[%c0_111, %c16_112] : memref<8x32xf32, #tpu.memory_space<vmem>>, vector<8x8xf32>
    tpu.vector_store %arg24[%c0_111, %c16_112], %188 {strides = array<i32>} : memref<8x32xf32, #tpu.memory_space<vmem>>, vector<8x8xf32>,
    %190 = vector.extract_strided_slice %138 {offsets = [0, 24], sizes = [8, 8], strides = [1, 1]} : vector<8x32xf32> to vector<8x8xf32>
    %c0_113 = arith.constant 0 : index
    %c0_114 = arith.constant 0 : index
    %c24_115 = arith.constant 24 : index
    %191 = vector.load %arg5[%c0_113, %c0_114, %c24_115] : memref<1x24x32xf32, #tpu.memory_space<vmem>>, vector<1x24x8xf32>
    %192 = vector.shape_cast %191 : vector<1x24x8xf32> to vector<24x8xf32>
    %c0_116 = arith.constant 0 : index
    %c0_117 = arith.constant 0 : index
    %c24_118 = arith.constant 24 : index
    %193 = vector.load %arg6[%c0_116, %c0_117, %c24_118] : memref<1x24x32xf32, #tpu.memory_space<vmem>>, vector<1x24x8xf32>
    %194 = vector.shape_cast %193 : vector<1x24x8xf32> to vector<24x8xf32>
    %cst_119 = arith.constant dense<0.000000e+00> : vector<8x24xf32>
    %195 = tpu.matmul %190, %192, %cst_119 {dimension_numbers = #tpu.dot_dimension_numbers<[1], [1], [0], [0], [0, 0, 1, 0], [], []>} : vector<8x8xf32>, vector<24x8xf32>, vector<8x24xf32> -> vector<8x24xf32>
    %cst_120 = arith.constant dense<0xFF800000> : vector<8xf32>
    %196 = vector.multi_reduction <maximumf>, %195, %cst_120 [1] : vector<8x24xf32> to vector<8xf32>
    %197 = vector.shape_cast %196 : vector<8xf32> to vector<8x1xf32>
    %198 = vector.broadcast %197 : vector<8x1xf32> to vector<8x24xf32>
    %199 = arith.subf %195, %198 : vector<8x24xf32>
    %200 = math.exp %199 : vector<8x24xf32>
    %cst_121 = arith.constant dense<0.000000e+00> : vector<8xf32>
    %201 = vector.multi_reduction <add>, %200, %cst_121 [1] : vector<8x24xf32> to vector<8xf32>
    %202 = vector.shape_cast %201 : vector<8xf32> to vector<8x1xf32>
    %203 = vector.broadcast %202 : vector<8x1xf32> to vector<8x24xf32>
    %204 = arith.divf %200, %203 : vector<8x24xf32>
    %cst_122 = arith.constant dense<0.000000e+00> : vector<8x8xf32>
    %205 = tpu.matmul %204, %194, %cst_122 {dimension_numbers = #tpu.dot_dimension_numbers<[1], [0], [0], [1], [0, 0, 1, 1], [], []>} : vector<8x24xf32>, vector<24x8xf32>, vector<8x8xf32> -> vector<8x8xf32>
    %c0_123 = arith.constant 0 : index
    %c24_124 = arith.constant 24 : index
    %206 = vector.load %arg24[%c0_123, %c24_124] : memref<8x32xf32, #tpu.memory_space<vmem>>, vector<8x8xf32>
    tpu.vector_store %arg24[%c0_123, %c24_124], %205 {strides = array<i32>} : memref<8x32xf32, #tpu.memory_space<vmem>>, vector<8x8xf32>,
    %c0_125 = arith.constant 0 : index
    %c0_126 = arith.constant 0 : index
    %207 = vector.load %arg24[%c0_125, %c0_126] : memref<8x32xf32, #tpu.memory_space<vmem>>, vector<8x32xf32>
    %c0_127 = arith.constant 0 : index
    %c0_128 = arith.constant 0 : index
    %208 = vector.load %arg15[%c0_127, %c0_128] : memref<32x32xf32, #tpu.memory_space<vmem>>, vector<32x32xf32>
    %cst_129 = arith.constant dense<0.000000e+00> : vector<8x32xf32>
    %209 = tpu.matmul %207, %208, %cst_129 {dimension_numbers = #tpu.dot_dimension_numbers<[1], [0], [0], [1], [0, 0, 1, 1], [], []>} : vector<8x32xf32>, vector<32x32xf32>, vector<8x32xf32> -> vector<8x32xf32>
    %210 = arith.addf %108, %209 : vector<8x32xf32>
    %c0_130 = arith.constant 0 : index
    %c0_131 = arith.constant 0 : index
    %211 = vector.load %arg16[%c0_130, %c0_131] : memref<1x32xf32, #tpu.memory_space<vmem>>, vector<1x32xf32>
    %212 = vector.shape_cast %211 : vector<1x32xf32> to vector<32xf32>
    %213 = vector.shape_cast %212 : vector<32xf32> to vector<1x32xf32>
    %214 = vector.broadcast %213 : vector<1x32xf32> to vector<8x32xf32>
    %215 = arith.addf %210, %214 : vector<8x32xf32>
    %c0_132 = arith.constant 0 : index
    %c0_133 = arith.constant 0 : index
    %216 = vector.load %arg17[%c0_132, %c0_133] : memref<1x32xf32, #tpu.memory_space<vmem>>, vector<1x32xf32>
    %217 = vector.shape_cast %216 : vector<1x32xf32> to vector<32xf32>
    %c0_134 = arith.constant 0 : index
    %c0_135 = arith.constant 0 : index
    %218 = vector.load %arg18[%c0_134, %c0_135] : memref<1x32xf32, #tpu.memory_space<vmem>>, vector<1x32xf32>
    %219 = vector.shape_cast %218 : vector<1x32xf32> to vector<32xf32>
    %cst_136 = arith.constant dense<0.000000e+00> : vector<8xf32>
    %220 = vector.multi_reduction <add>, %215, %cst_136 [1] : vector<8x32xf32> to vector<8xf32>
    %221 = vector.shape_cast %220 : vector<8xf32> to vector<8x1xf32>
    %cst_137 = arith.constant 3.200000e+01 : f32
    %222 = vector.broadcast %cst_137 : f32 to vector<8x1xf32>
    %223 = arith.divf %221, %222 : vector<8x1xf32>
    %224 = vector.broadcast %223 : vector<8x1xf32> to vector<8x32xf32>
    %225 = arith.subf %215, %224 : vector<8x32xf32>
    %226 = arith.mulf %225, %225 : vector<8x32xf32>
    %cst_138 = arith.constant dense<0.000000e+00> : vector<8xf32>
    %227 = vector.multi_reduction <add>, %226, %cst_138 [1] : vector<8x32xf32> to vector<8xf32>
    %228 = vector.shape_cast %227 : vector<8xf32> to vector<8x1xf32>
    %cst_139 = arith.constant 3.200000e+01 : f32
    %229 = vector.broadcast %cst_139 : f32 to vector<8x1xf32>
    %230 = arith.divf %228, %229 : vector<8x1xf32>
    %231 = vector.broadcast %223 : vector<8x1xf32> to vector<8x32xf32>
    %232 = arith.subf %215, %231 : vector<8x32xf32>
    %cst_140 = arith.constant 9.99999974E-6 : f32
    %233 = vector.broadcast %cst_140 : f32 to vector<8x1xf32>
    %234 = arith.addf %230, %233 : vector<8x1xf32>
    %235 = math.rsqrt %234 : vector<8x1xf32>
    %236 = vector.broadcast %235 : vector<8x1xf32> to vector<8x32xf32>
    %237 = arith.mulf %232, %236 : vector<8x32xf32>
    %238 = vector.shape_cast %217 : vector<32xf32> to vector<1x32xf32>
    %239 = vector.broadcast %238 : vector<1x32xf32> to vector<8x32xf32>
    %240 = arith.mulf %237, %239 : vector<8x32xf32>
    %241 = vector.shape_cast %219 : vector<32xf32> to vector<1x32xf32>
    %242 = vector.broadcast %241 : vector<1x32xf32> to vector<8x32xf32>
    %243 = arith.addf %240, %242 : vector<8x32xf32>
    %c0_141 = arith.constant 0 : index
    %c0_142 = arith.constant 0 : index
    %244 = vector.load %arg19[%c0_141, %c0_142] : memref<32x128xf32, #tpu.memory_space<vmem>>, vector<32x128xf32>
    %cst_143 = arith.constant dense<0.000000e+00> : vector<8x128xf32>
    %245 = tpu.matmul %243, %244, %cst_143 {dimension_numbers = #tpu.dot_dimension_numbers<[1], [0], [0], [1], [0, 0, 1, 1], [], []>} : vector<8x32xf32>, vector<32x128xf32>, vector<8x128xf32> -> vector<8x128xf32>
    %c0_144 = arith.constant 0 : index
    %c0_145 = arith.constant 0 : index
    %246 = vector.load %arg20[%c0_144, %c0_145] : memref<1x128xf32, #tpu.memory_space<vmem>>, vector<1x128xf32>
    %247 = vector.shape_cast %246 : vector<1x128xf32> to vector<128xf32>
    %248 = vector.shape_cast %247 : vector<128xf32> to vector<1x128xf32>
    %249 = vector.broadcast %248 : vector<1x128xf32> to vector<8x128xf32>
    %250 = arith.addf %245, %249 : vector<8x128xf32>
    %cst_146 = arith.constant 5.000000e-01 : f32
    %251 = vector.broadcast %cst_146 : f32 to vector<8x128xf32>
    %252 = arith.mulf %251, %250 : vector<8x128xf32>
    %cst_147 = arith.constant 0.707106769 : f32
    %253 = vector.broadcast %cst_147 : f32 to vector<8x128xf32>
    %254 = arith.mulf %250, %253 : vector<8x128xf32>
    %255 = math.erf %254 : vector<8x128xf32>
    %cst_148 = arith.constant 1.000000e+00 : f32
    %256 = vector.broadcast %cst_148 : f32 to vector<8x128xf32>
    %257 = arith.addf %256, %255 : vector<8x128xf32>
    %258 = arith.mulf %252, %257 : vector<8x128xf32>
    %c0_149 = arith.constant 0 : index
    %c0_150 = arith.constant 0 : index
    %259 = vector.load %arg21[%c0_149, %c0_150] : memref<128x32xf32, #tpu.memory_space<vmem>>, vector<128x32xf32>
    %cst_151 = arith.constant dense<0.000000e+00> : vector<8x32xf32>
    %260 = tpu.matmul %258, %259, %cst_151 {dimension_numbers = #tpu.dot_dimension_numbers<[1], [0], [0], [1], [0, 0, 1, 1], [], []>} : vector<8x128xf32>, vector<128x32xf32>, vector<8x32xf32> -> vector<8x32xf32>
    %261 = arith.addf %215, %260 : vector<8x32xf32>
    %c0_152 = arith.constant 0 : index
    %c0_153 = arith.constant 0 : index
    %262 = vector.load %arg22[%c0_152, %c0_153] : memref<1x32xf32, #tpu.memory_space<vmem>>, vector<1x32xf32>
    %263 = vector.shape_cast %262 : vector<1x32xf32> to vector<32xf32>
    %264 = vector.shape_cast %263 : vector<32xf32> to vector<1x32xf32>
    %265 = vector.broadcast %264 : vector<1x32xf32> to vector<8x32xf32>
    %266 = arith.addf %261, %265 : vector<8x32xf32>
    %c0_154 = arith.constant 0 : index
    %c0_155 = arith.constant 0 : index
    %c0_156 = arith.constant 0 : index
    %267 = vector.load %arg23[%c0_154, %c0_155, %c0_156] : memref<1x8x32xf32, #tpu.memory_space<vmem>>, vector<1x8x32xf32>
    %268 = vector.shape_cast %267 : vector<1x8x32xf32> to vector<8x32xf32>
    %269 = vector.shape_cast %266 : vector<8x32xf32> to vector<1x8x32xf32>
    tpu.vector_store %arg23[%c0_154, %c0_155, %c0_156], %269 {strides = array<i32>} : memref<1x8x32xf32, #tpu.memory_space<vmem>>, vector<1x8x32xf32>,
    return
  }
  func.func @transform_0(%arg0: i32, %arg1: i32) -> (i32, i32, i32) {
    %c0_i32 = arith.constant 0 : i32
    %c0_i32_0 = arith.constant 0 : i32
    return %arg0, %arg1, %c0_i32 : i32, i32, i32
  }
  func.func @transform_1(%arg0: i32, %arg1: i32) -> (i32, i32, i32) {
    %c0_i32 = arith.constant 0 : i32
    %c0_i32_0 = arith.constant 0 : i32
    %c0_i32_1 = arith.constant 0 : i32
    return %arg0, %c0_i32, %c0_i32_0 : i32, i32, i32
  }
  func.func @transform_2(%arg0: i32, %arg1: i32) -> (i32, i32, i32) {
    %c0_i32 = arith.constant 0 : i32
    %c0_i32_0 = arith.constant 0 : i32
    %c0_i32_1 = arith.constant 0 : i32
    return %arg0, %c0_i32, %c0_i32_0 : i32, i32, i32
  }
  func.func @transform_3(%arg0: i32, %arg1: i32) -> (i32, i32, i32) {
    %c0_i32 = arith.constant 0 : i32
    %c0_i32_0 = arith.constant 0 : i32
    %c0_i32_1 = arith.constant 0 : i32
    return %arg0, %c0_i32, %c0_i32_0 : i32, i32, i32
  }
  func.func @transform_4(%arg0: i32, %arg1: i32) -> (i32, i32, i32) {
    %c0_i32 = arith.constant 0 : i32
    %c0_i32_0 = arith.constant 0 : i32
    %c0_i32_1 = arith.constant 0 : i32
    return %arg0, %c0_i32, %c0_i32_0 : i32, i32, i32
  }
  func.func @transform_5(%arg0: i32, %arg1: i32) -> (i32, i32) {
    %c0_i32 = arith.constant 0 : i32
    %c0_i32_0 = arith.constant 0 : i32
    %c0_i32_1 = arith.constant 0 : i32
    return %c0_i32, %c0_i32_0 : i32, i32
  }
  func.func @transform_6(%arg0: i32, %arg1: i32) -> (i32, i32) {
    %c0_i32 = arith.constant 0 : i32
    %c0_i32_0 = arith.constant 0 : i32
    %c0_i32_1 = arith.constant 0 : i32
    return %c0_i32, %c0_i32_0 : i32, i32
  }
  func.func @transform_7(%arg0: i32, %arg1: i32) -> (i32, i32) {
    %c0_i32 = arith.constant 0 : i32
    %c0_i32_0 = arith.constant 0 : i32
    %c0_i32_1 = arith.constant 0 : i32
    return %c0_i32, %c0_i32_0 : i32, i32
  }
  func.func @transform_8(%arg0: i32, %arg1: i32) -> (i32, i32) {
    %c0_i32 = arith.constant 0 : i32
    %c0_i32_0 = arith.constant 0 : i32
    %c0_i32_1 = arith.constant 0 : i32
    return %c0_i32, %c0_i32_0 : i32, i32
  }
  func.func @transform_9(%arg0: i32, %arg1: i32) -> (i32, i32) {
    %c0_i32 = arith.constant 0 : i32
    %c0_i32_0 = arith.constant 0 : i32
    %c0_i32_1 = arith.constant 0 : i32
    return %c0_i32, %c0_i32_0 : i32, i32
  }
  func.func @transform_10(%arg0: i32, %arg1: i32) -> (i32, i32) {
    %c0_i32 = arith.constant 0 : i32
    %c0_i32_0 = arith.constant 0 : i32
    %c0_i32_1 = arith.constant 0 : i32
    return %c0_i32, %c0_i32_0 : i32, i32
  }
  func.func @transform_11(%arg0: i32, %arg1: i32) -> (i32, i32) {
    %c0_i32 = arith.constant 0 : i32
    %c0_i32_0 = arith.constant 0 : i32
    %c0_i32_1 = arith.constant 0 : i32
    return %c0_i32, %c0_i32_0 : i32, i32
  }
  func.func @transform_12(%arg0: i32, %arg1: i32) -> (i32, i32) {
    %c0_i32 = arith.constant 0 : i32
    %c0_i32_0 = arith.constant 0 : i32
    %c0_i32_1 = arith.constant 0 : i32
    return %c0_i32, %c0_i32_0 : i32, i32
  }
  func.func @transform_13(%arg0: i32, %arg1: i32) -> (i32, i32) {
    %c0_i32 = arith.constant 0 : i32
    %c0_i32_0 = arith.constant 0 : i32
    %c0_i32_1 = arith.constant 0 : i32
    return %c0_i32, %c0_i32_0 : i32, i32
  }
  func.func @transform_14(%arg0: i32, %arg1: i32) -> (i32, i32) {
    %c0_i32 = arith.constant 0 : i32
    %c0_i32_0 = arith.constant 0 : i32
    %c0_i32_1 = arith.constant 0 : i32
    return %c0_i32, %c0_i32_0 : i32, i32
  }
  func.func @transform_15(%arg0: i32, %arg1: i32) -> (i32, i32) {
    %c0_i32 = arith.constant 0 : i32
    %c0_i32_0 = arith.constant 0 : i32
    %c0_i32_1 = arith.constant 0 : i32
    return %c0_i32, %c0_i32_0 : i32, i32
  }
  func.func @transform_16(%arg0: i32, %arg1: i32) -> (i32, i32) {
    %c0_i32 = arith.constant 0 : i32
    %c0_i32_0 = arith.constant 0 : i32
    %c0_i32_1 = arith.constant 0 : i32
    return %c0_i32, %c0_i32_0 : i32, i32
  }
  func.func @transform_17(%arg0: i32, %arg1: i32) -> (i32, i32) {
    %c0_i32 = arith.constant 0 : i32
    %c0_i32_0 = arith.constant 0 : i32
    %c0_i32_1 = arith.constant 0 : i32
    return %c0_i32, %c0_i32_0 : i32, i32
  }
  func.func @transform_18(%arg0: i32, %arg1: i32) -> (i32, i32) {
    %c0_i32 = arith.constant 0 : i32
    %c0_i32_0 = arith.constant 0 : i32
    %c0_i32_1 = arith.constant 0 : i32
    return %c0_i32, %c0_i32_0 : i32, i32
  }
  func.func @transform_19(%arg0: i32, %arg1: i32) -> (i32, i32) {
    %c0_i32 = arith.constant 0 : i32
    %c0_i32_0 = arith.constant 0 : i32
    %c0_i32_1 = arith.constant 0 : i32
    return %c0_i32, %c0_i32_0 : i32, i32
  }
  func.func @transform_20(%arg0: i32, %arg1: i32) -> (i32, i32) {
    %c0_i32 = arith.constant 0 : i32
    %c0_i32_0 = arith.constant 0 : i32
    %c0_i32_1 = arith.constant 0 : i32
    return %c0_i32, %c0_i32_0 : i32, i32
  }
  func.func @transform_21(%arg0: i32, %arg1: i32) -> (i32, i32, i32) {
    %c0_i32 = arith.constant 0 : i32
    %c0_i32_0 = arith.constant 0 : i32
    return %arg0, %arg1, %c0_i32 : i32, i32, i32
  }
}

module attributes {stable_mosaic.version = 11 : i64} {
  func.func @_block_kernel(%arg0: i32, %arg1: i32, %arg2: memref<1x8x32xf32, #tpu.memory_space<vmem>>, %arg3: memref<1x16x32xf32, #tpu.memory_space<vmem>>, %arg4: memref<1x16x32xf32, #tpu.memory_space<vmem>>, %arg5: memref<1x24x32xf32, #tpu.memory_space<vmem>>, %arg6: memref<1x24x32xf32, #tpu.memory_space<vmem>>, %arg7: memref<1x32xf32, #tpu.memory_space<vmem>>, %arg8: memref<1x32xf32, #tpu.memory_space<vmem>>, %arg9: memref<32x32xf32, #tpu.memory_space<vmem>>, %arg10: memref<32x32xf32, #tpu.memory_space<vmem>>, %arg11: memref<1x32xf32, #tpu.memory_space<vmem>>, %arg12: memref<1x32xf32, #tpu.memory_space<vmem>>, %arg13: memref<1x32xf32, #tpu.memory_space<vmem>>, %arg14: memref<32x32xf32, #tpu.memory_space<vmem>>, %arg15: memref<32x32xf32, #tpu.memory_space<vmem>>, %arg16: memref<1x32xf32, #tpu.memory_space<vmem>>, %arg17: memref<1x32xf32, #tpu.memory_space<vmem>>, %arg18: memref<1x32xf32, #tpu.memory_space<vmem>>, %arg19: memref<32x128xf32, #tpu.memory_space<vmem>>, %arg20: memref<1x128xf32, #tpu.memory_space<vmem>>, %arg21: memref<128x32xf32, #tpu.memory_space<vmem>>, %arg22: memref<1x32xf32, #tpu.memory_space<vmem>>, %arg23: memref<1x8x32xf32, #tpu.memory_space<vmem>>, %arg24: memref<8x32xf32, #tpu.memory_space<vmem>>) attributes {dimension_semantics = [#tpu.dimension_semantics<parallel>, #tpu.dimension_semantics<parallel>], iteration_bounds = array<i64: 2, 2>, scalar_prefetch = 0 : i64, scratch_operands = 1 : i64, tpu.core_type = #tpu.core_type<tc>, window_params = [{transform_indices = @transform_0, window_bounds = array<i64: 1, 8, 32>}, {transform_indices = @transform_1, window_bounds = array<i64: 1, 16, 32>}, {transform_indices = @transform_2, window_bounds = array<i64: 1, 16, 32>}, {transform_indices = @transform_3, window_bounds = array<i64: 1, 24, 32>}, {transform_indices = @transform_4, window_bounds = array<i64: 1, 24, 32>}, {pipeline_mode = #tpu.pipeline_mode<synchronous>, transform_indices = @transform_5, window_bounds = array<i64: 1, 32>}, {pipeline_mode = #tpu.pipeline_mode<synchronous>, transform_indices = @transform_6, window_bounds = array<i64: 1, 32>}, {pipeline_mode = #tpu.pipeline_mode<synchronous>, transform_indices = @transform_7, window_bounds = array<i64: 32, 32>}, {pipeline_mode = #tpu.pipeline_mode<synchronous>, transform_indices = @transform_8, window_bounds = array<i64: 32, 32>}, {pipeline_mode = #tpu.pipeline_mode<synchronous>, transform_indices = @transform_9, window_bounds = array<i64: 1, 32>}, {pipeline_mode = #tpu.pipeline_mode<synchronous>, transform_indices = @transform_10, window_bounds = array<i64: 1, 32>}, {pipeline_mode = #tpu.pipeline_mode<synchronous>, transform_indices = @transform_11, window_bounds = array<i64: 1, 32>}, {pipeline_mode = #tpu.pipeline_mode<synchronous>, transform_indices = @transform_12, window_bounds = array<i64: 32, 32>}, {pipeline_mode = #tpu.pipeline_mode<synchronous>, transform_indices = @transform_13, window_bounds = array<i64: 32, 32>}, {pipeline_mode = #tpu.pipeline_mode<synchronous>, transform_indices = @transform_14, window_bounds = array<i64: 1, 32>}, {pipeline_mode = #tpu.pipeline_mode<synchronous>, transform_indices = @transform_15, window_bounds = array<i64: 1, 32>}, {pipeline_mode = #tpu.pipeline_mode<synchronous>, transform_indices = @transform_16, window_bounds = array<i64: 1, 32>}, {pipeline_mode = #tpu.pipeline_mode<synchronous>, transform_indices = @transform_17, window_bounds = array<i64: 32, 128>}, {pipeline_mode = #tpu.pipeline_mode<synchronous>, transform_indices = @transform_18, window_bounds = array<i64: 1, 128>}, {pipeline_mode = #tpu.pipeline_mode<synchronous>, transform_indices = @transform_19, window_bounds = array<i64: 128, 32>}, {pipeline_mode = #tpu.pipeline_mode<synchronous>, transform_indices = @transform_20, window_bounds = array<i64: 1, 32>}, {transform_indices = @transform_21, window_bounds = array<i64: 1, 8, 32>}]} {
    %c0 = arith.constant 0 : index
    %c0_0 = arith.constant 0 : index
    %c0_1 = arith.constant 0 : index
    %0 = vector.load %arg2[%c0, %c0_0, %c0_1] : memref<1x8x32xf32, #tpu.memory_space<vmem>>, vector<1x8x32xf32>
    %1 = vector.shape_cast %0 : vector<1x8x32xf32> to vector<8x32xf32>
    %c0_2 = arith.constant 0 : index
    %c0_3 = arith.constant 0 : index
    %2 = vector.load %arg7[%c0_2, %c0_3] : memref<1x32xf32, #tpu.memory_space<vmem>>, vector<1x32xf32>
    %3 = vector.shape_cast %2 : vector<1x32xf32> to vector<32xf32>
    %c0_4 = arith.constant 0 : index
    %c0_5 = arith.constant 0 : index
    %4 = vector.load %arg8[%c0_4, %c0_5] : memref<1x32xf32, #tpu.memory_space<vmem>>, vector<1x32xf32>
    %5 = vector.shape_cast %4 : vector<1x32xf32> to vector<32xf32>
    %cst = arith.constant dense<0.000000e+00> : vector<8xf32>
    %6 = vector.multi_reduction <add>, %1, %cst [1] : vector<8x32xf32> to vector<8xf32>
    %7 = vector.shape_cast %6 : vector<8xf32> to vector<8x1xf32>
    %cst_6 = arith.constant 3.200000e+01 : f32
    %8 = vector.broadcast %cst_6 : f32 to vector<8x1xf32>
    %9 = arith.divf %7, %8 : vector<8x1xf32>
    %10 = vector.broadcast %9 : vector<8x1xf32> to vector<8x32xf32>
    %11 = arith.subf %1, %10 : vector<8x32xf32>
    %12 = arith.mulf %11, %11 : vector<8x32xf32>
    %cst_7 = arith.constant dense<0.000000e+00> : vector<8xf32>
    %13 = vector.multi_reduction <add>, %12, %cst_7 [1] : vector<8x32xf32> to vector<8xf32>
    %14 = vector.shape_cast %13 : vector<8xf32> to vector<8x1xf32>
    %cst_8 = arith.constant 3.200000e+01 : f32
    %15 = vector.broadcast %cst_8 : f32 to vector<8x1xf32>
    %16 = arith.divf %14, %15 : vector<8x1xf32>
    %17 = vector.broadcast %9 : vector<8x1xf32> to vector<8x32xf32>
    %18 = arith.subf %1, %17 : vector<8x32xf32>
    %cst_9 = arith.constant 9.99999974E-6 : f32
    %19 = vector.broadcast %cst_9 : f32 to vector<8x1xf32>
    %20 = arith.addf %16, %19 : vector<8x1xf32>
    %21 = math.rsqrt %20 : vector<8x1xf32>
    %22 = vector.broadcast %21 : vector<8x1xf32> to vector<8x32xf32>
    %23 = arith.mulf %18, %22 : vector<8x32xf32>
    %24 = vector.shape_cast %3 : vector<32xf32> to vector<1x32xf32>
    %25 = vector.broadcast %24 : vector<1x32xf32> to vector<8x32xf32>
    %26 = arith.mulf %23, %25 : vector<8x32xf32>
    %27 = vector.shape_cast %5 : vector<32xf32> to vector<1x32xf32>
    %28 = vector.broadcast %27 : vector<1x32xf32> to vector<8x32xf32>
    %29 = arith.addf %26, %28 : vector<8x32xf32>
    %c0_10 = arith.constant 0 : index
    %c0_11 = arith.constant 0 : index
    %30 = vector.load %arg9[%c0_10, %c0_11] : memref<32x32xf32, #tpu.memory_space<vmem>>, vector<32x32xf32>
    %cst_12 = arith.constant dense<0.000000e+00> : vector<8x32xf32>
    %31 = tpu.matmul %29, %30, %cst_12 {dimension_numbers = #tpu.dot_dimension_numbers<[1], [0], [0], [1], [0, 0, 1, 1], [], []>} : vector<8x32xf32>, vector<32x32xf32>, vector<8x32xf32> -> vector<8x32xf32>
    %32 = vector.extract_strided_slice %31 {offsets = [0, 0], sizes = [8, 8], strides = [1, 1]} : vector<8x32xf32> to vector<8x8xf32>
    %c0_13 = arith.constant 0 : index
    %c0_14 = arith.constant 0 : index
    %c0_15 = arith.constant 0 : index
    %33 = vector.load %arg3[%c0_13, %c0_14, %c0_15] : memref<1x16x32xf32, #tpu.memory_space<vmem>>, vector<1x16x8xf32>
    %34 = vector.shape_cast %33 : vector<1x16x8xf32> to vector<16x8xf32>
    %c0_16 = arith.constant 0 : index
    %c0_17 = arith.constant 0 : index
    %c0_18 = arith.constant 0 : index
    %35 = vector.load %arg4[%c0_16, %c0_17, %c0_18] : memref<1x16x32xf32, #tpu.memory_space<vmem>>, vector<1x16x8xf32>
    %36 = vector.shape_cast %35 : vector<1x16x8xf32> to vector<16x8xf32>
    %cst_19 = arith.constant dense<0.000000e+00> : vector<8x16xf32>
    %37 = tpu.matmul %32, %34, %cst_19 {dimension_numbers = #tpu.dot_dimension_numbers<[1], [1], [0], [0], [0, 0, 1, 0], [], []>} : vector<8x8xf32>, vector<16x8xf32>, vector<8x16xf32> -> vector<8x16xf32>
    %cst_20 = arith.constant dense<0xFF800000> : vector<8xf32>
    %38 = vector.multi_reduction <maximumf>, %37, %cst_20 [1] : vector<8x16xf32> to vector<8xf32>
    %39 = vector.shape_cast %38 : vector<8xf32> to vector<8x1xf32>
    %40 = vector.broadcast %39 : vector<8x1xf32> to vector<8x16xf32>
    %41 = arith.subf %37, %40 : vector<8x16xf32>
    %42 = math.exp %41 : vector<8x16xf32>
    %cst_21 = arith.constant dense<0.000000e+00> : vector<8xf32>
    %43 = vector.multi_reduction <add>, %42, %cst_21 [1] : vector<8x16xf32> to vector<8xf32>
    %44 = vector.shape_cast %43 : vector<8xf32> to vector<8x1xf32>
    %45 = vector.broadcast %44 : vector<8x1xf32> to vector<8x16xf32>
    %46 = arith.divf %42, %45 : vector<8x16xf32>
    %cst_22 = arith.constant dense<0.000000e+00> : vector<8x8xf32>
    %47 = tpu.matmul %46, %36, %cst_22 {dimension_numbers = #tpu.dot_dimension_numbers<[1], [0], [0], [1], [0, 0, 1, 1], [], []>} : vector<8x16xf32>, vector<16x8xf32>, vector<8x8xf32> -> vector<8x8xf32>
    %c0_23 = arith.constant 0 : index
    %c0_24 = arith.constant 0 : index
    %48 = vector.load %arg24[%c0_23, %c0_24] : memref<8x32xf32, #tpu.memory_space<vmem>>, vector<8x8xf32>
    tpu.vector_store %arg24[%c0_23, %c0_24], %47 {strides = array<i32>} : memref<8x32xf32, #tpu.memory_space<vmem>>, vector<8x8xf32>,
    %49 = vector.extract_strided_slice %31 {offsets = [0, 8], sizes = [8, 8], strides = [1, 1]} : vector<8x32xf32> to vector<8x8xf32>
    %c0_25 = arith.constant 0 : index
    %c0_26 = arith.constant 0 : index
    %c8 = arith.constant 8 : index
    %50 = vector.load %arg3[%c0_25, %c0_26, %c8] : memref<1x16x32xf32, #tpu.memory_space<vmem>>, vector<1x16x8xf32>
    %51 = vector.shape_cast %50 : vector<1x16x8xf32> to vector<16x8xf32>
    %c0_27 = arith.constant 0 : index
    %c0_28 = arith.constant 0 : index
    %c8_29 = arith.constant 8 : index
    %52 = vector.load %arg4[%c0_27, %c0_28, %c8_29] : memref<1x16x32xf32, #tpu.memory_space<vmem>>, vector<1x16x8xf32>
    %53 = vector.shape_cast %52 : vector<1x16x8xf32> to vector<16x8xf32>
    %cst_30 = arith.constant dense<0.000000e+00> : vector<8x16xf32>
    %54 = tpu.matmul %49, %51, %cst_30 {dimension_numbers = #tpu.dot_dimension_numbers<[1], [1], [0], [0], [0, 0, 1, 0], [], []>} : vector<8x8xf32>, vector<16x8xf32>, vector<8x16xf32> -> vector<8x16xf32>
    %cst_31 = arith.constant dense<0xFF800000> : vector<8xf32>
    %55 = vector.multi_reduction <maximumf>, %54, %cst_31 [1] : vector<8x16xf32> to vector<8xf32>
    %56 = vector.shape_cast %55 : vector<8xf32> to vector<8x1xf32>
    %57 = vector.broadcast %56 : vector<8x1xf32> to vector<8x16xf32>
    %58 = arith.subf %54, %57 : vector<8x16xf32>
    %59 = math.exp %58 : vector<8x16xf32>
    %cst_32 = arith.constant dense<0.000000e+00> : vector<8xf32>
    %60 = vector.multi_reduction <add>, %59, %cst_32 [1] : vector<8x16xf32> to vector<8xf32>
    %61 = vector.shape_cast %60 : vector<8xf32> to vector<8x1xf32>
    %62 = vector.broadcast %61 : vector<8x1xf32> to vector<8x16xf32>
    %63 = arith.divf %59, %62 : vector<8x16xf32>
    %cst_33 = arith.constant dense<0.000000e+00> : vector<8x8xf32>
    %64 = tpu.matmul %63, %53, %cst_33 {dimension_numbers = #tpu.dot_dimension_numbers<[1], [0], [0], [1], [0, 0, 1, 1], [], []>} : vector<8x16xf32>, vector<16x8xf32>, vector<8x8xf32> -> vector<8x8xf32>
    %c0_34 = arith.constant 0 : index
    %c8_35 = arith.constant 8 : index
    %65 = vector.load %arg24[%c0_34, %c8_35] : memref<8x32xf32, #tpu.memory_space<vmem>>, vector<8x8xf32>
    tpu.vector_store %arg24[%c0_34, %c8_35], %64 {strides = array<i32>} : memref<8x32xf32, #tpu.memory_space<vmem>>, vector<8x8xf32>,
    %66 = vector.extract_strided_slice %31 {offsets = [0, 16], sizes = [8, 8], strides = [1, 1]} : vector<8x32xf32> to vector<8x8xf32>
    %c0_36 = arith.constant 0 : index
    %c0_37 = arith.constant 0 : index
    %c16 = arith.constant 16 : index
    %67 = vector.load %arg3[%c0_36, %c0_37, %c16] : memref<1x16x32xf32, #tpu.memory_space<vmem>>, vector<1x16x8xf32>
    %68 = vector.shape_cast %67 : vector<1x16x8xf32> to vector<16x8xf32>
    %c0_38 = arith.constant 0 : index
    %c0_39 = arith.constant 0 : index
    %c16_40 = arith.constant 16 : index
    %69 = vector.load %arg4[%c0_38, %c0_39, %c16_40] : memref<1x16x32xf32, #tpu.memory_space<vmem>>, vector<1x16x8xf32>
    %70 = vector.shape_cast %69 : vector<1x16x8xf32> to vector<16x8xf32>
    %cst_41 = arith.constant dense<0.000000e+00> : vector<8x16xf32>
    %71 = tpu.matmul %66, %68, %cst_41 {dimension_numbers = #tpu.dot_dimension_numbers<[1], [1], [0], [0], [0, 0, 1, 0], [], []>} : vector<8x8xf32>, vector<16x8xf32>, vector<8x16xf32> -> vector<8x16xf32>
    %cst_42 = arith.constant dense<0xFF800000> : vector<8xf32>
    %72 = vector.multi_reduction <maximumf>, %71, %cst_42 [1] : vector<8x16xf32> to vector<8xf32>
    %73 = vector.shape_cast %72 : vector<8xf32> to vector<8x1xf32>
    %74 = vector.broadcast %73 : vector<8x1xf32> to vector<8x16xf32>
    %75 = arith.subf %71, %74 : vector<8x16xf32>
    %76 = math.exp %75 : vector<8x16xf32>
    %cst_43 = arith.constant dense<0.000000e+00> : vector<8xf32>
    %77 = vector.multi_reduction <add>, %76, %cst_43 [1] : vector<8x16xf32> to vector<8xf32>
    %78 = vector.shape_cast %77 : vector<8xf32> to vector<8x1xf32>
    %79 = vector.broadcast %78 : vector<8x1xf32> to vector<8x16xf32>
    %80 = arith.divf %76, %79 : vector<8x16xf32>
    %cst_44 = arith.constant dense<0.000000e+00> : vector<8x8xf32>
    %81 = tpu.matmul %80, %70, %cst_44 {dimension_numbers = #tpu.dot_dimension_numbers<[1], [0], [0], [1], [0, 0, 1, 1], [], []>} : vector<8x16xf32>, vector<16x8xf32>, vector<8x8xf32> -> vector<8x8xf32>
    %c0_45 = arith.constant 0 : index
    %c16_46 = arith.constant 16 : index
    %82 = vector.load %arg24[%c0_45, %c16_46] : memref<8x32xf32, #tpu.memory_space<vmem>>, vector<8x8xf32>
    tpu.vector_store %arg24[%c0_45, %c16_46], %81 {strides = array<i32>} : memref<8x32xf32, #tpu.memory_space<vmem>>, vector<8x8xf32>,
    %83 = vector.extract_strided_slice %31 {offsets = [0, 24], sizes = [8, 8], strides = [1, 1]} : vector<8x32xf32> to vector<8x8xf32>
    %c0_47 = arith.constant 0 : index
    %c0_48 = arith.constant 0 : index
    %c24 = arith.constant 24 : index
    %84 = vector.load %arg3[%c0_47, %c0_48, %c24] : memref<1x16x32xf32, #tpu.memory_space<vmem>>, vector<1x16x8xf32>
    %85 = vector.shape_cast %84 : vector<1x16x8xf32> to vector<16x8xf32>
    %c0_49 = arith.constant 0 : index
    %c0_50 = arith.constant 0 : index
    %c24_51 = arith.constant 24 : index
    %86 = vector.load %arg4[%c0_49, %c0_50, %c24_51] : memref<1x16x32xf32, #tpu.memory_space<vmem>>, vector<1x16x8xf32>
    %87 = vector.shape_cast %86 : vector<1x16x8xf32> to vector<16x8xf32>
    %cst_52 = arith.constant dense<0.000000e+00> : vector<8x16xf32>
    %88 = tpu.matmul %83, %85, %cst_52 {dimension_numbers = #tpu.dot_dimension_numbers<[1], [1], [0], [0], [0, 0, 1, 0], [], []>} : vector<8x8xf32>, vector<16x8xf32>, vector<8x16xf32> -> vector<8x16xf32>
    %cst_53 = arith.constant dense<0xFF800000> : vector<8xf32>
    %89 = vector.multi_reduction <maximumf>, %88, %cst_53 [1] : vector<8x16xf32> to vector<8xf32>
    %90 = vector.shape_cast %89 : vector<8xf32> to vector<8x1xf32>
    %91 = vector.broadcast %90 : vector<8x1xf32> to vector<8x16xf32>
    %92 = arith.subf %88, %91 : vector<8x16xf32>
    %93 = math.exp %92 : vector<8x16xf32>
    %cst_54 = arith.constant dense<0.000000e+00> : vector<8xf32>
    %94 = vector.multi_reduction <add>, %93, %cst_54 [1] : vector<8x16xf32> to vector<8xf32>
    %95 = vector.shape_cast %94 : vector<8xf32> to vector<8x1xf32>
    %96 = vector.broadcast %95 : vector<8x1xf32> to vector<8x16xf32>
    %97 = arith.divf %93, %96 : vector<8x16xf32>
    %cst_55 = arith.constant dense<0.000000e+00> : vector<8x8xf32>
    %98 = tpu.matmul %97, %87, %cst_55 {dimension_numbers = #tpu.dot_dimension_numbers<[1], [0], [0], [1], [0, 0, 1, 1], [], []>} : vector<8x16xf32>, vector<16x8xf32>, vector<8x8xf32> -> vector<8x8xf32>
    %c0_56 = arith.constant 0 : index
    %c24_57 = arith.constant 24 : index
    %99 = vector.load %arg24[%c0_56, %c24_57] : memref<8x32xf32, #tpu.memory_space<vmem>>, vector<8x8xf32>
    tpu.vector_store %arg24[%c0_56, %c24_57], %98 {strides = array<i32>} : memref<8x32xf32, #tpu.memory_space<vmem>>, vector<8x8xf32>,
    %c0_58 = arith.constant 0 : index
    %c0_59 = arith.constant 0 : index
    %100 = vector.load %arg24[%c0_58, %c0_59] : memref<8x32xf32, #tpu.memory_space<vmem>>, vector<8x32xf32>
    %c0_60 = arith.constant 0 : index
    %c0_61 = arith.constant 0 : index
    %101 = vector.load %arg10[%c0_60, %c0_61] : memref<32x32xf32, #tpu.memory_space<vmem>>, vector<32x32xf32>
    %cst_62 = arith.constant dense<0.000000e+00> : vector<8x32xf32>
    %102 = tpu.matmul %100, %101, %cst_62 {dimension_numbers = #tpu.dot_dimension_numbers<[1], [0], [0], [1], [0, 0, 1, 1], [], []>} : vector<8x32xf32>, vector<32x32xf32>, vector<8x32xf32> -> vector<8x32xf32>
    %103 = arith.addf %1, %102 : vector<8x32xf32>
    %c0_63 = arith.constant 0 : index
    %c0_64 = arith.constant 0 : index
    %104 = vector.load %arg11[%c0_63, %c0_64] : memref<1x32xf32, #tpu.memory_space<vmem>>, vector<1x32xf32>
    %105 = vector.shape_cast %104 : vector<1x32xf32> to vector<32xf32>
    %106 = vector.shape_cast %105 : vector<32xf32> to vector<1x32xf32>
    %107 = vector.broadcast %106 : vector<1x32xf32> to vector<8x32xf32>
    %108 = arith.addf %103, %107 : vector<8x32xf32>
    %c0_65 = arith.constant 0 : index
    %c0_66 = arith.constant 0 : index
    %109 = vector.load %arg12[%c0_65, %c0_66] : memref<1x32xf32, #tpu.memory_space<vmem>>, vector<1x32xf32>
    %110 = vector.shape_cast %109 : vector<1x32xf32> to vector<32xf32>
    %c0_67 = arith.constant 0 : index
    %c0_68 = arith.constant 0 : index
    %111 = vector.load %arg13[%c0_67, %c0_68] : memref<1x32xf32, #tpu.memory_space<vmem>>, vector<1x32xf32>
    %112 = vector.shape_cast %111 : vector<1x32xf32> to vector<32xf32>
    %cst_69 = arith.constant dense<0.000000e+00> : vector<8xf32>
    %113 = vector.multi_reduction <add>, %108, %cst_69 [1] : vector<8x32xf32> to vector<8xf32>
    %114 = vector.shape_cast %113 : vector<8xf32> to vector<8x1xf32>
    %cst_70 = arith.constant 3.200000e+01 : f32
    %115 = vector.broadcast %cst_70 : f32 to vector<8x1xf32>
    %116 = arith.divf %114, %115 : vector<8x1xf32>
    %117 = vector.broadcast %116 : vector<8x1xf32> to vector<8x32xf32>
    %118 = arith.subf %108, %117 : vector<8x32xf32>
    %119 = arith.mulf %118, %118 : vector<8x32xf32>
    %cst_71 = arith.constant dense<0.000000e+00> : vector<8xf32>
    %120 = vector.multi_reduction <add>, %119, %cst_71 [1] : vector<8x32xf32> to vector<8xf32>
    %121 = vector.shape_cast %120 : vector<8xf32> to vector<8x1xf32>
    %cst_72 = arith.constant 3.200000e+01 : f32
    %122 = vector.broadcast %cst_72 : f32 to vector<8x1xf32>
    %123 = arith.divf %121, %122 : vector<8x1xf32>
    %124 = vector.broadcast %116 : vector<8x1xf32> to vector<8x32xf32>
    %125 = arith.subf %108, %124 : vector<8x32xf32>
    %cst_73 = arith.constant 9.99999974E-6 : f32
    %126 = vector.broadcast %cst_73 : f32 to vector<8x1xf32>
    %127 = arith.addf %123, %126 : vector<8x1xf32>
    %128 = math.rsqrt %127 : vector<8x1xf32>
    %129 = vector.broadcast %128 : vector<8x1xf32> to vector<8x32xf32>
    %130 = arith.mulf %125, %129 : vector<8x32xf32>
    %131 = vector.shape_cast %110 : vector<32xf32> to vector<1x32xf32>
    %132 = vector.broadcast %131 : vector<1x32xf32> to vector<8x32xf32>
    %133 = arith.mulf %130, %132 : vector<8x32xf32>
    %134 = vector.shape_cast %112 : vector<32xf32> to vector<1x32xf32>
    %135 = vector.broadcast %134 : vector<1x32xf32> to vector<8x32xf32>
    %136 = arith.addf %133, %135 : vector<8x32xf32>
    %c0_74 = arith.constant 0 : index
    %c0_75 = arith.constant 0 : index
    %137 = vector.load %arg14[%c0_74, %c0_75] : memref<32x32xf32, #tpu.memory_space<vmem>>, vector<32x32xf32>
    %cst_76 = arith.constant dense<0.000000e+00> : vector<8x32xf32>
    %138 = tpu.matmul %136, %137, %cst_76 {dimension_numbers = #tpu.dot_dimension_numbers<[1], [0], [0], [1], [0, 0, 1, 1], [], []>} : vector<8x32xf32>, vector<32x32xf32>, vector<8x32xf32> -> vector<8x32xf32>
    %139 = vector.extract_strided_slice %138 {offsets = [0, 0], sizes = [8, 8], strides = [1, 1]} : vector<8x32xf32> to vector<8x8xf32>
    %c0_77 = arith.constant 0 : index
    %c0_78 = arith.constant 0 : index
    %c0_79 = arith.constant 0 : index
    %140 = vector.load %arg5[%c0_77, %c0_78, %c0_79] : memref<1x24x32xf32, #tpu.memory_space<vmem>>, vector<1x24x8xf32>
    %141 = vector.shape_cast %140 : vector<1x24x8xf32> to vector<24x8xf32>
    %c0_80 = arith.constant 0 : index
    %c0_81 = arith.constant 0 : index
    %c0_82 = arith.constant 0 : index
    %142 = vector.load %arg6[%c0_80, %c0_81, %c0_82] : memref<1x24x32xf32, #tpu.memory_space<vmem>>, vector<1x24x8xf32>
    %143 = vector.shape_cast %142 : vector<1x24x8xf32> to vector<24x8xf32>
    %cst_83 = arith.constant dense<0.000000e+00> : vector<8x24xf32>
    %144 = tpu.matmul %139, %141, %cst_83 {dimension_numbers = #tpu.dot_dimension_numbers<[1], [1], [0], [0], [0, 0, 1, 0], [], []>} : vector<8x8xf32>, vector<24x8xf32>, vector<8x24xf32> -> vector<8x24xf32>
    %cst_84 = arith.constant dense<0xFF800000> : vector<8xf32>
    %145 = vector.multi_reduction <maximumf>, %144, %cst_84 [1] : vector<8x24xf32> to vector<8xf32>
    %146 = vector.shape_cast %145 : vector<8xf32> to vector<8x1xf32>
    %147 = vector.broadcast %146 : vector<8x1xf32> to vector<8x24xf32>
    %148 = arith.subf %144, %147 : vector<8x24xf32>
    %149 = math.exp %148 : vector<8x24xf32>
    %cst_85 = arith.constant dense<0.000000e+00> : vector<8xf32>
    %150 = vector.multi_reduction <add>, %149, %cst_85 [1] : vector<8x24xf32> to vector<8xf32>
    %151 = vector.shape_cast %150 : vector<8xf32> to vector<8x1xf32>
    %152 = vector.broadcast %151 : vector<8x1xf32> to vector<8x24xf32>
    %153 = arith.divf %149, %152 : vector<8x24xf32>
    %cst_86 = arith.constant dense<0.000000e+00> : vector<8x8xf32>
    %154 = tpu.matmul %153, %143, %cst_86 {dimension_numbers = #tpu.dot_dimension_numbers<[1], [0], [0], [1], [0, 0, 1, 1], [], []>} : vector<8x24xf32>, vector<24x8xf32>, vector<8x8xf32> -> vector<8x8xf32>
    %c0_87 = arith.constant 0 : index
    %c0_88 = arith.constant 0 : index
    %155 = vector.load %arg24[%c0_87, %c0_88] : memref<8x32xf32, #tpu.memory_space<vmem>>, vector<8x8xf32>
    tpu.vector_store %arg24[%c0_87, %c0_88], %154 {strides = array<i32>} : memref<8x32xf32, #tpu.memory_space<vmem>>, vector<8x8xf32>,
    %156 = vector.extract_strided_slice %138 {offsets = [0, 8], sizes = [8, 8], strides = [1, 1]} : vector<8x32xf32> to vector<8x8xf32>
    %c0_89 = arith.constant 0 : index
    %c0_90 = arith.constant 0 : index
    %c8_91 = arith.constant 8 : index
    %157 = vector.load %arg5[%c0_89, %c0_90, %c8_91] : memref<1x24x32xf32, #tpu.memory_space<vmem>>, vector<1x24x8xf32>
    %158 = vector.shape_cast %157 : vector<1x24x8xf32> to vector<24x8xf32>
    %c0_92 = arith.constant 0 : index
    %c0_93 = arith.constant 0 : index
    %c8_94 = arith.constant 8 : index
    %159 = vector.load %arg6[%c0_92, %c0_93, %c8_94] : memref<1x24x32xf32, #tpu.memory_space<vmem>>, vector<1x24x8xf32>
    %160 = vector.shape_cast %159 : vector<1x24x8xf32> to vector<24x8xf32>
    %cst_95 = arith.constant dense<0.000000e+00> : vector<8x24xf32>
    %161 = tpu.matmul %156, %158, %cst_95 {dimension_numbers = #tpu.dot_dimension_numbers<[1], [1], [0], [0], [0, 0, 1, 0], [], []>} : vector<8x8xf32>, vector<24x8xf32>, vector<8x24xf32> -> vector<8x24xf32>
    %cst_96 = arith.constant dense<0xFF800000> : vector<8xf32>
    %162 = vector.multi_reduction <maximumf>, %161, %cst_96 [1] : vector<8x24xf32> to vector<8xf32>
    %163 = vector.shape_cast %162 : vector<8xf32> to vector<8x1xf32>
    %164 = vector.broadcast %163 : vector<8x1xf32> to vector<8x24xf32>
    %165 = arith.subf %161, %164 : vector<8x24xf32>
    %166 = math.exp %165 : vector<8x24xf32>
    %cst_97 = arith.constant dense<0.000000e+00> : vector<8xf32>
    %167 = vector.multi_reduction <add>, %166, %cst_97 [1] : vector<8x24xf32> to vector<8xf32>
    %168 = vector.shape_cast %167 : vector<8xf32> to vector<8x1xf32>
    %169 = vector.broadcast %168 : vector<8x1xf32> to vector<8x24xf32>
    %170 = arith.divf %166, %169 : vector<8x24xf32>
    %cst_98 = arith.constant dense<0.000000e+00> : vector<8x8xf32>
    %171 = tpu.matmul %170, %160, %cst_98 {dimension_numbers = #tpu.dot_dimension_numbers<[1], [0], [0], [1], [0, 0, 1, 1], [], []>} : vector<8x24xf32>, vector<24x8xf32>, vector<8x8xf32> -> vector<8x8xf32>
    %c0_99 = arith.constant 0 : index
    %c8_100 = arith.constant 8 : index
    %172 = vector.load %arg24[%c0_99, %c8_100] : memref<8x32xf32, #tpu.memory_space<vmem>>, vector<8x8xf32>
    tpu.vector_store %arg24[%c0_99, %c8_100], %171 {strides = array<i32>} : memref<8x32xf32, #tpu.memory_space<vmem>>, vector<8x8xf32>,
    %173 = vector.extract_strided_slice %138 {offsets = [0, 16], sizes = [8, 8], strides = [1, 1]} : vector<8x32xf32> to vector<8x8xf32>
    %c0_101 = arith.constant 0 : index
    %c0_102 = arith.constant 0 : index
    %c16_103 = arith.constant 16 : index
    %174 = vector.load %arg5[%c0_101, %c0_102, %c16_103] : memref<1x24x32xf32, #tpu.memory_space<vmem>>, vector<1x24x8xf32>
    %175 = vector.shape_cast %174 : vector<1x24x8xf32> to vector<24x8xf32>
    %c0_104 = arith.constant 0 : index
    %c0_105 = arith.constant 0 : index
    %c16_106 = arith.constant 16 : index
    %176 = vector.load %arg6[%c0_104, %c0_105, %c16_106] : memref<1x24x32xf32, #tpu.memory_space<vmem>>, vector<1x24x8xf32>
    %177 = vector.shape_cast %176 : vector<1x24x8xf32> to vector<24x8xf32>
    %cst_107 = arith.constant dense<0.000000e+00> : vector<8x24xf32>
    %178 = tpu.matmul %173, %175, %cst_107 {dimension_numbers = #tpu.dot_dimension_numbers<[1], [1], [0], [0], [0, 0, 1, 0], [], []>} : vector<8x8xf32>, vector<24x8xf32>, vector<8x24xf32> -> vector<8x24xf32>
    %cst_108 = arith.constant dense<0xFF800000> : vector<8xf32>
    %179 = vector.multi_reduction <maximumf>, %178, %cst_108 [1] : vector<8x24xf32> to vector<8xf32>
    %180 = vector.shape_cast %179 : vector<8xf32> to vector<8x1xf32>
    %181 = vector.broadcast %180 : vector<8x1xf32> to vector<8x24xf32>
    %182 = arith.subf %178, %181 : vector<8x24xf32>
    %183 = math.exp %182 : vector<8x24xf32>
    %cst_109 = arith.constant dense<0.000000e+00> : vector<8xf32>
    %184 = vector.multi_reduction <add>, %183, %cst_109 [1] : vector<8x24xf32> to vector<8xf32>
    %185 = vector.shape_cast %184 : vector<8xf32> to vector<8x1xf32>
    %186 = vector.broadcast %185 : vector<8x1xf32> to vector<8x24xf32>
    %187 = arith.divf %183, %186 : vector<8x24xf32>
    %cst_110 = arith.constant dense<0.000000e+00> : vector<8x8xf32>
    %188 = tpu.matmul %187, %177, %cst_110 {dimension_numbers = #tpu.dot_dimension_numbers<[1], [0], [0], [1], [0, 0, 1, 1], [], []>} : vector<8x24xf32>, vector<24x8xf32>, vector<8x8xf32> -> vector<8x8xf32>
    %c0_111 = arith.constant 0 : index
    %c16_112 = arith.constant 16 : index
    %189 = vector.load %arg24[%c0_111, %c16_112] : memref<8x32xf32, #tpu.memory_space<vmem>>, vector<8x8xf32>
    tpu.vector_store %arg24[%c0_111, %c16_112], %188 {strides = array<i32>} : memref<8x32xf32, #tpu.memory_space<vmem>>, vector<8x8xf32>,
    %190 = vector.extract_strided_slice %138 {offsets = [0, 24], sizes = [8, 8], strides = [1, 1]} : vector<8x32xf32> to vector<8x8xf32>
    %c0_113 = arith.constant 0 : index
    %c0_114 = arith.constant 0 : index
    %c24_115 = arith.constant 24 : index
    %191 = vector.load %arg5[%c0_113, %c0_114, %c24_115] : memref<1x24x32xf32, #tpu.memory_space<vmem>>, vector<1x24x8xf32>
    %192 = vector.shape_cast %191 : vector<1x24x8xf32> to vector<24x8xf32>
    %c0_116 = arith.constant 0 : index
    %c0_117 = arith.constant 0 : index
    %c24_118 = arith.constant 24 : index
    %193 = vector.load %arg6[%c0_116, %c0_117, %c24_118] : memref<1x24x32xf32, #tpu.memory_space<vmem>>, vector<1x24x8xf32>
    %194 = vector.shape_cast %193 : vector<1x24x8xf32> to vector<24x8xf32>
    %cst_119 = arith.constant dense<0.000000e+00> : vector<8x24xf32>
    %195 = tpu.matmul %190, %192, %cst_119 {dimension_numbers = #tpu.dot_dimension_numbers<[1], [1], [0], [0], [0, 0, 1, 0], [], []>} : vector<8x8xf32>, vector<24x8xf32>, vector<8x24xf32> -> vector<8x24xf32>
    %cst_120 = arith.constant dense<0xFF800000> : vector<8xf32>
    %196 = vector.multi_reduction <maximumf>, %195, %cst_120 [1] : vector<8x24xf32> to vector<8xf32>
    %197 = vector.shape_cast %196 : vector<8xf32> to vector<8x1xf32>
    %198 = vector.broadcast %197 : vector<8x1xf32> to vector<8x24xf32>
    %199 = arith.subf %195, %198 : vector<8x24xf32>
    %200 = math.exp %199 : vector<8x24xf32>
    %cst_121 = arith.constant dense<0.000000e+00> : vector<8xf32>
    %201 = vector.multi_reduction <add>, %200, %cst_121 [1] : vector<8x24xf32> to vector<8xf32>
    %202 = vector.shape_cast %201 : vector<8xf32> to vector<8x1xf32>
    %203 = vector.broadcast %202 : vector<8x1xf32> to vector<8x24xf32>
    %204 = arith.divf %200, %203 : vector<8x24xf32>
    %cst_122 = arith.constant dense<0.000000e+00> : vector<8x8xf32>
    %205 = tpu.matmul %204, %194, %cst_122 {dimension_numbers = #tpu.dot_dimension_numbers<[1], [0], [0], [1], [0, 0, 1, 1], [], []>} : vector<8x24xf32>, vector<24x8xf32>, vector<8x8xf32> -> vector<8x8xf32>
    %c0_123 = arith.constant 0 : index
    %c24_124 = arith.constant 24 : index
    %206 = vector.load %arg24[%c0_123, %c24_124] : memref<8x32xf32, #tpu.memory_space<vmem>>, vector<8x8xf32>
    tpu.vector_store %arg24[%c0_123, %c24_124], %205 {strides = array<i32>} : memref<8x32xf32, #tpu.memory_space<vmem>>, vector<8x8xf32>,
    %c0_125 = arith.constant 0 : index
    %c0_126 = arith.constant 0 : index
    %207 = vector.load %arg24[%c0_125, %c0_126] : memref<8x32xf32, #tpu.memory_space<vmem>>, vector<8x32xf32>
    %c0_127 = arith.constant 0 : index
    %c0_128 = arith.constant 0 : index
    %208 = vector.load %arg15[%c0_127, %c0_128] : memref<32x32xf32, #tpu.memory_space<vmem>>, vector<32x32xf32>
    %cst_129 = arith.constant dense<0.000000e+00> : vector<8x32xf32>
    %209 = tpu.matmul %207, %208, %cst_129 {dimension_numbers = #tpu.dot_dimension_numbers<[1], [0], [0], [1], [0, 0, 1, 1], [], []>} : vector<8x32xf32>, vector<32x32xf32>, vector<8x32xf32> -> vector<8x32xf32>
    %210 = arith.addf %108, %209 : vector<8x32xf32>
    %c0_130 = arith.constant 0 : index
    %c0_131 = arith.constant 0 : index
    %211 = vector.load %arg16[%c0_130, %c0_131] : memref<1x32xf32, #tpu.memory_space<vmem>>, vector<1x32xf32>
    %212 = vector.shape_cast %211 : vector<1x32xf32> to vector<32xf32>
    %213 = vector.shape_cast %212 : vector<32xf32> to vector<1x32xf32>
    %214 = vector.broadcast %213 : vector<1x32xf32> to vector<8x32xf32>
    %215 = arith.addf %210, %214 : vector<8x32xf32>
    %c0_132 = arith.constant 0 : index
    %c0_133 = arith.constant 0 : index
    %216 = vector.load %arg17[%c0_132, %c0_133] : memref<1x32xf32, #tpu.memory_space<vmem>>, vector<1x32xf32>
    %217 = vector.shape_cast %216 : vector<1x32xf32> to vector<32xf32>
    %c0_134 = arith.constant 0 : index
    %c0_135 = arith.constant 0 : index
    %218 = vector.load %arg18[%c0_134, %c0_135] : memref<1x32xf32, #tpu.memory_space<vmem>>, vector<1x32xf32>
    %219 = vector.shape_cast %218 : vector<1x32xf32> to vector<32xf32>
    %cst_136 = arith.constant dense<0.000000e+00> : vector<8xf32>
    %220 = vector.multi_reduction <add>, %215, %cst_136 [1] : vector<8x32xf32> to vector<8xf32>
    %221 = vector.shape_cast %220 : vector<8xf32> to vector<8x1xf32>
    %cst_137 = arith.constant 3.200000e+01 : f32
    %222 = vector.broadcast %cst_137 : f32 to vector<8x1xf32>
    %223 = arith.divf %221, %222 : vector<8x1xf32>
    %224 = vector.broadcast %223 : vector<8x1xf32> to vector<8x32xf32>
    %225 = arith.subf %215, %224 : vector<8x32xf32>
    %226 = arith.mulf %225, %225 : vector<8x32xf32>
    %cst_138 = arith.constant dense<0.000000e+00> : vector<8xf32>
    %227 = vector.multi_reduction <add>, %226, %cst_138 [1] : vector<8x32xf32> to vector<8xf32>
    %228 = vector.shape_cast %227 : vector<8xf32> to vector<8x1xf32>
    %cst_139 = arith.constant 3.200000e+01 : f32
    %229 = vector.broadcast %cst_139 : f32 to vector<8x1xf32>
    %230 = arith.divf %228, %229 : vector<8x1xf32>
    %231 = vector.broadcast %223 : vector<8x1xf32> to vector<8x32xf32>
    %232 = arith.subf %215, %231 : vector<8x32xf32>
    %cst_140 = arith.constant 9.99999974E-6 : f32
    %233 = vector.broadcast %cst_140 : f32 to vector<8x1xf32>
    %234 = arith.addf %230, %233 : vector<8x1xf32>
    %235 = math.rsqrt %234 : vector<8x1xf32>
    %236 = vector.broadcast %235 : vector<8x1xf32> to vector<8x32xf32>
    %237 = arith.mulf %232, %236 : vector<8x32xf32>
    %238 = vector.shape_cast %217 : vector<32xf32> to vector<1x32xf32>
    %239 = vector.broadcast %238 : vector<1x32xf32> to vector<8x32xf32>
    %240 = arith.mulf %237, %239 : vector<8x32xf32>
    %241 = vector.shape_cast %219 : vector<32xf32> to vector<1x32xf32>
    %242 = vector.broadcast %241 : vector<1x32xf32> to vector<8x32xf32>
    %243 = arith.addf %240, %242 : vector<8x32xf32>
    %c0_141 = arith.constant 0 : index
    %c0_142 = arith.constant 0 : index
    %244 = vector.load %arg19[%c0_141, %c0_142] : memref<32x128xf32, #tpu.memory_space<vmem>>, vector<32x128xf32>
    %cst_143 = arith.constant dense<0.000000e+00> : vector<8x128xf32>
    %245 = tpu.matmul %243, %244, %cst_143 {dimension_numbers = #tpu.dot_dimension_numbers<[1], [0], [0], [1], [0, 0, 1, 1], [], []>} : vector<8x32xf32>, vector<32x128xf32>, vector<8x128xf32> -> vector<8x128xf32>
    %c0_144 = arith.constant 0 : index
    %c0_145 = arith.constant 0 : index
    %246 = vector.load %arg20[%c0_144, %c0_145] : memref<1x128xf32, #tpu.memory_space<vmem>>, vector<1x128xf32>
    %247 = vector.shape_cast %246 : vector<1x128xf32> to vector<128xf32>
    %248 = vector.shape_cast %247 : vector<128xf32> to vector<1x128xf32>
    %249 = vector.broadcast %248 : vector<1x128xf32> to vector<8x128xf32>
    %250 = arith.addf %245, %249 : vector<8x128xf32>
    %cst_146 = arith.constant 5.000000e-01 : f32
    %251 = vector.broadcast %cst_146 : f32 to vector<8x128xf32>
    %252 = arith.mulf %251, %250 : vector<8x128xf32>
    %cst_147 = arith.constant 0.707106769 : f32
    %253 = vector.broadcast %cst_147 : f32 to vector<8x128xf32>
    %254 = arith.mulf %250, %253 : vector<8x128xf32>
    %255 = math.erf %254 : vector<8x128xf32>
    %cst_148 = arith.constant 1.000000e+00 : f32
    %256 = vector.broadcast %cst_148 : f32 to vector<8x128xf32>
    %257 = arith.addf %256, %255 : vector<8x128xf32>
    %258 = arith.mulf %252, %257 : vector<8x128xf32>
    %c0_149 = arith.constant 0 : index
    %c0_150 = arith.constant 0 : index
    %259 = vector.load %arg21[%c0_149, %c0_150] : memref<128x32xf32, #tpu.memory_space<vmem>>, vector<128x32xf32>
    %cst_151 = arith.constant dense<0.000000e+00> : vector<8x32xf32>
    %260 = tpu.matmul %258, %259, %cst_151 {dimension_numbers = #tpu.dot_dimension_numbers<[1], [0], [0], [1], [0, 0, 1, 1], [], []>} : vector<8x128xf32>, vector<128x32xf32>, vector<8x32xf32> -> vector<8x32xf32>
    %261 = arith.addf %215, %260 : vector<8x32xf32>
    %c0_152 = arith.constant 0 : index
    %c0_153 = arith.constant 0 : index
    %262 = vector.load %arg22[%c0_152, %c0_153] : memref<1x32xf32, #tpu.memory_space<vmem>>, vector<1x32xf32>
    %263 = vector.shape_cast %262 : vector<1x32xf32> to vector<32xf32>
    %264 = vector.shape_cast %263 : vector<32xf32> to vector<1x32xf32>
    %265 = vector.broadcast %264 : vector<1x32xf32> to vector<8x32xf32>
    %266 = arith.addf %261, %265 : vector<8x32xf32>
    %c0_154 = arith.constant 0 : index
    %c0_155 = arith.constant 0 : index
    %c0_156 = arith.constant 0 : index
    %267 = vector.load %arg23[%c0_154, %c0_155, %c0_156] : memref<1x8x32xf32, #tpu.memory_space<vmem>>, vector<1x8x32xf32>
    %268 = vector.shape_cast %267 : vector<1x8x32xf32> to vector<8x32xf32>
    %269 = vector.shape_cast %266 : vector<8x32xf32> to vector<1x8x32xf32>
    tpu.vector_store %arg23[%c0_154, %c0_155, %c0_156], %269 {strides = array<i32>} : memref<1x8x32xf32, #tpu.memory_space<vmem>>, vector<1x8x32xf32>,
    return
  }
  func.func @transform_0(%arg0: i32, %arg1: i32) -> (i32, i32, i32) {
    %c0_i32 = arith.constant 0 : i32
    %c0_i32_0 = arith.constant 0 : i32
    return %arg0, %arg1, %c0_i32 : i32, i32, i32
  }
  func.func @transform_1(%arg0: i32, %arg1: i32) -> (i32, i32, i32) {
    %c0_i32 = arith.constant 0 : i32
    %c0_i32_0 = arith.constant 0 : i32
    %c0_i32_1 = arith.constant 0 : i32
    return %arg0, %c0_i32, %c0_i32_0 : i32, i32, i32
  }
  func.func @transform_2(%arg0: i32, %arg1: i32) -> (i32, i32, i32) {
    %c0_i32 = arith.constant 0 : i32
    %c0_i32_0 = arith.constant 0 : i32
    %c0_i32_1 = arith.constant 0 : i32
    return %arg0, %c0_i32, %c0_i32_0 : i32, i32, i32
  }
  func.func @transform_3(%arg0: i32, %arg1: i32) -> (i32, i32, i32) {
    %c0_i32 = arith.constant 0 : i32
    %c0_i32_0 = arith.constant 0 : i32
    %c0_i32_1 = arith.constant 0 : i32
    return %arg0, %c0_i32, %c0_i32_0 : i32, i32, i32
  }
  func.func @transform_4(%arg0: i32, %arg1: i32) -> (i32, i32, i32) {
    %c0_i32 = arith.constant 0 : i32
    %c0_i32_0 = arith.constant 0 : i32
    %c0_i32_1 = arith.constant 0 : i32
    return %arg0, %c0_i32, %c0_i32_0 : i32, i32, i32
  }
  func.func @transform_5(%arg0: i32, %arg1: i32) -> (i32, i32) {
    %c0_i32 = arith.constant 0 : i32
    %c0_i32_0 = arith.constant 0 : i32
    %c0_i32_1 = arith.constant 0 : i32
    return %c0_i32, %c0_i32_0 : i32, i32
  }
  func.func @transform_6(%arg0: i32, %arg1: i32) -> (i32, i32) {
    %c0_i32 = arith.constant 0 : i32
    %c0_i32_0 = arith.constant 0 : i32
    %c0_i32_1 = arith.constant 0 : i32
    return %c0_i32, %c0_i32_0 : i32, i32
  }
  func.func @transform_7(%arg0: i32, %arg1: i32) -> (i32, i32) {
    %c0_i32 = arith.constant 0 : i32
    %c0_i32_0 = arith.constant 0 : i32
    %c0_i32_1 = arith.constant 0 : i32
    return %c0_i32, %c0_i32_0 : i32, i32
  }
  func.func @transform_8(%arg0: i32, %arg1: i32) -> (i32, i32) {
    %c0_i32 = arith.constant 0 : i32
    %c0_i32_0 = arith.constant 0 : i32
    %c0_i32_1 = arith.constant 0 : i32
    return %c0_i32, %c0_i32_0 : i32, i32
  }
  func.func @transform_9(%arg0: i32, %arg1: i32) -> (i32, i32) {
    %c0_i32 = arith.constant 0 : i32
    %c0_i32_0 = arith.constant 0 : i32
    %c0_i32_1 = arith.constant 0 : i32
    return %c0_i32, %c0_i32_0 : i32, i32
  }
  func.func @transform_10(%arg0: i32, %arg1: i32) -> (i32, i32) {
    %c0_i32 = arith.constant 0 : i32
    %c0_i32_0 = arith.constant 0 : i32
    %c0_i32_1 = arith.constant 0 : i32
    return %c0_i32, %c0_i32_0 : i32, i32
  }
  func.func @transform_11(%arg0: i32, %arg1: i32) -> (i32, i32) {
    %c0_i32 = arith.constant 0 : i32
    %c0_i32_0 = arith.constant 0 : i32
    %c0_i32_1 = arith.constant 0 : i32
    return %c0_i32, %c0_i32_0 : i32, i32
  }
  func.func @transform_12(%arg0: i32, %arg1: i32) -> (i32, i32) {
    %c0_i32 = arith.constant 0 : i32
    %c0_i32_0 = arith.constant 0 : i32
    %c0_i32_1 = arith.constant 0 : i32
    return %c0_i32, %c0_i32_0 : i32, i32
  }
  func.func @transform_13(%arg0: i32, %arg1: i32) -> (i32, i32) {
    %c0_i32 = arith.constant 0 : i32
    %c0_i32_0 = arith.constant 0 : i32
    %c0_i32_1 = arith.constant 0 : i32
    return %c0_i32, %c0_i32_0 : i32, i32
  }
  func.func @transform_14(%arg0: i32, %arg1: i32) -> (i32, i32) {
    %c0_i32 = arith.constant 0 : i32
    %c0_i32_0 = arith.constant 0 : i32
    %c0_i32_1 = arith.constant 0 : i32
    return %c0_i32, %c0_i32_0 : i32, i32
  }
  func.func @transform_15(%arg0: i32, %arg1: i32) -> (i32, i32) {
    %c0_i32 = arith.constant 0 : i32
    %c0_i32_0 = arith.constant 0 : i32
    %c0_i32_1 = arith.constant 0 : i32
    return %c0_i32, %c0_i32_0 : i32, i32
  }
  func.func @transform_16(%arg0: i32, %arg1: i32) -> (i32, i32) {
    %c0_i32 = arith.constant 0 : i32
    %c0_i32_0 = arith.constant 0 : i32
    %c0_i32_1 = arith.constant 0 : i32
    return %c0_i32, %c0_i32_0 : i32, i32
  }
  func.func @transform_17(%arg0: i32, %arg1: i32) -> (i32, i32) {
    %c0_i32 = arith.constant 0 : i32
    %c0_i32_0 = arith.constant 0 : i32
    %c0_i32_1 = arith.constant 0 : i32
    return %c0_i32, %c0_i32_0 : i32, i32
  }
  func.func @transform_18(%arg0: i32, %arg1: i32) -> (i32, i32) {
    %c0_i32 = arith.constant 0 : i32
    %c0_i32_0 = arith.constant 0 : i32
    %c0_i32_1 = arith.constant 0 : i32
    return %c0_i32, %c0_i32_0 : i32, i32
  }
  func.func @transform_19(%arg0: i32, %arg1: i32) -> (i32, i32) {
    %c0_i32 = arith.constant 0 : i32
    %c0_i32_0 = arith.constant 0 : i32
    %c0_i32_1 = arith.constant 0 : i32
    return %c0_i32, %c0_i32_0 : i32, i32
  }
  func.func @transform_20(%arg0: i32, %arg1: i32) -> (i32, i32) {
    %c0_i32 = arith.constant 0 : i32
    %c0_i32_0 = arith.constant 0 : i32
    %c0_i32_1 = arith.constant 0 : i32
    return %c0_i32, %c0_i32_0 : i32, i32
  }
  func.func @transform_21(%arg0: i32, %arg1: i32) -> (i32, i32, i32) {
    %c0_i32 = arith.constant 0 : i32
    %c0_i32_0 = arith.constant 0 : i32
    return %arg0, %arg1, %c0_i32 : i32, i32, i32
  }
}

</mosaic_0001>

<bundles_post_ra>
// kernel: tpu_custom_call.1
= control target key start
LH: loop header
LB: loop body
LE: loop exit
PB: predicated region body
PF: predicated region fallthrough
CT: control target
= control target key end

     0   :  { %s5672_s0 = inlined_call_operand.vmem [shape: f32[2,16,32], index: 0, kind: input, shape index: {}]   ;;  %s5673_s1 = inlined_call_operand.vmem [shape: f32[2,16,32], index: 1, kind: input, shape index: {}]   ;;  %s5674_s2 = inlined_call_operand.hbm [shape: f32[2,16,32], index: 2, kind: input, shape index: {}]   ;;  %s5675_s3 = inlined_call_operand.vmem [shape: f32[2,24,32], index: 3, kind: input, shape index: {}]   ;;  %s5676_s4 = inlined_call_operand.vmem [shape: f32[2,24,32], index: 4, kind: input, shape index: {}]   ;;  %s5677_s5 = inlined_call_operand.hbm [shape: f32[1,32], index: 5, kind: input, shape index: {}]   ;;  %s5678_s6 = inlined_call_operand.hbm [shape: f32[1,32], index: 6, kind: input, shape index: {}]   ;;  %s5679_s7 = inlined_call_operand.hbm [shape: f32[32,32], index: 7, kind: input, shape index: {}]   ;;  %s5680_s8 = inlined_call_operand.hbm [shape: f32[32,32], index: 8, kind: input, shape index: {}]   ;;  %s5681_s9 = inlined_call_operand.hbm [shape: f32[1,32], index: 9, kind: input, shape index: {}]   ;;  %s5682_s10 = inlined_call_operand.hbm [shape: f32[1,32], index: 10, kind: input, shape index: {}]   ;;  %s5683_s11 = inlined_call_operand.hbm [shape: f32[1,32], index: 11, kind: input, shape index: {}]   ;;  %s5684_s12 = inlined_call_operand.vmem [shape: f32[32,32], index: 12, kind: input, shape index: {}]   ;;  %s5685_s13 = inlined_call_operand.hbm [shape: f32[32,32], index: 13, kind: input, shape index: {}]   ;;  %s5686_s14 = inlined_call_operand.hbm [shape: f32[1,32], index: 14, kind: input, shape index: {}]   ;;  %s5687_s15 = inlined_call_operand.hbm [shape: f32[1,32], index: 15, kind: input, shape index: {}]   ;;  %s5688_s16 = inlined_call_operand.hbm [shape: f32[1,32], index: 16, kind: input, shape index: {}]   ;;  %s5689_s17 = inlined_call_operand.hbm [shape: f32[32,128], index: 17, kind: input, shape index: {}]   ;;  %s5690_s18 = inlined_call_operand.vmem [shape: f32[1,128], index: 18, kind: input, shape index: {}]   ;;  %s5691_s19 = inlined_call_operand.vmem [shape: f32[128,32], index: 19, kind: input, shape index: {}]   ;;  %s5692_s20 = inlined_call_operand.vmem [shape: f32[1,32], index: 20, kind: input, shape index: {}]   ;;  %s5693_s21 = inlined_call_operand.hbm [shape: f32[2,16,32], index: 21, kind: output, shape index: {}]  }
   0x1   :  { %5725 = sst [smem:[#allocation40_spill]] %s5672_s0 }
   0x2   :  { %5726 = sst [smem:[#allocation41_spill]] %s5673_s1 }
   0x3   :  { %5727 = sst [smem:[#allocation42_spill]] %s5674_s2 }
   0x4   :  { %5728 = sst [smem:[#allocation43_spill]] %s5675_s3 }
   0x5   :  { %5729 = sst [smem:[#allocation44_spill]] %s5676_s4 }
   0x6   :  { %5730 = sst [smem:[#allocation45_spill]] %s5677_s5 }
   0x7   :  { %5731 = sst [smem:[#allocation46_spill]] %s5678_s6 }
   0x8   :  { %5732 = sst [smem:[#allocation47_spill]] %s5679_s7 }
   0x9   :  { %5733 = sst [smem:[#allocation48_spill]] %s5680_s8 }
   0xa   :  { %5734 = sst [smem:[#allocation49_spill]] %s5681_s9 }
   0xb   :  { %5735 = sst [smem:[#allocation50_spill]] %s5682_s10 }
   0xc   :  { %5736 = sst [smem:[#allocation51_spill]] %s5683_s11 }
   0xd   :  { %5737 = sst [smem:[#allocation52_spill]] %s5684_s12 }
   0xe   :  { %5738 = sst [smem:[#allocation53_spill]] %s5685_s13 }
   0xf   :  { %5739 = sst [smem:[#allocation54_spill]] %s5689_s17 }
  0x10   :  { %5740 = sst [smem:[#allocation55_spill]] %s5690_s18 }
  0x11   :  { %5741 = sst [smem:[#allocation56_spill]] %s5691_s19 }
  0x12   :  { %5742 = sst [smem:[#allocation57_spill]] %s5692_s20 }
  0x13   :  { %5743 = sst [smem:[#allocation58_spill]] %s5693_s21 }
  0x14   :  { %26 = vsyncpa [#allocation4], 0 }
  0x15   :  { %28 = vsyncpa [#allocation4 + $0x1], 0 }
  0x16   :  { %29 = vsyncpa [#allocation7], 0 }
  0x17   :  { %30 = vsyncpa [#allocation10], 0 }
  0x18   :  { %31 = vsyncpa [#allocation13], 0 }
  0x19   :  { %32 = vsyncpa [#allocation16], 0 }
  0x1a   :  { %33 = vsyncpa [#allocation19], 0 }
  0x1b   :  { %34 = vsyncpa [#allocation22], 0 }
  0x1c   :  { %35 = vsyncpa [#allocation5], 0 }
  0x1d   :  { %37 = vsyncpa [#allocation5 + $0x1], 0  ;;  %s4806_s2 = smov 0   ;;  %s4808_s25 = smov 0  }
  0x1e   :  { %s4810_s26 = smov 0   ;;  %s4812_s27 = smov 0  }
  0x1f   :  { %s4814_s3 = smov 0   ;;  %s4816_s28 = smov 0  }
  0x20   :  { %s4818_s29 = smov 0   ;;  %s4820_s0 = smov 0  }
  0x21   :  { %s4822_s4 = smov 0   ;;  %s4824_s30 = smov 0  }
  0x22   :  { %s4826_s5 = smov 0  }
  0x23 LB: > { %5744 = sst [smem:[#allocation33_spill]] %s4629_s2  ;;  %s5697_s22 = sadd.s32 4294967295, %s4669_s5   ;;  %s4669_s5 = sphi %s4826_s5, %s43_s5   ;;  %s4665_s30 = sphi %s4824_s30, %s5817_s30   ;;  %s4661_s4 = sphi %s4822_s4, %s5816_s4   ;;  %s4657_s0 = sphi %s4820_s0, %s5815_s0   ;;  %s4653_s29 = sphi %s4818_s29, %s5814_s29   ;;  %s4649_s28 = sphi %s4816_s28, %s5813_s28   ;;  %s4645_s3 = sphi %s4814_s3, %s5812_s3   ;;  %s4641_s27 = sphi %s4812_s27, %s5811_s27   ;;  %s4637_s26 = sphi %s4810_s26, %s5810_s26   ;;  %s4633_s25 = sphi %s4808_s25, %s5809_s25   ;;  %s4629_s2 = sphi %s4806_s2, %s5808_s2  }
  0x24   : > { %5745 = sst [smem:[#allocation34_spill]] %s4633_s25  ;;  %p3300_p0 = scmp.ge.s32.totalorder %s4669_s5, 1 }
  0x25   : > { %5746 = sst [smem:[#allocation35_spill]] %s4637_s26  ;;  %p4865_p1 = scmp.eq.s32.totalorder %s5697_s22, 0 }
  0x26   : > { %5747 = sst [smem:[#allocation36_spill]] %s4653_s29  ;;  %p556_p2 = scmp.lt.s32.totalorder %s4669_s5, 5 }
  0x27   : > { %5748 = sst [smem:[#allocation37_spill]] %s4657_s0  ;;  %s4671_s24 = smov [#allocation6]  }
  0x28   : > { %s5749_s23 = scalar_select %p4865_p1, 1, 0 }
  0x29   : > { %p4870_p3 = pnand %p3300_p0, %p556_p2  ;;  %s569_s21 = sshll.u32 %s4671_s24, 4  ;;  %s570_s21 = int_to_ptr.vmem [resolvable:$true] %s569_s21 }
  0x2a   : > { %5750 = sst [smem:[#allocation38_spill]] %s5749_s23  ;;  %s4672_s20 = smov [#allocation9]  }
  0x2b   : > { %s5751_s1 = scalar_select %p4870_p3, 1, 0 }
  0x2c   : > { %p3875_p4 = pneg %p4870_p3  ;;  %s590_s18 = sshll.u32 %s4672_s20, 4  ;;  %s4882_s18 = int_to_ptr.vmem [resolvable:$true] %s590_s18 }
  0x2d   : > { %5752 = sst [smem:[#allocation39_spill]] %s5751_s1  ;;  %s4673_s19 = smov [#allocation12]  }
  0x2e   : > { %p4878_p5 = pnand %p3875_p4, %p4865_p1  ;;  %s4884_s12 = sshll.u32 %s4673_s19, 4  ;;  %s618_s12 = int_to_ptr.vmem [resolvable:$true] %s4884_s12 }
  0x2f   : > { %s5754_s2 = sld [smem:[#allocation45_spill]] }
  0x30   : > { %p4894_p7 = pneg %p4878_p5 }
  0x35   : > { %s5755_s17 = smov %s5754_s2  ;;  %s4157_s24 = scalar_lea.hbm %s5754_s2, 16 }
  0x36   : > { %p4158_p6 = scmp.ne.s32.totalorder %s5755_s17, %s4157_s24  ;;  %p4164_p10 = scmp.lt.u32.totalorder %s4157_s24, %s5755_s17 }
  0x38   : > { %p4160_p8 = pnand %p4894_p7, %p4158_p6 }
  0x3a   : > { %p4161_p9 = pneg %p4160_p8 }
  0x3c   : > { %p4166_p11 = pnand %p4164_p10, %p4161_p9 }
  0x3e   : > { %4169 = shalt.err (!%p4166_p11)
}
  0x3f   : > { %s4170_s2 = scalar_lea.vmem %s570_s21, 16  ;;  %s4177_s25 = scalar_lea.vmem %s570_s21, 32 }
  0x40   : > { %p4171_p12 = scmp.ne.s32.totalorder %s570_s21, %s4170_s2  ;;  %p4178_p2 = scmp.lt.s32.totalorder %s570_s21, %s570_s21 }
  0x41   : > { %p4179_p4 = scmp.lt.s32.totalorder %s4177_s25, %s4170_s2 }
  0x42   : > { %p4173_p13 = pnand %p4171_p12, %p4894_p7 }
  0x43   : > { %p4180_p3 = por %p4179_p4, %p4178_p2 }
  0x44   : > { %p4174_p0 = pneg %p4173_p13 }
  0x46   : > { %p4181_p1 = pnand %p4180_p3, %p4174_p0 }
  0x48   : > { %4184 = shalt.err (!%p4181_p1)
}
  0x49   : > { %3878 = dma.hbm_to_vmem [thread:$0]  (!%p4878_p5), %s5755_s17, 16, %s570_s21, [#allocation7]  }
  0x4a   : > { %s5757_s7 = sld [smem:[#allocation47_spill]] }
  0x50   : > { %s4185_s24 = scalar_lea.hbm %s5757_s7, 512 }
  0x51   : > { %p4186_p6 = scmp.ne.s32.totalorder %s5757_s7, %s4185_s24  ;;  %p4192_p1 = scmp.lt.u32.totalorder %s4185_s24, %s5757_s7 }
  0x53   : > { %p4188_p8 = pnand %p4186_p6, %p4894_p7 }
  0x55   : > { %p4189_p9 = pneg %p4188_p8 }
  0x57   : > { %p4194_p3 = pnand %p4192_p1, %p4189_p9 }
  0x59   : > { %4197 = shalt.err (!%p4194_p3)
}
  0x5a   : > { %s4198_s21 = scalar_lea.vmem %s4882_s18, 512  ;;  %p4206_p13 = scmp.lt.s32.totalorder %s4882_s18, %s4882_s18 }
  0x5b   : > { %p4199_p10 = scmp.ne.s32.totalorder %s4882_s18, %s4198_s21  ;;  %p4207_p0 = scmp.lt.s32.totalorder %s4198_s21, %s4198_s21 }
  0x5d   : > { %p4201_p11 = pnand %p4199_p10, %p4894_p7  ;;  %p4208_p2 = por %p4207_p0, %p4206_p13 }
  0x5f   : > { %p4202_p12 = pneg %p4201_p11 }
  0x61   : > { %p4209_p4 = pnand %p4208_p2, %p4202_p12 }
  0x63   : > { %4212 = shalt.err (!%p4209_p4)
}
  0x64   : > { %s5712_s23 = smov 128   ;;  %s5714_s29 = smov 8  }
  0x65   : > { %3884 = dma.hbm_to_vmem [thread:$0]  (!%p4878_p5), %s5757_s7, 512, %s4882_s18, [#allocation10], %s5712_s23, %s5712_s23, %s5714_s29  }
  0x66   : > { %s5758_s9 = sld [smem:[#allocation49_spill]] }
  0x6c   : > { %s4213_s19 = scalar_lea.hbm %s5758_s9, 16 }
  0x6d   : > { %p4214_p6 = scmp.ne.s32.totalorder %s5758_s9, %s4213_s19  ;;  %p4220_p1 = scmp.lt.u32.totalorder %s4213_s19, %s5758_s9 }
  0x6f   : > { %p4216_p8 = pnand %p4214_p6, %p4894_p7 }
  0x71   : > { %p4217_p9 = pneg %p4216_p8 }
  0x73   : > { %p4222_p3 = pnand %p4220_p1, %p4217_p9 }
  0x75   : > { %4225 = shalt.err (!%p4222_p3)
}
  0x76   : > { %s4226_s0 = scalar_lea.vmem %s618_s12, 16  ;;  %s4233_s18 = scalar_lea.vmem %s618_s12, 32 }
  0x77   : > { %p4227_p10 = scmp.ne.s32.totalorder %s618_s12, %s4226_s0  ;;  %p4234_p13 = scmp.lt.s32.totalorder %s618_s12, %s618_s12 }
  0x78   : > { %p4235_p0 = scmp.lt.s32.totalorder %s4233_s18, %s4226_s0 }
  0x79   : > { %p4229_p11 = pnand %p4227_p10, %p4894_p7 }
  0x7a   : > { %p4236_p2 = por %p4235_p0, %p4234_p13 }
  0x7b   : > { %p4230_p12 = pneg %p4229_p11 }
  0x7d   : > { %p4237_p4 = pnand %p4236_p2, %p4230_p12 }
  0x7f   : > { %4240 = shalt.err (!%p4237_p4)
}
  0x80   : > { %3890 = dma.hbm_to_vmem [thread:$0]  (!%p4878_p5), %s5758_s9, 16, %s618_s12, [#allocation13]  }
  0x81   : > { %s4676_s17 = smov [#allocation15]   ;;  %s4677_s19 = smov [#allocation18]  }
  0x82   : > { %s639_s24 = sshll.u32 %s4676_s17, 4  ;;  %s666_s2 = sshll.u32 %s4677_s19, 4  ;;  %s640_s24 = int_to_ptr.vmem [resolvable:$true] %s639_s24  ;;  %s667_s2 = int_to_ptr.vmem [resolvable:$true] %s666_s2 }
  0x83   : > { %s5759_s11 = sld [smem:[#allocation51_spill]] }
  0x89   : > { %s4241_s23 = scalar_lea.hbm %s5759_s11, 16 }
  0x8a   : > { %p4242_p6 = scmp.ne.s32.totalorder %s5759_s11, %s4241_s23  ;;  %p4248_p1 = scmp.lt.u32.totalorder %s4241_s23, %s5759_s11 }
  0x8c   : > { %p4244_p8 = pnand %p4242_p6, %p4894_p7 }
  0x8e   : > { %p4245_p9 = pneg %p4244_p8 }
  0x90   : > { %p4250_p3 = pnand %p4248_p1, %p4245_p9 }
  0x92   : > { %4253 = shalt.err (!%p4250_p3)
}
  0x93   : > { %s4254_s12 = scalar_lea.vmem %s640_s24, 16  ;;  %s4261_s1 = scalar_lea.vmem %s640_s24, 32 }
  0x94   : > { %p4255_p10 = scmp.ne.s32.totalorder %s640_s24, %s4254_s12  ;;  %p4262_p13 = scmp.lt.s32.totalorder %s640_s24, %s640_s24 }
  0x95   : > { %p4263_p0 = scmp.lt.s32.totalorder %s4261_s1, %s4254_s12 }
  0x96   : > { %p4257_p11 = pnand %p4255_p10, %p4894_p7 }
  0x97   : > { %p4264_p2 = por %p4263_p0, %p4262_p13 }
  0x98   : > { %p4258_p12 = pneg %p4257_p11 }
  0x9a   : > { %p4265_p4 = pnand %p4264_p2, %p4258_p12 }
  0x9c   : > { %4268 = shalt.err (!%p4265_p4)
}
  0x9d   : > { %3896 = dma.hbm_to_vmem [thread:$0]  (!%p4878_p5), %s5759_s11, 16, %s640_s24, [#allocation16]  }
  0x9e   : > { %s4269_s25 = scalar_lea.hbm %s5686_s14, 16 }
  0x9f   : > { %p4270_p6 = scmp.ne.s32.totalorder %s5686_s14, %s4269_s25  ;;  %p4276_p1 = scmp.lt.u32.totalorder %s4269_s25, %s5686_s14 }
  0xa1   : > { %p4272_p8 = pnand %p4270_p6, %p4894_p7 }
  0xa3   : > { %p4273_p9 = pneg %p4272_p8 }
  0xa5   : > { %p4278_p3 = pnand %p4276_p1, %p4273_p9 }
  0xa7   : > { %4281 = shalt.err (!%p4278_p3)
}
  0xa8   : > { %s4282_s12 = scalar_lea.vmem %s667_s2, 16  ;;  %s4289_s24 = scalar_lea.vmem %s667_s2, 32 }
  0xa9   : > { %p4283_p10 = scmp.ne.s32.totalorder %s667_s2, %s4282_s12  ;;  %p4290_p13 = scmp.lt.s32.totalorder %s667_s2, %s667_s2 }
  0xaa   : > { %p4291_p0 = scmp.lt.s32.totalorder %s4289_s24, %s4282_s12 }
  0xab   : > { %p4285_p11 = pnand %p4283_p10, %p4894_p7 }
  0xac   : > { %p4292_p2 = por %p4291_p0, %p4290_p13 }
  0xad   : > { %p4286_p12 = pneg %p4285_p11 }
  0xaf   : > { %p4293_p4 = pnand %p4292_p2, %p4286_p12 }
  0xb1   : > { %4296 = shalt.err (!%p4293_p4)
}
  0xb2   : > { %3902 = dma.hbm_to_vmem [thread:$0]  (!%p4878_p5), %s5686_s14, 16, %s667_s2, [#allocation19]  }
  0xb3   : > { %s4678_s19 = smov [#allocation21]   ;;  %s4679_s29 = smov [#allocation8]  }
  0xb4   : > { %s688_s23 = sshll.u32 %s4678_s19, 4  ;;  %s580_s25 = sshll.u32 %s4679_s29, 4  ;;  %s689_s23 = int_to_ptr.vmem [resolvable:$true] %s688_s23  ;;  %s581_s25 = int_to_ptr.vmem [resolvable:$true] %s580_s25 }
  0xb5   : > { %s4297_s18 = scalar_lea.hbm %s5688_s16, 16 }
  0xb6   : > { %p4298_p6 = scmp.ne.s32.totalorder %s5688_s16, %s4297_s18  ;;  %p4304_p1 = scmp.lt.u32.totalorder %s4297_s18, %s5688_s16 }
  0xb8   : > { %p4300_p8 = pnand %p4298_p6, %p4894_p7 }
  0xba   : > { %p4301_p9 = pneg %p4300_p8 }
  0xbc   : > { %p4306_p3 = pnand %p4304_p1, %p4301_p9 }
  0xbe   : > { %4309 = shalt.err (!%p4306_p3)
}
  0xbf   : > { %s4310_s2 = scalar_lea.vmem %s689_s23, 16  ;;  %s4317_s17 = scalar_lea.vmem %s689_s23, 32 }
  0xc0   : > { %p4311_p10 = scmp.ne.s32.totalorder %s689_s23, %s4310_s2  ;;  %p4318_p13 = scmp.lt.s32.totalorder %s689_s23, %s689_s23 }
  0xc1   : > { %p4319_p0 = scmp.lt.s32.totalorder %s4317_s17, %s4310_s2 }
  0xc2   : > { %p4313_p11 = pnand %p4311_p10, %p4894_p7 }
  0xc3   : > { %p4320_p2 = por %p4319_p0, %p4318_p13 }
  0xc4   : > { %p4314_p12 = pneg %p4313_p11 }
  0xc6   : > { %p4321_p4 = pnand %p4320_p2, %p4314_p12 }
  0xc8   : > { %4324 = shalt.err (!%p4321_p4)
}
  0xc9   : > { %3908 = dma.hbm_to_vmem [thread:$0]  (!%p4878_p5), %s5688_s16, 16, %s689_s23, [#allocation22]  }
  0xca   : > { %s5760_s6 = sld [smem:[#allocation46_spill]] }
  0xd0   : > { %s4325_s18 = scalar_lea.hbm %s5760_s6, 16 }
  0xd1   : > { %p4326_p6 = scmp.ne.s32.totalorder %s5760_s6, %s4325_s18  ;;  %p4332_p1 = scmp.lt.u32.totalorder %s4325_s18, %s5760_s6 }
  0xd3   : > { %p4328_p8 = pnand %p4326_p6, %p4894_p7 }
  0xd5   : > { %p4329_p9 = pneg %p4328_p8 }
  0xd7   : > { %p4334_p3 = pnand %p4332_p1, %p4329_p9 }
  0xd9   : > { %4337 = shalt.err (!%p4334_p3)
}
  0xda   : > { %s4338_s2 = scalar_lea.vmem %s581_s25, 16  ;;  %s4345_s23 = scalar_lea.vmem %s581_s25, 32 }
  0xdb   : > { %p4339_p10 = scmp.ne.s32.totalorder %s581_s25, %s4338_s2  ;;  %p4346_p13 = scmp.lt.s32.totalorder %s581_s25, %s581_s25 }
  0xdc   : > { %p4347_p0 = scmp.lt.s32.totalorder %s4345_s23, %s4338_s2 }
  0xdd   : > { %p4341_p11 = pnand %p4339_p10, %p4894_p7 }
  0xde   : > { %p4348_p2 = por %p4347_p0, %p4346_p13 }
  0xdf   : > { %p4342_p12 = pneg %p4341_p11 }
  0xe1   : > { %p4349_p4 = pnand %p4348_p2, %p4342_p12 }
  0xe3   : > { %4352 = shalt.err (!%p4349_p4)
}
  0xe4   : > { %3881 = dma.hbm_to_vmem [thread:$0]  (!%p4878_p5), %s5760_s6, 16, %s581_s25, [#allocation7]  }
  0xe5   : > { %s4680_s29 = smov [#allocation11]   ;;  %s4681_s0 = smov [#allocation14]  }
  0xe6   : > { %s603_s21 = sshll.u32 %s4680_s29, 4  ;;  %s628_s18 = sshll.u32 %s4681_s0, 4  ;;  %s604_s21 = int_to_ptr.vmem [resolvable:$true] %s603_s21  ;;  %s629_s18 = int_to_ptr.vmem [resolvable:$true] %s628_s18 }
  0xe7   : > { %s5761_s8 = sld [smem:[#allocation48_spill]] }
  0xed   : > { %s4353_s24 = scalar_lea.hbm %s5761_s8, 512 }
  0xee   : > { %p4354_p6 = scmp.ne.s32.totalorder %s5761_s8, %s4353_s24  ;;  %p4360_p1 = scmp.lt.u32.totalorder %s4353_s24, %s5761_s8 }
  0xf0   : > { %p4356_p8 = pnand %p4354_p6, %p4894_p7 }
  0xf2   : > { %p4357_p9 = pneg %p4356_p8 }
  0xf4   : > { %p4362_p3 = pnand %p4360_p1, %p4357_p9 }
  0xf6   : > { %4365 = shalt.err (!%p4362_p3)
}
  0xf7   : > { %s4366_s25 = scalar_lea.vmem %s604_s21, 512  ;;  %p4374_p13 = scmp.lt.s32.totalorder %s604_s21, %s604_s21 }
  0xf8   : > { %p4367_p10 = scmp.ne.s32.totalorder %s604_s21, %s4366_s25  ;;  %p4375_p0 = scmp.lt.s32.totalorder %s4366_s25, %s4366_s25 }
  0xfa   : > { %p4369_p11 = pnand %p4367_p10, %p4894_p7  ;;  %p4376_p2 = por %p4375_p0, %p4374_p13 }
  0xfc   : > { %p4370_p12 = pneg %p4369_p11 }
  0xfe   : > { %p4377_p4 = pnand %p4376_p2, %p4370_p12 }
 0x100   : > { %4380 = shalt.err (!%p4377_p4)
}
 0x101   : > { %s5762_s19 = smov 8   ;;  %s5763_s29 = smov 128  }
 0x102   : > { %3887 = dma.hbm_to_vmem [thread:$0]  (!%p4878_p5), %s5761_s8, 512, %s604_s21, [#allocation10], %s5763_s29, %s5763_s29, %s5762_s19  }
 0x103   : > { %s5764_s10 = sld [smem:[#allocation50_spill]] }
 0x109   : > { %s4381_s1 = scalar_lea.hbm %s5764_s10, 16 }
 0x10a   : > { %p4382_p6 = scmp.ne.s32.totalorder %s5764_s10, %s4381_s1  ;;  %p4388_p1 = scmp.lt.u32.totalorder %s4381_s1, %s5764_s10 }
 0x10c   : > { %p4384_p8 = pnand %p4382_p6, %p4894_p7 }
 0x10e   : > { %p4385_p9 = pneg %p4384_p8 }
 0x110   : > { %p4390_p3 = pnand %p4388_p1, %p4385_p9 }
 0x112   : > { %4393 = shalt.err (!%p4390_p3)
}
 0x113   : > { %s4394_s0 = scalar_lea.vmem %s629_s18, 16  ;;  %s4401_s21 = scalar_lea.vmem %s629_s18, 32 }
 0x114   : > { %p4395_p10 = scmp.ne.s32.totalorder %s629_s18, %s4394_s0  ;;  %p4402_p13 = scmp.lt.s32.totalorder %s629_s18, %s629_s18 }
 0x115   : > { %p4403_p0 = scmp.lt.s32.totalorder %s4401_s21, %s4394_s0 }
 0x116   : > { %p4397_p11 = pnand %p4395_p10, %p4894_p7 }
 0x117   : > { %p4404_p2 = por %p4403_p0, %p4402_p13 }
 0x118   : > { %p4398_p12 = pneg %p4397_p11 }
 0x11a   : > { %p4405_p4 = pnand %p4404_p2, %p4398_p12 }
 0x11c   : > { %4408 = shalt.err (!%p4405_p4)
}
 0x11d   : > { %3893 = dma.hbm_to_vmem [thread:$0]  (!%p4878_p5), %s5764_s10, 16, %s629_s18, [#allocation13]  }
 0x11e   : > { %s4682_s24 = smov [#allocation17]   ;;  %s4683_s2 = smov [#allocation20]  }
 0x11f   : > { %s652_s1 = sshll.u32 %s4682_s24, 4  ;;  %s677_s23 = sshll.u32 %s4683_s2, 4  ;;  %s653_s1 = int_to_ptr.vmem [resolvable:$true] %s652_s1  ;;  %s678_s23 = int_to_ptr.vmem [resolvable:$true] %s677_s23 }
 0x120   : > { %s5765_s13 = sld [smem:[#allocation53_spill]] }
 0x126   : > { %s4409_s6 = scalar_lea.hbm %s5765_s13, 512 }
 0x127   : > { %p4410_p6 = scmp.ne.s32.totalorder %s5765_s13, %s4409_s6  ;;  %p4416_p1 = scmp.lt.u32.totalorder %s4409_s6, %s5765_s13 }
 0x129   : > { %p4412_p8 = pnand %p4410_p6, %p4894_p7 }
 0x12b   : > { %p4413_p9 = pneg %p4412_p8 }
 0x12d   : > { %p4418_p3 = pnand %p4416_p1, %p4413_p9 }
 0x12f   : > { %4421 = shalt.err (!%p4418_p3)
}
 0x130   : > { %s4422_s18 = scalar_lea.vmem %s653_s1, 512  ;;  %p4430_p13 = scmp.lt.s32.totalorder %s653_s1, %s653_s1 }
 0x131   : > { %p4423_p10 = scmp.ne.s32.totalorder %s653_s1, %s4422_s18  ;;  %p4431_p0 = scmp.lt.s32.totalorder %s4422_s18, %s4422_s18 }
 0x133   : > { %p4425_p11 = pnand %p4423_p10, %p4894_p7  ;;  %p4432_p2 = por %p4431_p0, %p4430_p13 }
 0x135   : > { %p4426_p12 = pneg %p4425_p11 }
 0x137   : > { %p4433_p4 = pnand %p4432_p2, %p4426_p12 }
 0x139   : > { %4436 = shalt.err (!%p4433_p4)
}
 0x13a   : > { %3899 = dma.hbm_to_vmem [thread:$0]  (!%p4878_p5), %s5765_s13, 512, %s653_s1, [#allocation16], %s5763_s29, %s5763_s29, %s5762_s19  }
 0x13b   : > { %s4437_s2 = scalar_lea.hbm %s5687_s15, 16 }
 0x13c   : > { %p4438_p6 = scmp.ne.s32.totalorder %s5687_s15, %s4437_s2  ;;  %p4444_p1 = scmp.lt.u32.totalorder %s4437_s2, %s5687_s15 }
 0x13e   : > { %p4440_p8 = pnand %p4438_p6, %p4894_p7 }
 0x140   : > { %p4441_p9 = pneg %p4440_p8 }
 0x142   : > { %p4446_p3 = pnand %p4444_p1, %p4441_p9 }
 0x144   : > { %4449 = shalt.err (!%p4446_p3)
}
 0x145   : > { %s4450_s26 = scalar_lea.vmem %s678_s23, 16  ;;  %s4457_s1 = scalar_lea.vmem %s678_s23, 32 }
 0x146   : > { %p4451_p10 = scmp.ne.s32.totalorder %s678_s23, %s4450_s26  ;;  %p4458_p13 = scmp.lt.s32.totalorder %s678_s23, %s678_s23 }
 0x147   : > { %p4459_p0 = scmp.lt.s32.totalorder %s4457_s1, %s4450_s26 }
 0x148   : > { %p4453_p11 = pnand %p4451_p10, %p4894_p7 }
 0x149   : > { %p4460_p2 = por %p4459_p0, %p4458_p13 }
 0x14a   : > { %p4454_p12 = pneg %p4453_p11 }
 0x14c   : > { %p4461_p4 = pnand %p4460_p2, %p4454_p12 }
 0x14e   : > { %4464 = shalt.err (!%p4461_p4)
}
 0x14f   : > { %3905 = dma.hbm_to_vmem [thread:$0]  (!%p4878_p5), %s5687_s15, 16, %s678_s23, [#allocation19]  }
 0x150   : > { %s4684_s6 = smov [#allocation23]   ;;  %s5766_s17 = sld [smem:[#allocation54_spill]] }
 0x151   : > { %s698_s12 = sshll.u32 %s4684_s6, 4  ;;  %s699_s12 = int_to_ptr.vmem [resolvable:$true] %s698_s12 }
 0x156   : > { %s4465_s25 = scalar_lea.hbm %s5766_s17, 512 }
 0x157   : > { %p4466_p6 = scmp.ne.s32.totalorder %s5766_s17, %s4465_s25  ;;  %p4472_p1 = scmp.lt.u32.totalorder %s4465_s25, %s5766_s17 }
 0x159   : > { %p4468_p8 = pnand %p4466_p6, %p4894_p7 }
 0x15b   : > { %p4469_p9 = pneg %p4468_p8 }
 0x15d   : > { %p4474_p3 = pnand %p4472_p1, %p4469_p9 }
 0x15f   : > { %4477 = shalt.err (!%p4474_p3)
}
 0x160   : > { %s4478_s23 = scalar_lea.vmem %s699_s12, 512  ;;  %p4486_p13 = scmp.lt.s32.totalorder %s699_s12, %s699_s12 }
 0x161   : > { %p4479_p10 = scmp.ne.s32.totalorder %s699_s12, %s4478_s23  ;;  %p4487_p0 = scmp.lt.s32.totalorder %s4478_s23, %s4478_s23 }
 0x163   : > { %p4481_p11 = pnand %p4479_p10, %p4894_p7  ;;  %p4488_p2 = por %p4487_p0, %p4486_p13 }
 0x165   : > { %p4482_p12 = pneg %p4481_p11 }
 0x167   : > { %p4489_p4 = pnand %p4488_p2, %p4482_p12 }
 0x169   : > { %4492 = shalt.err (!%p4489_p4)
}
 0x16a   : > { %s5767_s20 = sld [smem:[#allocation38_spill]]  ;;  %s5768_s22 = sld [smem:[#allocation35_spill]] }
 0x16b   : > { %3911 = dma.hbm_to_vmem [thread:$0]  (!%p4878_p5), %s5766_s17, 512, %s699_s12, [#allocation22], %s5763_s29, %s5763_s29, %s5762_s19  }
 0x16c   : > { %s3299_s6 = sadd.s32 4294967294, %s4669_s5   ;;  %s5769_s24 = sld [smem:[#allocation34_spill]] }
 0x16d   : > { %s52_s2 = sadd.s32 1, %s4661_s4  ;;  %s55_s25 = sadd.s32 1, %s4665_s30 }
 0x16e   : > { %p53_p7 = scmp.ge.s32.totalorder %s52_s2, 2  ;;  %s116_s0 = sadd.s32 1, %s4649_s28 }
 0x16f   : > { %p123_p6 = scmp.ne.s32.totalorder %s4649_s28, %s4645_s3  ;;  %p124_p8 = scmp.eq.s32.totalorder %s4669_s5, 0 }
 0x170   : > { %s5819_s2 = smov (%p53_p7, %s52_s2), 0  ;;  %s5821_s25 = smov (!%p53_p7, %s55_s25), %s4665_s30 }
 0x171   : > { %p129_p9 = scmp.ne.s32.totalorder %s4645_s3, %s4641_s27  ;;  %s5770_s12 = sld [smem:[#allocation33_spill]] }
 0x172   : > { %p57_p5 = scmp.ge.s32.totalorder %s5821_s25, 2  ;;  %s528_s21 = ssub.s32 %s4661_s4, %s5819_s2 }
 0x173   : > { %p5140_p1 = por %p124_p8, %p123_p6  ;;  %p5772_p3 = scmp.ne.s32.totalorder %s5767_s20, 0 }
 0x174   : > { %s5823_s25 = smov (%p57_p5, %s5821_s25), 0  ;;  %s532_s23 = sadd.s32 1, %s5768_s22 }
 0x175   : > { %p5146_p10 = por %p5772_p3, %p129_p9  ;;  %p542_p11 = scmp.ne.s32.totalorder %s5768_s22, %s5769_s24 }
 0x176   : > { %s113_s27 = ssub.s32 %s4665_s30, %s5823_s25  ;;  %s5774_s18 = sadd.s32 4294967295, %s4669_s5  }
 0x177   : > { %p543_p12 = scmp.eq.s32.totalorder %s5774_s18, 3  ;;  %p114_p13 = scmp.eq.s32.totalorder %s113_s27, 0 }
 0x178   : > { %s529_s7 = sor.u32 %s528_s21, %s113_s27  ;;  %p548_p4 = scmp.ne.s32.totalorder %s5769_s24, %s5770_s12 }
 0x179   : > { %p530_p0 = scmp.eq.s32.totalorder %s529_s7, 0  ;;  %p5159_p2 = por %p543_p12, %p542_p11 }
 0x17a   : > { %s5164_s8 = scalar_select %p114_p13, %s4649_s28, %s116_s0  }
 0x17b   : > { %s5775_s20 = scalar_select %p5159_p2, 1, 0 }
 0x17c   : > { %s5825_s22 = smov (!%p530_p0, %s5768_s22), %s532_s23  ;;  %p549_p7 = scmp.eq.s32.totalorder %s3299_s6, 3 }
 0x17d   : > { %p3932_p6 = scmp.lt.s32.totalorder %s4669_s5, 4  ;;  %s740_s9 = sand.u32 1, %s4649_s28  }
 0x17e   : > { %p5173_p8 = por %p549_p7, %p548_p4  ;;  %s3314_s18 = sshll.u32 %s740_s9, 4 }
 0x17f   : > { %s3394_s11 = sshll.u32 %s4665_s30, 8  ;;  %s5777_s7 = sld [smem:[#allocation42_spill]] }
 0x180   : > { %s5776_s10 = scalar_select %p5173_p8, 1, 0 }
 0x181   : > { %s744_s0 = scalar_lea.vmem [#allocation3], %s3314_s18  ;;  %p5185_p9 = pnand %p3932_p6, %p5140_p1 }
 0x182   : > { %s751_s24 = sshll.u32 %s744_s0, 4  ;;  %s5191_s12 = scalar_lea.sflag [#allocation4], %s740_s9  ;;  %s5189_s24 = int_to_ptr.vmem [resolvable:$true] %s751_s24 }
 0x183   : > { %p4495_p3 = pneg %p5185_p9 }
 0x185   : > { %s5181_s13 = scalar_lea.hbm %s5777_s7, %s3394_s11  ;;  %s4498_s18 = scalar_lea.hbm %s5777_s7, 512 }
 0x186   : > { %s4493_s23 = scalar_lea.hbm %s5181_s13, 256  ;;  %p4499_p1 = scmp.lt.u32.totalorder %s5181_s13, %s5777_s7 }
 0x187   : > { %p4494_p5 = scmp.ne.s32.totalorder %s5181_s13, %s4493_s23  ;;  %p4500_p13 = scmp.lt.u32.totalorder %s4498_s18, %s4493_s23 }
 0x188   : > { %p4502_p4 = scmp.lt.u32.totalorder %s4493_s23, %s5181_s13 }
 0x189   : > { %p4496_p11 = pnand %p4495_p3, %p4494_p5  ;;  %p4501_p0 = por %p4500_p13, %p4499_p1 }
 0x18b   : > { %p4497_p12 = pneg %p4496_p11  ;;  %p4503_p7 = por %p4502_p4, %p4501_p0 }
 0x18d   : > { %p4504_p6 = pnand %p4503_p7, %p4497_p12 }
 0x18f   : > { %4507 = shalt.err (!%p4504_p6)
}
 0x190   : > { %s4508_s9 = scalar_lea.vmem %s5189_s24, 256  ;;  %s4685_s0 = smov [#allocation3]  }
 0x191   : > { %p4509_p5 = scmp.ne.s32.totalorder %s5189_s24, %s4508_s9  ;;  %s4513_s11 = sshll.u32 %s4685_s0, 4  ;;  %s4514_s11 = int_to_ptr.vmem [resolvable:$false] %s4513_s11 }
 0x192   : > { %s4515_s26 = scalar_lea.vmem %s4514_s11, 512  ;;  %p4516_p2 = scmp.lt.s32.totalorder %s5189_s24, %s4514_s11 }
 0x193   : > { %p4511_p11 = pnand %p4509_p5, %p4495_p3  ;;  %p4517_p1 = scmp.lt.s32.totalorder %s4515_s26, %s4508_s9 }
 0x195   : > { %p4512_p8 = pneg %p4511_p11  ;;  %p4518_p13 = por %p4517_p1, %p4516_p2 }
 0x197   : > { %p4519_p0 = pnand %p4518_p13, %p4512_p8 }
 0x199   : > { %4522 = shalt.err (!%p4519_p0)
}
 0x19a   : > { %3915 = dma.hbm_to_vmem [thread:$0]  (!%p5185_p9), %s5181_s13, 256, %s5189_s24, %s5191_s12, %s5763_s29, %s5763_s29, %s5762_s19  }
 0x19b   : > { %s5779_s23 = sld [smem:[#allocation39_spill]] }
 0x1a1   : > { %p5780_p3 = scmp.ne.s32.totalorder %s5779_s23, 0 }
 0x1a2   : > { %s781_s18 = sand.u32 (!%p5780_p3), 1, %s4645_s3  }
 0x1a3   : > { %779 = sbr.rel (%p5780_p3) target bundleno = 7666 (0x1df2), region = 104  ;;  %s5225_s21 = sshll.u32 (!%p5780_p3), %s781_s18, 4 }
 0x1a4   : > { %s782_s27 = scalar_lea.sflag (!%p5780_p3), [#allocation4], %s781_s18  ;;  %s785_s9 = scalar_lea.vmem (!%p5780_p3), [#allocation3], %s5225_s21 }
 0x1aa   : > { %4596 = dma.done.wait (%p5146_p10), %s782_s27, 256  }
 0x1ab   : > { %4598 = vsyncadd (%p5146_p10), %s782_s27, 4294967040  ;;  %s5781_s6 = sld [smem:[#allocation38_spill]] }
 0x1b1   : > { %p5782_p2 = scmp.ne.s32.totalorder %s5781_s6, 0 }
 0x1b3   : > { %4600 = dma.done.wait (%p5782_p2), [#allocation7], 32  }
 0x1b4   : > { %4602 = vsyncadd (%p5782_p2), [#allocation7], 4294967264 }
 0x1b5   : > { %4604 = dma.done.wait (%p5782_p2), [#allocation10], 1024  }
 0x1b6   : > { %4606 = vsyncadd (%p5782_p2), [#allocation10], 4294966272 }
 0x1b7   : > { %4608 = dma.done.wait (%p5782_p2), [#allocation13], 32  }
 0x1b8   : > { %4610 = vsyncadd (%p5782_p2), [#allocation13], 4294967264 }
 0x1b9   : > { %4612 = dma.done.wait (%p5782_p2), [#allocation16], 528  }
 0x1ba   : > { %4614 = vsyncadd (%p5782_p2), [#allocation16], 4294966768 }
 0x1bb   : > { %4616 = dma.done.wait (%p5782_p2), [#allocation19], 32  }
 0x1bc   : > { %4618 = vsyncadd (%p5782_p2), [#allocation19], 4294967264 }
 0x1bd   : > { %4620 = dma.done.wait (%p5782_p2), [#allocation22], 528  }
 0x1be   : > { %4622 = vsyncadd (%p5782_p2), [#allocation22], 4294966768  ;;  %s5783_s13 = sld [smem:[#allocation37_spill]]  ;;  %s5784_s19 = sld [smem:[#allocation36_spill]]  ;;  %vm941_vm0 = vcmask 261120   ;;  %v970_v7 = vld [vmem:[#allocation9] sm:$0xff] }
 0x1bf   : > { %s5785_s23 = sld [smem:[#allocation40_spill]]  ;;  %v971_v8 = vld [vmem:[#allocation9 + $0x8] sm:$0xff]  ;;  %v972_v9 = vld [vmem:[#allocation9 + $0x10] sm:$0xff]  ;;  %v4686_v10 = vmov 0.0|0.0   ;;  %v973_v12 = vld [vmem:[#allocation9 + $0x18] sm:$0xff]  ;;  %vm4687_vm1 = vmmov 0  }
 0x1c0   : > { %3712 = vmatprep.subr.bf16.mxu0 %v4686_v10  ;;  %v3713_v11 = vpack.c.bf16 %v971_v8, %v970_v7  ;;  %v4688_v13 = vmov 0.0   ;;  %3718 = vmatprep.subr.bf16.mxu1 %v4686_v10  ;;  %v3716_v14 = vpack.c.bf16 %v973_v12, %v972_v9  ;;  %vm1051_vm2 = vcmask 64512   ;;  %v3338_v23 = vld [vmem:[#allocation6] ss:$0 sm:$0xff]  ;;  %v3339_v25 = vld [vmem:[#allocation8] ss:$0 sm:$0xff] }
 0x1c1   : > { %3502 = vmatprep.mubr.msk.f32.mxu0 %vm4687_vm1, %v4688_v13  ;;  %3509 = vmatprep.mubr.msk.f32.mxu1 %vm4687_vm1, %v4688_v13  ;;  %vm5286_vm3 = vmpackc.low %vm1051_vm2, %vm1051_vm2  ;;  %vm1131_vm4 = vcmask 130048   ;;  %v1049_v39 = vld [vmem:[%s785_s9] sm:$0xff]  ;;  %v1050_v40 = vld [vmem:[%s785_s9 + $0x8] sm:$0xff]  ;;  %s4690_s21 = smov 112   ;;  %s5720_s9 = smov 104   ;;  %vm1401_vm5 = vcmask 130112  }
 0x1c2   : > { %3714 = vmatpush3.bf16.msra.mxu0 %v3713_v11  ;;  %v3723_v41 = vpack.c.bf16 %v1050_v40, %v1049_v39  ;;  %v5331_v60 = vpack.i.bf16 %v1050_v40, %v1049_v39  ;;  %s5718_s11 = smov 16   ;;  %s5719_s26 = smov 8   ;;  %vm1587_vm6 = vcmask 195712   ;;  %vm1773_vm7 = vcmask 261312  }
 0x1c3   : > { %3715 = vmatprep.subr.bf16.mxu0 %v4686_v10  ;;  %s5789_s6 = sld [smem:[#allocation52_spill]]  ;;  %vm2056_vm8 = vcmask 195584   ;;  %s5800_s7 = sld [smem:[#allocation58_spill]] }
 0x1c4   : > { %p915_p10 = scmp.lt.s32.totalorder %s5783_s13, 1  ;;  %p917_p8 = scmp.lt.s32.totalorder %s5784_s19, 1 }
 0x1c5   : > { %p5801_p12 = scmp.ne.s32.totalorder %s5775_s20, 0 }
 0x1c6   : > { %s5259_s29 = scalar_select %p915_p10, %s5783_s13, 1  ;;  %3717 = vmatpush3.bf16.msra.mxu0 %v3716_v14 }
 0x1c7   : > { %s918_s1 = scalar_select %p917_p8, %s5784_s19, 1  ;;  %3729 = vmatprep.subr.bf16.mxu0 %v4686_v10 }
 0x1c8   : > { %s3332_s24 = sshll.u32 %s5259_s29, 1  ;;  %s3395_s27 = sshll.u32 %s5259_s29, 4 }
 0x1c9   : > { %s920_s12 = sadd.s32 %s3332_s24, %s918_s1  ;;  %s5786_s24 = sld [smem:[#allocation41_spill]] }
 0x1ca   : > { %s3333_s0 = sshll.u32 %s920_s12, 3  ;;  %s5790_s1 = sld [smem:[#allocation43_spill]] }
 0x1cb   : > { %s922_s18 = scalar_lea.vmem %s5785_s23, %s3333_s0  ;;  %s4689_s0 = smov 120  }
 0x1cc   : > { %v5266_v0 = vld [vmem:[%s922_s18] sm:$0xff]  ;;  %s5717_s23 = smov 24  }
 0x1cd   : > { %v942_v1 = vsel %vm941_vm0, %v5266_v0, 0.0 }
 0x1ce   : > { %943 = vadd.xlane.f32.xlu0 %v942_v1 }
 0x1cf   : > { %s927_s12 = scalar_lea.vmem %s5786_s24, %s3395_s27 }
 0x1d0   : > { %v1047_v15 = vld [vmem:[%s927_s12] sm:$0xff]  ;;  %v1048_v16 = vld [vmem:[%s927_s12 + $0x8] sm:$0xff] }
 0x1d1   : > { %v3719_v17 = vpack.c.bf16 %v1048_v16, %v1047_v15  ;;  %v5303_v33 = vpack.i.bf16 %v1048_v16, %v1047_v15 }
 0x1d3   : > { %3721 = vmatpush3.bf16.xpose.msk.msra.mxu1 %vm5286_vm3, %v3719_v17 }
 0x1d4   : > { %3722 = vmatprep.subr.bf16.mxu1 %v4686_v10 }
 0x25b   : > { %v944_v2 = vpop.xlane.xlu0 %943 }
 0x25c   : > { %v946_v3 = vmul.f32 0.03125, %v944_v2 }
 0x25e   : > { %v947_v4 = vsub.f32 %v5266_v0, %v946_v3 }
 0x260   : > { %v948_v5 = vmul.f32 %v947_v4, %v947_v4 }
 0x262   : > { %v949_v6 = vsel %vm941_vm0, %v948_v5, 0.0 }
 0x263   : > { %950 = vadd.xlane.f32.xlu0 %v949_v6 }
 0x279   : > { %4058 = vrot.lane.b32.xlu0 %v5303_v33, %s4689_s0 }
 0x2f0   : > { %v951_v19 = vpop.xlane.xlu0 %950 }
 0x2f1   : > { %v952_v20 = vmul.f32 0.03125, %v951_v19 }
 0x2f3   : > { %v953_v21 = vadd.f32 1e-05, %v952_v20 }
 0x2f4   : > { %v4059_v43 = vpop.permute.xlu0 %4058 }
 0x2f5   : > { %4117 = vrsqrt.f32 %v953_v21  ;;  %v4061_v44 = vunpack.i.h.bf16 %v4059_v43  ;;  %v4060_v45 = vunpack.i.l.bf16 %v4059_v43 }
 0x2f7   : > { %v3726_v47 = vpack.c.bf16 %v4061_v44, %v4060_v45 }
 0x2ff   : > { %v4118_v22 = vpop.eup %4117 }
 0x300   : > { %v955_v24 = vmul.f32 %v4118_v22, %v947_v4 }
 0x302   : > { %v962_v26 = vmul.f32 %v3338_v23, %v955_v24 }
 0x304   : > { %v969_v27 = vadd.f32 %v3339_v25, %v962_v26 }
 0x306   : > { %3503 = vmatmul.mubr.msk.f32.vlgmr.msra.gmra.mrb[0].mxu0 %vm941_vm0, %v969_v27 }
 0x307   : > { %3530 = vmatprep.mubr.msk.f32.mxu0 %vm4687_vm1, %v4688_v13 }
 0x3d9   : > { %v5296_v28 = vpop.f32.mrb[0].mxu0 }
 0x3da   : > { %v3504_v29 = vpop.f32.mrb[1].mxu0  ;;  %3510 = vmatmul.mubr.msk.f32.vlgmr.msra.gmra.mrb[0].mxu1 %vm1051_vm2, %v5296_v28 }
 0x3db   : > { %3516 = vmatprep.mubr.msk.f32.mxu1 %vm4687_vm1, %v4688_v13  ;;  %3724 = vmatpush3.bf16.msra.mxu1 %v3723_v41 }
 0x3dc   : > { %3725 = vmatprep.subr.bf16.mxu1 %v4686_v10 }
 0x4ad   : > { %v1127_v30 = vpop.f32.mrb[0].mxu1 }
 0x4ae   : > { %v3511_v31 = vpop.f32.mrb[1].mxu1  ;;  %v1132_v32 = vsel %vm1131_vm4, %v1127_v30, -inf }
 0x4af   : > { %1133 = vmax.xlane.f32.xlu1 %v1132_v32 }
 0x53c   : > { %v1134_v34 = vpop.xlane.xlu1 %1133 }
 0x53d   : > { %v1135_v35 = vsub.f32 %v1127_v30, %v1134_v34 }
 0x53f   : > { %v1136_v36 = vmul.f32 1.442695, %v1135_v35 }
 0x541   : > { %4119 = vpow2.f32 %v1136_v36 }
 0x54b   : > { %v4120_v37 = vpop.eup %4119 }
 0x54c   : > { %v1138_v38 = vsel %vm1131_vm4, %v4120_v37, 0.0 }
 0x54d   : > { %1139 = vadd.xlane.f32.xlu1 %v1138_v38 }
 0x55e   : > { %1221 = vrot.lane.b32.xlu1 %v5296_v28, %s4689_s0 }
 0x5da   : > { %v1140_v42 = vpop.xlane.xlu1 %1139 }
 0x5db   : > { %4121 = vrcp.f32 %v1140_v42 }
 0x5de   : > { %v1222_v49 = vpop.permute.xlu1 %1221 }
 0x5e5   : > { %v4122_v46 = vpop.eup %4121 }
 0x5e6   : > { %v1142_v48 = vmul.f32 %v4122_v46, %v4120_v37 }
 0x5e8   : > { %3517 = vmatmul.mubr.msk.f32.vlgmr.msra.gmra.mrb[2].mxu1 %vm1131_vm4, %v1142_v48 }
 0x5e9   : > { %3728 = vmatpush3.bf16.xpose.msk.msra.mxu1 %vm5286_vm3, %v3726_v47  ;;  %3523 = vmatprep.mubr.msk.f32.mxu1 %vm4687_vm1, %v4688_v13 }
 0x5ea   : > { %3736 = vmatprep.subr.bf16.mxu1 %v4686_v10 }
 0x5f0   : > { %3524 = vmatmul.mubr.msk.f32.vlgmr.msra.gmra.mrb[4].mxu1 %vm1051_vm2, %v1222_v49 }
 0x5f1   : > { %3544 = vmatprep.mubr.msk.f32.mxu1 %vm4687_vm1, %v4688_v13 }
 0x6bb   : > { %v1212_v50 = vpop.f32.mrb[2].mxu1 }
 0x6bc   : > { %1216 = vst.msk [vmem:[#allocation2] sm:$0xff] %vm1051_vm2, %v1212_v50  ;;  %v3518_v51 = vpop.f32.mrb[3].mxu1 }
 0x6c3   : > { %v1301_v52 = vpop.f32.mrb[4].mxu1 }
 0x6c4   : > { %v3525_v53 = vpop.f32.mrb[5].mxu1  ;;  %v1305_v54 = vsel %vm1131_vm4, %v1301_v52, -inf }
 0x6c5   : > { %1306 = vmax.xlane.f32.xlu1 %v1305_v54  ;;  %v1776_v54 = vld [vmem:[#allocation11] sm:$0xff] }
 0x6d6   : > { %4068 = vrot.lane.b32.xlu1 %v5303_v33, %s4690_s21 }
 0x6da   : > { %1407 = vrot.lane.b32.xlu1 %v5296_v28, %s4690_s21 }
 0x752   : > { %v1307_v55 = vpop.xlane.xlu1 %1306 }
 0x753   : > { %v1308_v56 = vsub.f32 %v1301_v52, %v1307_v55  ;;  %v1777_v55 = vld [vmem:[#allocation11 + $0x8] sm:$0xff] }
 0x755   : > { %v1309_v57 = vmul.f32 1.442695, %v1308_v56  ;;  %v3747_v56 = vpack.c.bf16 %v1777_v55, %v1776_v54 }
 0x756   : > { %v4069_v3 = vpop.permute.xlu1 %4068 }
 0x757   : > { %4123 = vpow2.f32 %v1309_v57  ;;  %v4071_v4 = vunpack.i.h.bf16 %v4069_v3  ;;  %v4070_v5 = vunpack.i.l.bf16 %v4069_v3  ;;  %v1778_v57 = vld [vmem:[#allocation11 + $0x10] sm:$0xff] }
 0x759   : > { %v3733_v8 = vpack.c.bf16 %v4071_v4, %v4070_v5 }
 0x75a   : > { %v1408_v9 = vpop.permute.xlu1 %1407 }
 0x761   : > { %v4124_v58 = vpop.eup %4123 }
 0x762   : > { %v1311_v59 = vsel %vm1131_vm4, %v4124_v58, 0.0 }
 0x763   : > { %1312 = vadd.xlane.f32.xlu0 %v1311_v59 }
 0x779   : > { %4063 = vrot.lane.b32.xlu0 %v5331_v60, %s4689_s0 }
 0x7f0   : > { %v1313_v61 = vpop.xlane.xlu0 %1312 }
 0x7f1   : > { %4125 = vrcp.f32 %v1313_v61 }
 0x7f4   : > { %v4064_v62 = vpop.permute.xlu0 %4063 }
 0x7f5   : > { %v4066_v63 = vunpack.i.h.bf16 %v4064_v62  ;;  %v4065_v1 = vunpack.i.l.bf16 %v4064_v62 }
 0x7f7   : > { %v3730_v2 = vpack.c.bf16 %v4066_v63, %v4065_v1 }
 0x7f9   : > { %3731 = vmatpush3.bf16.msra.mxu0 %v3730_v2  ;;  %v3358_v2 = vld [vmem:[#allocation12] ss:$0 sm:$0xff] }
 0x7fa   : > { %3732 = vmatprep.subr.bf16.mxu0 %v4686_v10 }
 0x7fb   : > { %v4126_v6 = vpop.eup %4125 }
 0x7fc   : > { %v1315_v7 = vmul.f32 %v4126_v6, %v4124_v58  ;;  %v1779_v58 = vld [vmem:[#allocation11 + $0x18] sm:$0xff] }
 0x7fd   : > { %v3750_v59 = vpack.c.bf16 %v1779_v58, %v1778_v57 }
 0x7fe   : > { %3531 = vmatmul.mubr.msk.f32.vlgmr.msra.gmra.mrb[2].mxu0 %vm1131_vm4, %v1315_v7 }
 0x7ff   : > { %3537 = vmatprep.mubr.msk.f32.mxu0 %vm4687_vm1, %v4688_v13 }
 0x802   : > { %3735 = vmatpush3.bf16.xpose.msk.msra.mxu0 %vm5286_vm3, %v3733_v8 }
 0x803   : > { %3743 = vmatprep.subr.bf16.mxu0 %v4686_v10 }
 0x809   : > { %3538 = vmatmul.mubr.msk.f32.vlgmr.msra.gmra.mrb[4].mxu0 %vm1051_vm2, %v1408_v9 }
 0x80a   : > { %3558 = vmatprep.mubr.msk.f32.mxu0 %vm4687_vm1, %v4688_v13 }
 0x8d1   : > { %v1393_v11 = vpop.f32.mrb[2].mxu0 }
 0x8d2   : > { %v3532_v12 = vpop.f32.mrb[3].mxu0 }
 0x8dc   : > { %v1487_v14 = vpop.f32.mrb[4].mxu0 }
 0x8dd   : > { %v3539_v15 = vpop.f32.mrb[5].mxu0  ;;  %v1491_v16 = vsel %vm1131_vm4, %v1487_v14, -inf }
 0x8de   : > { %1492 = vmax.xlane.f32.xlu1 %v1491_v16  ;;  %v1893_v16 = vld [vmem:[%s5789_s6 + $0x10] sm:$0xff] }
 0x8ef   : > { %4078 = vrot.lane.b32.xlu1 %v5303_v33, %s5720_s9 }
 0x8f3   : > { %1593 = vrot.lane.b32.xlu1 %v5296_v28, %s5720_s9 }
 0x96b   : > { %v1493_v17 = vpop.xlane.xlu1 %1492 }
 0x96c   : > { %v1494_v19 = vsub.f32 %v1487_v14, %v1493_v17  ;;  %v1892_v14 = vld [vmem:[%s5789_s6 + $0x8] sm:$0xff]  ;;  %v1894_v17 = vld [vmem:[%s5789_s6 + $0x18] sm:$0xff] }
 0x96e   : > { %v1495_v20 = vmul.f32 1.442695, %v1494_v19  ;;  %v3756_v19 = vpack.c.bf16 %v1894_v17, %v1893_v16 }
 0x96f   : > { %v4079_v29 = vpop.permute.xlu1 %4078 }
 0x970   : > { %4127 = vpow2.f32 %v1495_v20  ;;  %v4081_v28 = vunpack.i.h.bf16 %v4079_v29  ;;  %v4080_v30 = vunpack.i.l.bf16 %v4079_v29 }
 0x972   : > { %v3740_v33 = vpack.c.bf16 %v4081_v28, %v4080_v30  ;;  %v3360_v28 = vld [vmem:[#allocation15] ss:$0 sm:$0xff] }
 0x973   : > { %v1594_v34 = vpop.permute.xlu1 %1593 }
 0x97a   : > { %v4128_v21 = vpop.eup %4127 }
 0x97b   : > { %v1497_v22 = vsel %vm1131_vm4, %v4128_v21, 0.0 }
 0x97c   : > { %1498 = vadd.xlane.f32.xlu0 %v1497_v22 }
 0x992   : > { %4073 = vrot.lane.b32.xlu0 %v5331_v60, %s4690_s21 }
 0xa09   : > { %v1499_v23 = vpop.xlane.xlu0 %1498 }
 0xa0a   : > { %4129 = vrcp.f32 %v1499_v23 }
 0xa0d   : > { %v4074_v24 = vpop.permute.xlu0 %4073 }
 0xa0e   : > { %v4076_v25 = vunpack.i.h.bf16 %v4074_v24  ;;  %v4075_v26 = vunpack.i.l.bf16 %v4074_v24 }
 0xa10   : > { %v3737_v27 = vpack.c.bf16 %v4076_v25, %v4075_v26  ;;  %v3359_v25 = vld [vmem:[#allocation14] ss:$0 sm:$0xff] }
 0xa12   : > { %3738 = vmatpush3.bf16.msra.mxu1 %v3737_v27 }
 0xa13   : > { %3739 = vmatprep.subr.bf16.mxu1 %v4686_v10 }
 0xa14   : > { %v4130_v31 = vpop.eup %4129 }
 0xa15   : > { %v1501_v32 = vmul.f32 %v4130_v31, %v4128_v21 }
 0xa17   : > { %3545 = vmatmul.mubr.msk.f32.vlgmr.msra.gmra.mrb[6].mxu1 %vm1131_vm4, %v1501_v32 }
 0xa18   : > { %3551 = vmatprep.mubr.msk.f32.mxu1 %vm4687_vm1, %v4688_v13 }
 0xa1b   : > { %3742 = vmatpush3.bf16.xpose.msk.msra.mxu1 %vm5286_vm3, %v3740_v33 }
 0xa1c   : > { %3752 = vmatprep.subr.bf16.mxu1 %v4686_v10 }
 0xa22   : > { %3552 = vmatmul.mubr.msk.f32.vlgmr.msra.gmra.mrb[8].mxu1 %vm1051_vm2, %v1594_v34 }
 0xa23   : > { %3580 = vmatprep.mubr.msk.f32.mxu1 %vm4687_vm1, %v4688_v13 }
 0xaea   : > { %v1579_v35 = vpop.f32.mrb[6].mxu1 }
 0xaeb   : > { %v3546_v36 = vpop.f32.mrb[7].mxu1 }
 0xaf5   : > { %v1673_v37 = vpop.f32.mrb[8].mxu1 }
 0xaf6   : > { %v3553_v38 = vpop.f32.mrb[9].mxu1  ;;  %v1677_v39 = vsel %vm1131_vm4, %v1673_v37, -inf }
 0xaf7   : > { %1678 = vmax.xlane.f32.xlu0 %v1677_v39 }
 0xb0d   : > { %4083 = vrot.lane.b32.xlu0 %v5331_v60, %s5720_s9  ;;  %s3822_s9 = smul.u32 24, %s5259_s29  ;;  %s5792_s29 = smov 104  }
 0xb0f   : > { %s932_s24 = scalar_lea.vmem %s5790_s1, %s3822_s9  ;;  %s5796_s1 = sld [smem:[#allocation56_spill]] }
 0xb10   : > { %v5409_v20 = vld [vmem:[%s932_s24 + $0x10] sm:$0xff]  ;;  %v1968_v27 = vld [vmem:[%s932_s24] sm:$0xff]  ;;  %v1969_v29 = vld [vmem:[%s932_s24 + $0x8] sm:$0xff]  ;;  %s5798_s24 = sld [smem:[#allocation55_spill]] }
 0xb11   : > { %1584 = vrot.lane.b32.xlu0 %v1579_v35, %s5718_s11  ;;  %v3759_v31 = vpack.c.bf16 %v1969_v29, %v1968_v27 }
 0xb84   : > { %v1679_v40 = vpop.xlane.xlu0 %1678 }
 0xb85   : > { %v1680_v41 = vsub.f32 %v1673_v37, %v1679_v40 }
 0xb87   : > { %v1681_v42 = vmul.f32 1.442695, %v1680_v41 }
 0xb88   : > { %v4084_v43 = vpop.permute.xlu0 %4083 }
 0xb89   : > { %4131 = vpow2.f32 %v1681_v42  ;;  %v4086_v44 = vunpack.i.h.bf16 %v4084_v43  ;;  %v4085_v45 = vunpack.i.l.bf16 %v4084_v43 }
 0xb8b   : > { %v3744_v46 = vpack.c.bf16 %v4086_v44, %v4085_v45 }
 0xb8c   : > { %v1585_v51 = vpop.permute.xlu0 %1584 }
 0xb8d   : > { %3745 = vmatpush3.bf16.msra.mxu0 %v3744_v46  ;;  %v5438_v46 = vpack.i.bf16 %v1969_v29, %v1968_v27 }
 0xb8e   : > { %3746 = vmatprep.subr.bf16.mxu0 %v4686_v10 }
 0xb93   : > { %v4132_v47 = vpop.eup %4131 }
 0xb94   : > { %v1683_v48 = vsel %vm1131_vm4, %v4132_v47, 0.0 }
 0xb95   : > { %1684 = vadd.xlane.f32.xlu1 %v1683_v48 }
 0xba6   : > { %1398 = vrot.lane.b32.xlu1 %v1393_v11, %s5719_s26 }
 0xc22   : > { %v1685_v49 = vpop.xlane.xlu1 %1684 }
 0xc23   : > { %4133 = vrcp.f32 %v1685_v49 }
 0xc26   : > { %v1399_v50 = vpop.permute.xlu1 %1398 }
 0xc27   : > { %1402 = vst.msk [vmem:[#allocation2] sm:$0xff] %vm1401_vm5, %v1399_v50 }
 0xc28   : > { %1588 = vst.msk [vmem:[#allocation2] sm:$0xff] %vm1587_vm6, %v1585_v51 }
 0xc2d   : > { %v4134_v52 = vpop.eup %4133 }
 0xc2e   : > { %v1687_v53 = vmul.f32 %v4134_v52, %v4132_v47 }
 0xc30   : > { %3559 = vmatmul.mubr.msk.f32.vlgmr.msra.gmra.mrb[6].mxu0 %vm1131_vm4, %v1687_v53 }
 0xc31   : > { %3569 = vmatprep.mubr.msk.f32.mxu0 %vm4687_vm1, %v4688_v13  ;;  %3748 = vmatpush3.bf16.msra.mxu0 %v3747_v56 }
 0xc32   : > { %3749 = vmatprep.subr.bf16.mxu0 %v4686_v10 }
 0xc35   : > { %3751 = vmatpush3.bf16.msra.mxu0 %v3750_v59 }
 0xc36   : > { %3769 = vmatprep.subr.bf16.mxu0 %v4686_v10 }
 0xd03   : > { %v1765_v60 = vpop.f32.mrb[6].mxu0 }
 0xd04   : > { %1770 = vrot.lane.b32.xlu1 %v1765_v60, %s5717_s23  ;;  %v3560_v61 = vpop.f32.mrb[7].mxu0  ;;  %s5791_s23 = sld [smem:[#allocation44_spill]] }
 0xd0a   : > { %s937_s12 = scalar_lea.vmem %s5791_s23, %s3822_s9  ;;  %s5795_s9 = smov 24  }
 0xd0b   : > { %v1971_v43 = vld [vmem:[%s937_s12] sm:$0xff]  ;;  %v1972_v44 = vld [vmem:[%s937_s12 + $0x8] sm:$0xff]  ;;  %v5440_v47 = vld [vmem:[%s937_s12 + $0x10] sm:$0xff]  ;;  %s3390_s23 = sshll.u32 %s5783_s13, 1 }
 0xd0c   : > { %v3763_v45 = vpack.c.bf16 %v1972_v44, %v1971_v43  ;;  %s3043_s12 = sadd.s32 %s5784_s19, %s3390_s23 }
 0xd0d   : > { %s3391_s18 = sshll.u32 %s3043_s12, 7 }
 0xd76   : > { %v1771_v62 = vpop.permute.xlu1 %1770 }
 0xd77   : > { %1774 = vst.msk [vmem:[#allocation2] sm:$0xff] %vm1773_vm7, %v1771_v62 }
 0xd7e   : > { %v1775_v63 = vld [vmem:[#allocation2] sm:$0xff] }
 0xd7f   : > { %3570 = vmatmul.mubr.msk.f32.vlgmr.msra.gmra.mrb[8].mxu0 %vm941_vm0, %v1775_v63 }
 0xd80   : > { %3616 = vmatprep.mubr.msk.f32.mxu0 %vm4687_vm1, %v4688_v13 }
 0xe52   : > { %v1849_v1 = vpop.f32.mrb[8].mxu0 }
 0xe53   : > { %v1853_v3 = vadd.f32 %v1849_v1, %v5266_v0  ;;  %v3571_v4 = vpop.f32.mrb[9].mxu0  ;;  %v1891_v0 = vld [vmem:[%s5789_s6] sm:$0xff] }
 0xe54   : > { %v3753_v15 = vpack.c.bf16 %v1892_v14, %v1891_v0  ;;  %v5468_v4 = vpack.i.bf16 %v1972_v44, %v1971_v43 }
 0xe55   : > { %v5383_v5 = vadd.f32 %v3358_v2, %v1853_v3 }
 0xe56   : > { %3754 = vmatpush3.bf16.msra.mxu1 %v3753_v15 }
 0xe57   : > { %v1864_v6 = vsel %vm941_vm0, %v5383_v5, 0.0  ;;  %3755 = vmatprep.subr.bf16.mxu1 %v4686_v10 }
 0xe58   : > { %1865 = vadd.xlane.f32.xlu0 %v1864_v6 }
 0xe5a   : > { %3757 = vmatpush3.bf16.msra.mxu1 %v3756_v19 }
 0xe5b   : > { %3758 = vmatprep.subr.bf16.mxu1 %v4686_v10 }
 0xee5   : > { %v1866_v7 = vpop.xlane.xlu0 %1865 }
 0xee6   : > { %v1867_v8 = vmul.f32 0.03125, %v1866_v7 }
 0xee8   : > { %v1868_v9 = vsub.f32 %v5383_v5, %v1867_v8 }
 0xeea   : > { %v1869_v11 = vmul.f32 %v1868_v9, %v1868_v9 }
 0xeec   : > { %v1870_v12 = vsel %vm941_vm0, %v1869_v11, 0.0 }
 0xeed   : > { %1871 = vadd.xlane.f32.xlu1 %v1870_v12 }
 0xefe   : > { %2157 = vrot.lane.b32.xlu1 %v5409_v20, %s4689_s0 }
 0xf7a   : > { %v1872_v21 = vpop.xlane.xlu1 %1871 }
 0xf7b   : > { %v1873_v22 = vmul.f32 0.03125, %v1872_v21 }
 0xf7d   : > { %v1874_v23 = vadd.f32 1e-05, %v1873_v22 }
 0xf7e   : > { %v2158_v55 = vpop.permute.xlu1 %2157 }
 0xf7f   : > { %4135 = vrsqrt.f32 %v1874_v23 }
 0xf89   : > { %v4136_v24 = vpop.eup %4135 }
 0xf8a   : > { %v1876_v26 = vmul.f32 %v4136_v24, %v1868_v9 }
 0xf8c   : > { %v1883_v30 = vmul.f32 %v3359_v25, %v1876_v26 }
 0xf8e   : > { %v1890_v32 = vadd.f32 %v3360_v28, %v1883_v30 }
 0xf90   : > { %3581 = vmatmul.mubr.msk.f32.vlgmr.msra.gmra.mrb[10].mxu1 %vm941_vm0, %v1890_v32 }
 0xf91   : > { %3761 = vmatpush3.bf16.xpose.msk.msra.mxu1 %vm5286_vm3, %v3759_v31  ;;  %3589 = vmatprep.mubr.msk.f32.mxu1 %vm4687_vm1, %v4688_v13 }
 0xf92   : > { %3587 = vmatprep.subr.mxu1 %v4688_v13 }
 0xf99   : > { %3588 = vmatpush3.xpose.msk.msra.mxu1 %vm1051_vm2, %v5409_v20 }
 0xf9a   : > { %3762 = vmatprep.subr.bf16.mxu1 %v4686_v10 }
0x1063   : > { %v5422_v33 = vpop.f32.mrb[10].mxu1 }
0x1064   : > { %2148 = vrot.lane.b32.xlu1 %v5422_v33, %s4689_s0  ;;  %v3582_v34 = vpop.f32.mrb[11].mxu1  ;;  %3590 = vmatmul.mubr.msk.f32.vlgmr.msra.gmra.mrb[12].mxu1 %vm1051_vm2, %v5422_v33 }
0x1065   : > { %3598 = vmatprep.mubr.msk.f32.mxu1 %vm4687_vm1, %v4688_v13  ;;  %3764 = vmatpush3.bf16.msra.mxu1 %v3763_v45 }
0x1066   : > { %3596 = vmatprep.subr.mxu1 %v4688_v13 }
0x1069   : > { %3597 = vmatpush3.msra.mxu1 %v5440_v47 }
0x106a   : > { %3765 = vmatprep.subr.bf16.mxu1 %v4686_v10 }
0x10d6   : > { %v2149_v56 = vpop.permute.xlu1 %2148 }
0x1137   : > { %v2052_v35 = vpop.f32.mrb[12].mxu1 }
0x1138   : > { %v3591_v36 = vpop.f32.mrb[13].mxu1  ;;  %v2057_v37 = vsel %vm2056_vm8, %v2052_v35, -inf }
0x1139   : > { %2058 = vmax.xlane.f32.xlu0 %v2057_v37 }
0x11c6   : > { %v2059_v38 = vpop.xlane.xlu0 %2058 }
0x11c7   : > { %v2060_v39 = vsub.f32 %v2052_v35, %v2059_v38 }
0x11c9   : > { %v2061_v40 = vmul.f32 1.442695, %v2060_v39 }
0x11cb   : > { %4137 = vpow2.f32 %v2061_v40 }
0x11d5   : > { %v4138_v41 = vpop.eup %4137 }
0x11d6   : > { %v2063_v42 = vsel %vm2056_vm8, %v4138_v41, 0.0 }
0x11d7   : > { %2064 = vadd.xlane.f32.xlu0 %v2063_v42 }
0x11ed   : > { %4088 = vrot.lane.b32.xlu0 %v5438_v46, %s4689_s0 }
0x1264   : > { %v2065_v48 = vpop.xlane.xlu0 %2064 }
0x1265   : > { %4139 = vrcp.f32 %v2065_v48 }
0x1268   : > { %v4089_v49 = vpop.permute.xlu0 %4088 }
0x1269   : > { %v4091_v50 = vunpack.i.h.bf16 %v4089_v49  ;;  %v4090_v51 = vunpack.i.l.bf16 %v4089_v49 }
0x126b   : > { %v3766_v53 = vpack.c.bf16 %v4091_v50, %v4090_v51 }
0x126f   : > { %v4140_v52 = vpop.eup %4139 }
0x1270   : > { %v2067_v54 = vmul.f32 %v4140_v52, %v4138_v41 }
0x1272   : > { %3599 = vmatmul.mubr.msk.f32.vlgmr.msra.gmra.mrb[14].mxu1 %vm2056_vm8, %v2067_v54 }
0x1273   : > { %3768 = vmatpush3.bf16.xpose.msk.msra.mxu1 %vm5286_vm3, %v3766_v53  ;;  %3607 = vmatprep.mubr.msk.f32.mxu1 %vm4687_vm1, %v4688_v13 }
0x1274   : > { %3605 = vmatprep.subr.mxu1 %v4688_v13 }
0x127b   : > { %3606 = vmatpush3.xpose.msk.msra.mxu1 %vm1051_vm2, %v2158_v55 }
0x127c   : > { %3776 = vmatprep.subr.bf16.mxu1 %v4686_v10 }
0x127e   : > { %3608 = vmatmul.mubr.msk.f32.vlgmr.msra.gmra.mrb[16].mxu1 %vm1051_vm2, %v2149_v56 }
0x127f   : > { %3634 = vmatprep.mubr.msk.f32.mxu1 %vm4687_vm1, %v4688_v13 }
0x1345   : > { %v2137_v57 = vpop.f32.mrb[14].mxu1 }
0x1346   : > { %2141 = vst.msk [vmem:[#allocation2] sm:$0xff] %vm1051_vm2, %v2137_v57  ;;  %v3600_v58 = vpop.f32.mrb[15].mxu1 }
0x1351   : > { %v2233_v59 = vpop.f32.mrb[16].mxu1 }
0x1352   : > { %v3609_v60 = vpop.f32.mrb[17].mxu1  ;;  %v2237_v61 = vsel %vm2056_vm8, %v2233_v59, -inf }
0x1353   : > { %2238 = vmax.xlane.f32.xlu1 %v2237_v61 }
0x1364   : > { %2255 = vrot.lane.b32.xlu1 %v5440_v47, %s4689_s0 }
0x1368   : > { %4098 = vrot.lane.b32.xlu1 %v5438_v46, %s4690_s21 }
0x136c   : > { %2344 = vrot.lane.b32.xlu1 %v5422_v33, %s4690_s21 }
0x1370   : > { %2451 = vrot.lane.b32.xlu1 %v5440_v47, %s4690_s21 }
0x13e0   : > { %v2239_v62 = vpop.xlane.xlu1 %2238 }
0x13e1   : > { %v2240_v63 = vsub.f32 %v2233_v59, %v2239_v62 }
0x13e3   : > { %v2241_v1 = vmul.f32 1.442695, %v2240_v63 }
0x13e4   : > { %v2256_v8 = vpop.permute.xlu1 %2255 }
0x13e5   : > { %4141 = vpow2.f32 %v2241_v1 }
0x13e8   : > { %v4099_v14 = vpop.permute.xlu1 %4098 }
0x13e9   : > { %v4101_v15 = vunpack.i.h.bf16 %v4099_v14  ;;  %v4100_v16 = vunpack.i.l.bf16 %v4099_v14 }
0x13eb   : > { %v3773_v19 = vpack.c.bf16 %v4101_v15, %v4100_v16  ;;  %v3383_v15 = vld [vmem:[#allocation18] ss:$0 sm:$0xff] }
0x13ec   : > { %v2345_v22 = vpop.permute.xlu1 %2344 }
0x13ef   : > { %v4142_v2 = vpop.eup %4141 }
0x13f0   : > { %v2243_v3 = vsel %vm2056_vm8, %v4142_v2, 0.0  ;;  %v2452_v36 = vpop.permute.xlu1 %2451 }
0x13f1   : > { %2244 = vadd.xlane.f32.xlu0 %v2243_v3  ;;  %v2732_v3 = vld [vmem:[#allocation17 + $0x8] sm:$0xff] }
0x1407   : > { %4093 = vrot.lane.b32.xlu0 %v5468_v4, %s4689_s0  ;;  %s5793_s0 = smov 8  }
0x140b   : > { %2353 = vrot.lane.b32.xlu0 %v5409_v20, %s4690_s21 }
0x147e   : > { %v2245_v6 = vpop.xlane.xlu0 %2244 }
0x147f   : > { %4143 = vrcp.f32 %v2245_v6  ;;  %v2733_v6 = vld [vmem:[#allocation17 + $0x10] sm:$0xff] }
0x1482   : > { %v4094_v7 = vpop.permute.xlu0 %4093 }
0x1483   : > { %v4096_v9 = vunpack.i.h.bf16 %v4094_v7  ;;  %v4095_v11 = vunpack.i.l.bf16 %v4094_v7  ;;  %v2734_v7 = vld [vmem:[#allocation17 + $0x18] sm:$0xff] }
0x1485   : > { %v3770_v12 = vpack.c.bf16 %v4096_v9, %v4095_v11 }
0x1486   : > { %v2354_v21 = vpop.permute.xlu0 %2353 }
0x1487   : > { %3771 = vmatpush3.bf16.msra.mxu0 %v3770_v12 }
0x1488   : > { %3614 = vmatprep.subr.mxu0 %v4688_v13 }
0x1489   : > { %v4144_v0 = vpop.eup %4143 }
0x148a   : > { %v2247_v17 = vmul.f32 %v4144_v0, %v4142_v2  ;;  %v2731_v2 = vld [vmem:[#allocation17] sm:$0xff] }
0x148b   : > { %3615 = vmatpush3.msra.mxu0 %v2256_v8  ;;  %v3790_v8 = vpack.c.bf16 %v2734_v7, %v2733_v6 }
0x148c   : > { %3617 = vmatmul.mubr.msk.f32.vlgmr.msra.gmra.mrb[10].mxu0 %vm2056_vm8, %v2247_v17  ;;  %3772 = vmatprep.subr.bf16.mxu0 %v4686_v10 }
0x148d   : > { %3625 = vmatprep.mubr.msk.f32.mxu0 %vm4687_vm1, %v4688_v13 }
0x1492   : > { %3775 = vmatpush3.bf16.xpose.msk.msra.mxu0 %vm5286_vm3, %v3773_v19 }
0x1493   : > { %3623 = vmatprep.subr.mxu0 %v4688_v13 }
0x149a   : > { %3624 = vmatpush3.xpose.msk.msra.mxu0 %vm1051_vm2, %v2354_v21 }
0x149b   : > { %3783 = vmatprep.subr.bf16.mxu0 %v4686_v10 }
0x149d   : > { %3626 = vmatmul.mubr.msk.f32.vlgmr.msra.gmra.mrb[12].mxu0 %vm1051_vm2, %v2345_v22 }
0x149e   : > { %3652 = vmatprep.mubr.msk.f32.mxu0 %vm4687_vm1, %v4688_v13 }
0x155f   : > { %v2329_v23 = vpop.f32.mrb[10].mxu0 }
0x1560   : > { %v3618_v24 = vpop.f32.mrb[11].mxu0 }
0x1570   : > { %v2429_v25 = vpop.f32.mrb[12].mxu0 }
0x1571   : > { %v3627_v26 = vpop.f32.mrb[13].mxu0  ;;  %v2433_v27 = vsel %vm2056_vm8, %v2429_v25, -inf }
0x1572   : > { %2434 = vmax.xlane.f32.xlu0 %v2433_v27  ;;  %v2847_v27 = vld [vmem:[#allocation23 + $0x8] sm:$0xff] }
0x1588   : > { %4103 = vrot.lane.b32.xlu0 %v5468_v4, %s4690_s21  ;;  %s5794_s21 = smov 16  }
0x158c   : > { %4108 = vrot.lane.b32.xlu0 %v5438_v46, %s5792_s29 }
0x1590   : > { %2540 = vrot.lane.b32.xlu0 %v5422_v33, %s5792_s29 }
0x15ff   : > { %v2435_v29 = vpop.xlane.xlu0 %2434 }
0x1600   : > { %v2436_v28 = vsub.f32 %v2429_v25, %v2435_v29 }
0x1602   : > { %v2437_v30 = vmul.f32 1.442695, %v2436_v28  ;;  %v2849_v28 = vld [vmem:[#allocation23 + $0x18] sm:$0xff] }
0x1603   : > { %v4104_v31 = vpop.permute.xlu0 %4103 }
0x1604   : > { %4145 = vpow2.f32 %v2437_v30  ;;  %v4106_v32 = vunpack.i.h.bf16 %v4104_v31  ;;  %v4105_v34 = vunpack.i.l.bf16 %v4104_v31  ;;  %v2935_v31 = vld [vmem:[%s5796_s1] sm:$0xff] }
0x1606   : > { %v3777_v35 = vpack.c.bf16 %v4106_v32, %v4105_v34  ;;  %v2936_v32 = vld [vmem:[%s5796_s1 + $0x8] sm:$0xff]  ;;  %v2937_v34 = vld [vmem:[%s5796_s1 + $0x10] sm:$0xff] }
0x1607   : > { %v4109_v39 = vpop.permute.xlu0 %4108 }
0x1608   : > { %3778 = vmatpush3.bf16.msra.mxu1 %v3777_v35  ;;  %v4111_v40 = vunpack.i.h.bf16 %v4109_v39  ;;  %v4110_v41 = vunpack.i.l.bf16 %v4109_v39  ;;  %v3799_v35 = vpack.c.bf16 %v2936_v32, %v2935_v31 }
0x1609   : > { %3632 = vmatprep.subr.mxu1 %v4688_v13 }
0x160a   : > { %v3780_v43 = vpack.c.bf16 %v4111_v40, %v4110_v41 }
0x160c   : > { %3633 = vmatpush3.msra.mxu1 %v2452_v36  ;;  %v2938_v36 = vld [vmem:[%s5796_s1 + $0x18] sm:$0xff] }
0x160d   : > { %3779 = vmatprep.subr.bf16.mxu1 %v4686_v10 }
0x160e   : > { %v4146_v37 = vpop.eup %4145 }
0x160f   : > { %v2439_v38 = vsel %vm2056_vm8, %v4146_v37, 0.0 }
0x1610   : > { %2440 = vadd.xlane.f32.xlu1 %v2439_v38  ;;  %v2939_v38 = vld [vmem:[%s5796_s1 + $0x20] sm:$0xff] }
0x1621   : > { %2549 = vrot.lane.b32.xlu1 %v5409_v20, %s5792_s29  ;;  %v2541_v20 = vpop.permute.xlu0 %2540 }
0x169d   : > { %v2441_v33 = vpop.xlane.xlu1 %2440 }
0x169e   : > { %4147 = vrcp.f32 %v2441_v33  ;;  %v2940_v33 = vld [vmem:[%s5796_s1 + $0x28] sm:$0xff] }
0x169f   : > { %v3805_v39 = vpack.c.bf16 %v2940_v33, %v2939_v38 }
0x16a1   : > { %v2550_v45 = vpop.permute.xlu1 %2549 }
0x16a8   : > { %v4148_v42 = vpop.eup %4147 }
0x16a9   : > { %v2443_v44 = vmul.f32 %v4148_v42, %v4146_v37  ;;  %v3802_v37 = vpack.c.bf16 %v2938_v36, %v2937_v34 }
0x16ab   : > { %3635 = vmatmul.mubr.msk.f32.vlgmr.msra.gmra.mrb[18].mxu1 %vm2056_vm8, %v2443_v44  ;;  %v3384_v44 = vld [vmem:[#allocation20] ss:$0 sm:$0xff] }
0x16ac   : > { %3782 = vmatpush3.bf16.xpose.msk.msra.mxu1 %vm5286_vm3, %v3780_v43  ;;  %3643 = vmatprep.mubr.msk.f32.mxu1 %vm4687_vm1, %v4688_v13 }
0x16ad   : > { %3641 = vmatprep.subr.mxu1 %v4688_v13 }
0x16b4   : > { %3642 = vmatpush3.xpose.msk.msra.mxu1 %vm1051_vm2, %v2550_v45 }
0x16b5   : > { %3792 = vmatprep.subr.bf16.mxu1 %v4686_v10 }
0x16b7   : > { %3644 = vmatmul.mubr.msk.f32.vlgmr.msra.gmra.mrb[20].mxu1 %vm1051_vm2, %v2541_v20  ;;  %v3385_v20 = vld [vmem:[#allocation21] ss:$0 sm:$0xff] }
0x16b8   : > { %3674 = vmatprep.mubr.msk.f32.mxu1 %vm4687_vm1, %v4688_v13 }
0x177e   : > { %v2525_v46 = vpop.f32.mrb[18].mxu1 }
0x177f   : > { %v3636_v48 = vpop.f32.mrb[19].mxu1 }
0x178a   : > { %v2625_v18 = vpop.f32.mrb[20].mxu1 }
0x178b   : > { %v3645_v49 = vpop.f32.mrb[21].mxu1  ;;  %v2629_v50 = vsel %vm2056_vm8, %v2625_v18, -inf }
0x178c   : > { %2630 = vmax.xlane.f32.xlu1 %v2629_v50  ;;  %v2942_v49 = vld [vmem:[%s5796_s1 + $0x38] sm:$0xff] }
0x179d   : > { %2647 = vrot.lane.b32.xlu1 %v5440_v47, %s5792_s29 }
0x17a1   : > { %2334 = vrot.lane.b32.xlu1 %v2329_v23, %s5793_s0  ;;  %s5797_s0 = sld [smem:[#allocation34_spill]] }
0x17a7   : > { %s912_s11 = sand.u32 1, %s5797_s0   ;;  %s5609_s0 = scalar_lea.hbm %s5800_s7, %s3391_s18 }
0x17a8   : > { %s3331_s26 = sshll.u32 %s912_s11, 3  ;;  %s3032_s13 = scalar_lea.sflag [#allocation5], %s912_s11 }
0x17a9   : > { %s914_s27 = scalar_lea.vmem [#allocation24], %s3331_s26  ;;  %s4695_s26 = smov [#allocation24]  }
0x17aa   : > { %s4527_s23 = sshll.u32 %s4695_s26, 4  ;;  %s4528_s23 = int_to_ptr.vmem [resolvable:$false] %s4527_s23 }
0x17ab   : > { %s4529_s12 = scalar_lea.vmem %s4528_s23, 256 }
0x1819   : > { %v2631_v51 = vpop.xlane.xlu1 %2630 }
0x181a   : > { %v2632_v52 = vsub.f32 %v2625_v18, %v2631_v51  ;;  %v2941_v18 = vld [vmem:[%s5796_s1 + $0x30] sm:$0xff]  ;;  %v2943_v51 = vld [vmem:[%s5796_s1 + $0x40] sm:$0xff] }
0x181b   : > { %v3808_v50 = vpack.c.bf16 %v2942_v49, %v2941_v18 }
0x181c   : > { %v2633_v53 = vmul.f32 1.442695, %v2632_v52  ;;  %v2944_v52 = vld [vmem:[%s5796_s1 + $0x48] sm:$0xff] }
0x181d   : > { %v2648_v54 = vpop.permute.xlu1 %2647 }
0x181e   : > { %4149 = vpow2.f32 %v2633_v53  ;;  %v3811_v53 = vpack.c.bf16 %v2944_v52, %v2943_v51 }
0x1821   : > { %v2335_v55 = vpop.permute.xlu1 %2334 }
0x1822   : > { %2337 = vst.msk [vmem:[#allocation2] sm:$0xff] %vm1401_vm5, %v2335_v55  ;;  %v2946_v55 = vld [vmem:[%s5796_s1 + $0x58] sm:$0xff] }
0x1828   : > { %v4150_v56 = vpop.eup %4149 }
0x1829   : > { %v2635_v57 = vsel %vm2056_vm8, %v4150_v56, 0.0 }
0x182a   : > { %2636 = vadd.xlane.f32.xlu0 %v2635_v57  ;;  %v2947_v57 = vld [vmem:[%s5796_s1 + $0x60] sm:$0xff] }
0x1840   : > { %4113 = vrot.lane.b32.xlu0 %v5468_v4, %s5792_s29  ;;  %v3787_v4 = vpack.c.bf16 %v2732_v3, %v2731_v2 }
0x1844   : > { %2530 = vrot.lane.b32.xlu0 %v2525_v46, %s5794_s21 }
0x18b7   : > { %v2637_v47 = vpop.xlane.xlu0 %2636 }
0x18b8   : > { %4151 = vrcp.f32 %v2637_v47  ;;  %v2948_v47 = vld [vmem:[%s5796_s1 + $0x68] sm:$0xff] }
0x18bb   : > { %v4114_v58 = vpop.permute.xlu0 %4113 }
0x18bc   : > { %v4116_v59 = vunpack.i.h.bf16 %v4114_v58  ;;  %v4115_v60 = vunpack.i.l.bf16 %v4114_v58  ;;  %v3817_v58 = vpack.c.bf16 %v2948_v47, %v2947_v57 }
0x18be   : > { %v3784_v61 = vpack.c.bf16 %v4116_v59, %v4115_v60  ;;  %v2949_v59 = vld [vmem:[%s5796_s1 + $0x70] sm:$0xff]  ;;  %v2950_v60 = vld [vmem:[%s5796_s1 + $0x78] sm:$0xff] }
0x18bf   : > { %v2531_v62 = vpop.permute.xlu0 %2530 }
0x18c0   : > { %2533 = vst.msk [vmem:[#allocation2] sm:$0xff] %vm1587_vm6, %v2531_v62  ;;  %3785 = vmatpush3.bf16.msra.mxu0 %v3784_v61  ;;  %v3820_v61 = vpack.c.bf16 %v2950_v60, %v2949_v59  ;;  %v3386_v62 = vld [vmem:[%s5798_s24] ss:$0 sm:$0xff]  ;;  %s3047_s24 = sshll.u32 %s914_s27, 4  ;;  %s5611_s24 = int_to_ptr.vmem [resolvable:$true] %s3047_s24 }
0x18c1   : > { %3650 = vmatprep.subr.mxu0 %v4688_v13  ;;  %s4523_s19 = scalar_lea.vmem %s5611_s24, 128  ;;  %p4530_p6 = scmp.lt.s32.totalorder %s5611_s24, %s4528_s23 }
0x18c2   : > { %v4152_v63 = vpop.eup %4151  ;;  %p4524_p9 = scmp.ne.s32.totalorder %s5611_s24, %s4523_s19  ;;  %p4531_p5 = scmp.lt.s32.totalorder %s4529_s12, %s4523_s19 }
0x18c3   : > { %v2639_v1 = vmul.f32 %v4152_v63, %v4150_v56 }
0x18c4   : > { %3651 = vmatpush3.msra.mxu0 %v2648_v54  ;;  %v2945_v54 = vld [vmem:[%s5796_s1 + $0x50] sm:$0xff]  ;;  %p4525_p4 = pnand %p4524_p9, %p5801_p12  ;;  %p4532_p11 = por %p4531_p5, %p4530_p6 }
0x18c5   : > { %3653 = vmatmul.mubr.msk.f32.vlgmr.msra.gmra.mrb[14].mxu0 %vm2056_vm8, %v2639_v1  ;;  %3786 = vmatprep.subr.bf16.mxu0 %v4686_v10  ;;  %v3814_v56 = vpack.c.bf16 %v2946_v55, %v2945_v54 }
0x18c6   : > { %3663 = vmatprep.mubr.msk.f32.mxu0 %vm4687_vm1, %v4688_v13  ;;  %3788 = vmatpush3.bf16.msra.mxu0 %v3787_v4  ;;  %p4526_p7 = pneg %p4525_p4 }
0x18c7   : > { %3789 = vmatprep.subr.bf16.mxu0 %v4686_v10 }
0x18c8   : > { %p4533_p1 = pnand %p4532_p11, %p4526_p7 }
0x18ca   : > { %3791 = vmatpush3.bf16.msra.mxu0 %v3790_v8 }
0x18cb   : > { %3798 = vmatprep.subr.bf16.mxu0 %v4686_v10 }
0x1998   : > { %v2721_v9 = vpop.f32.mrb[14].mxu0 }
0x1999   : > { %2726 = vrot.lane.b32.xlu1 %v2721_v9, %s5795_s9  ;;  %v3654_v11 = vpop.f32.mrb[15].mxu0  ;;  %s5799_s9 = sld [smem:[#allocation57_spill]] }
0x199f   : > { %v3388_v9 = vld [vmem:[%s5799_s9] ss:$0 sm:$0xff] }
0x1a0b   : > { %v2727_v12 = vpop.permute.xlu1 %2726 }
0x1a0c   : > { %2729 = vst.msk [vmem:[#allocation2] sm:$0xff] %vm1773_vm7, %v2727_v12 }
0x1a13   : > { %v2730_v0 = vld [vmem:[#allocation2] sm:$0xff] }
0x1a14   : > { %3664 = vmatmul.mubr.msk.f32.vlgmr.msra.gmra.mrb[16].mxu0 %vm941_vm0, %v2730_v0 }
0x1a15   : > { %3709 = vmatprep.mubr.msk.f32.mxu0 %vm4687_vm1, %v4688_v13  ;;  %v2846_v13 = vld [vmem:[#allocation23] sm:$0xff]  ;;  %3800 = vmatpush3.bf16.msra.mxu0 %v3799_v35 }
0x1a16   : > { %v3793_v29 = vpack.c.bf16 %v2847_v27, %v2846_v13  ;;  %3801 = vmatprep.subr.bf16.mxu0 %v4686_v10 }
0x1a18   : > { %3794 = vmatpush3.bf16.msra.mxu1 %v3793_v29 }
0x1a19   : > { %3795 = vmatprep.subr.bf16.mxu1 %v4686_v10  ;;  %3803 = vmatpush3.bf16.msra.mxu0 %v3802_v37 }
0x1a1a   : > { %3804 = vmatprep.subr.bf16.mxu0 %v4686_v10 }
0x1a1d   : > { %3806 = vmatpush3.bf16.msra.mxu0 %v3805_v39 }
0x1a1e   : > { %3807 = vmatprep.subr.bf16.mxu0 %v4686_v10 }
0x1a21   : > { %3809 = vmatpush3.bf16.msra.mxu0 %v3808_v50 }
0x1a22   : > { %3810 = vmatprep.subr.bf16.mxu0 %v4686_v10 }
0x1a25   : > { %3812 = vmatpush3.bf16.msra.mxu0 %v3811_v53 }
0x1a26   : > { %3813 = vmatprep.subr.bf16.mxu0 %v4686_v10 }
0x1a29   : > { %3815 = vmatpush3.bf16.msra.mxu0 %v3814_v56 }
0x1a2a   : > { %3816 = vmatprep.subr.bf16.mxu0 %v4686_v10 }
0x1a2d   : > { %3818 = vmatpush3.bf16.msra.mxu0 %v3817_v58 }
0x1a2e   : > { %3819 = vmatprep.subr.bf16.mxu0 %v4686_v10 }
0x1a31   : > { %3821 = vmatpush3.bf16.msra.mxu0 %v3820_v61 }
0x1ae7   : > { %v2804_v14 = vpop.f32.mrb[16].mxu0 }
0x1ae8   : > { %v2808_v16 = vadd.f32 %v2804_v14, %v5383_v5  ;;  %v3665_v17 = vpop.f32.mrb[17].mxu0  ;;  %v2848_v5 = vld [vmem:[#allocation23 + $0x10] sm:$0xff] }
0x1ae9   : > { %v3796_v30 = vpack.c.bf16 %v2849_v28, %v2848_v5 }
0x1aea   : > { %v5533_v19 = vadd.f32 %v3383_v15, %v2808_v16 }
0x1aeb   : > { %3797 = vmatpush3.bf16.msra.mxu1 %v3796_v30 }
0x1aec   : > { %v2819_v21 = vsel %vm941_vm0, %v5533_v19, 0.0 }
0x1aed   : > { %2820 = vadd.xlane.f32.xlu0 %v2819_v21 }
0x1b7a   : > { %v2821_v22 = vpop.xlane.xlu0 %2820 }
0x1b7b   : > { %v2822_v23 = vmul.f32 0.03125, %v2821_v22 }
0x1b7d   : > { %v2823_v24 = vsub.f32 %v5533_v19, %v2822_v23 }
0x1b7f   : > { %v2824_v25 = vmul.f32 %v2823_v24, %v2823_v24 }
0x1b81   : > { %v2825_v26 = vsel %vm941_vm0, %v2824_v25, 0.0 }
0x1b82   : > { %2826 = vadd.xlane.f32.xlu1 %v2825_v26 }
0x1c0f   : > { %v2827_v40 = vpop.xlane.xlu1 %2826 }
0x1c10   : > { %v2828_v41 = vmul.f32 0.03125, %v2827_v40 }
0x1c12   : > { %v2829_v42 = vadd.f32 1e-05, %v2828_v41 }
0x1c14   : > { %4153 = vrsqrt.f32 %v2829_v42 }
0x1c1e   : > { %v4154_v43 = vpop.eup %4153 }
0x1c1f   : > { %v2831_v45 = vmul.f32 %v4154_v43, %v2823_v24 }
0x1c21   : > { %v2838_v46 = vmul.f32 %v3384_v44, %v2831_v45 }
0x1c23   : > { %v2845_v48 = vadd.f32 %v3385_v20, %v2838_v46 }
0x1c25   : > { %3675 = vmatmul.mubr.msk.f32.vlgmr.msra.gmra.mrb[22].mxu1 %vm941_vm0, %v2845_v48 }
0x1cf8   : > { %v2926_v63 = vpop.f32.mrb[22].mxu1 }
0x1cf9   : > { %v2927_v1 = vadd.f32 %v3386_v62, %v2926_v63  ;;  %v3676_v10 = vpop.f32.mrb[23].mxu1 }
0x1cfb   : > { %v2931_v2 = vmul.f32 0.70710677, %v2927_v1  ;;  %v2930_v4 = vmul.f32 0.5, %v2927_v1 }
0x1cfd   : > { %4155 = verf.f32 %v2931_v2 }
0x1d07   : > { %v4156_v3 = vpop.eup %4155 }
0x1d08   : > { %v2933_v6 = vadd.f32 1.0, %v4156_v3 }
0x1d0a   : > { %v2934_v7 = vmul.f32 %v2933_v6, %v2930_v4 }
0x1d0c   : > { %3710 = vmatmul.mubr.f32.vlgmr.msra.gmra.mrb[18].mxu0 %v2934_v7 }
0x1ddf   : > { %v3017_v8 = vpop.f32.mrb[18].mxu0 }
0x1de0   : > { %v3021_v11 = vadd.f32 %v3017_v8, %v5533_v19  ;;  %v3711_v12 = vpop.f32.mrb[19].mxu0 }
0x1de2   : > { %v3029_v0 = vadd.f32 %v3388_v9, %v3021_v11 }
0x1de4   : > { %3030 = vst.msk [vmem:[%s914_s27] sm:$0xff] %vm941_vm0, %v3029_v0 }
0x1de5   : > { %4536 = shalt.err (!%p4533_p1)
}
0x1de6   : > { %s4537_s6 = scalar_lea.hbm %s5609_s0, 128  ;;  %s4541_s29 = scalar_lea.hbm %s5800_s7, 512 }
0x1de7   : > { %p4538_p13 = scmp.ne.s32.totalorder %s5609_s0, %s4537_s6  ;;  %p4542_p2 = scmp.lt.u32.totalorder %s5609_s0, %s5800_s7 }
0x1de8   : > { %p4543_p10 = scmp.lt.u32.totalorder %s4541_s29, %s4537_s6  ;;  %p4545_p9 = scmp.lt.u32.totalorder %s4537_s6, %s5609_s0 }
0x1de9   : > { %p4539_p0 = pnand %p4538_p13, %p5801_p12 }
0x1dea   : > { %p4544_p8 = por %p4543_p10, %p4542_p2 }
0x1deb   : > { %p4540_p3 = pneg %p4539_p0 }
0x1dec   : > { %p4546_p4 = por %p4545_p9, %p4544_p8 }
0x1dee   : > { %p4547_p7 = pnand %p4546_p4, %p4540_p3 }
0x1df0   : > { %4550 = shalt.err (!%p4547_p7)
}
0x1df1   : > { %3873 = dma.vmem_to_hbm [thread:$0]  (%p5801_p12), %s5611_s24, 128, %s5609_s0, %s3032_s13  }
0x1df2 PF: > { %s5802_s18 = sld [smem:[#allocation33_spill]]  ;;  %p3945_p6 = scmp.ge.s32.totalorder %s4669_s5, 2 }
0x1df3   : > { %p5803_p5 = scmp.ne.s32.totalorder %s5776_s10, 0 }
0x1df5   : > { %p3917_p11 = pnand %p3945_p6, %p5803_p5 }
0x1df8   : > { %s3059_s27 = sand.u32 1, %s5802_s18  }
0x1df9   : > { %s3060_s19 = scalar_lea.sflag [#allocation5], %s3059_s27 }
0x1dfa   : > { %4624 = dma.done.wait (!%p3917_p11), %s3060_s19, 128  }
0x1dfb   : > { %4626 = vsyncadd (!%p3917_p11), %s3060_s19, 4294967168  ;;  %s43_s5 = sadd.s32 1, %s4669_s5   ;;  %s5804_s26 = sld [smem:[#allocation34_spill]] }
0x1dfc   : > { %p40_p1 = scmp.ge.s32.totalorder %s43_s5, 6   ;;  %s5805_s23 = sld [smem:[#allocation35_spill]] }
0x1dfd   : > { %s5806_s20 = smov %s5819_s2  ;;  %s5807_s24 = smov %s5823_s25 }
0x1dfe   : > { %s5811_s27 = smov %s4645_s3  ;;  %s5812_s3 = smov %s4649_s28 }
0x1dff   : > { %s5813_s28 = smov %s5164_s8  ;;  %s5814_s29 = smov %s4661_s4 }
0x1e00   : > { %s5815_s0 = smov %s4665_s30  ;;  %s5816_s4 = smov %s5806_s20 }
0x1e01   : > { %s5808_s2 = smov %s5804_s26  ;;  %s5810_s26 = smov %s5825_s22 }
0x1e02   : > { %s5809_s25 = smov %s5805_s23  ;;  %s5817_s30 = smov %s5807_s24 }
0x1e03   :  { %42 = sbr.rel (!%p40_p1) target bundleno = 35 (0x23), region = 209 }
0x1e0a   :  { %3065 = vsyncpa [#allocation4], 1 }
0x1e0b   :  { %3067 = vsyncpa [#allocation4 + $0x1], 1 }
0x1e0c   :  { %3068 = vsyncpa [#allocation7], 1 }
0x1e0d   :  { %3069 = vsyncpa [#allocation10], 1 }
0x1e0e   :  { %3070 = vsyncpa [#allocation13], 1 }
0x1e0f   :  { %3071 = vsyncpa [#allocation16], 1 }
0x1e10   :  { %3072 = vsyncpa [#allocation19], 1 }
0x1e11   :  { %3073 = vsyncpa [#allocation22], 1 }
0x1e12   :  { %3074 = vsyncpa [#allocation5], 1 }
0x1e13   :  { %3076 = vsyncpa [#allocation5 + $0x1], 1 }

// kernel: tpu_custom_call.1
= control target key start
LH: loop header
LB: loop body
LE: loop exit
PB: predicated region body
PF: predicated region fallthrough
CT: control target
= control target key end

     0   :  { %s5672_s0 = inlined_call_operand.vmem [shape: f32[2,16,32], index: 0, kind: input, shape index: {}]   ;;  %s5673_s1 = inlined_call_operand.vmem [shape: f32[2,16,32], index: 1, kind: input, shape index: {}]   ;;  %s5674_s2 = inlined_call_operand.hbm [shape: f32[2,16,32], index: 2, kind: input, shape index: {}]   ;;  %s5675_s3 = inlined_call_operand.vmem [shape: f32[2,24,32], index: 3, kind: input, shape index: {}]   ;;  %s5676_s4 = inlined_call_operand.vmem [shape: f32[2,24,32], index: 4, kind: input, shape index: {}]   ;;  %s5677_s5 = inlined_call_operand.hbm [shape: f32[1,32], index: 5, kind: input, shape index: {}]   ;;  %s5678_s6 = inlined_call_operand.hbm [shape: f32[1,32], index: 6, kind: input, shape index: {}]   ;;  %s5679_s7 = inlined_call_operand.hbm [shape: f32[32,32], index: 7, kind: input, shape index: {}]   ;;  %s5680_s8 = inlined_call_operand.hbm [shape: f32[32,32], index: 8, kind: input, shape index: {}]   ;;  %s5681_s9 = inlined_call_operand.hbm [shape: f32[1,32], index: 9, kind: input, shape index: {}]   ;;  %s5682_s10 = inlined_call_operand.hbm [shape: f32[1,32], index: 10, kind: input, shape index: {}]   ;;  %s5683_s11 = inlined_call_operand.hbm [shape: f32[1,32], index: 11, kind: input, shape index: {}]   ;;  %s5684_s12 = inlined_call_operand.vmem [shape: f32[32,32], index: 12, kind: input, shape index: {}]   ;;  %s5685_s13 = inlined_call_operand.hbm [shape: f32[32,32], index: 13, kind: input, shape index: {}]   ;;  %s5686_s14 = inlined_call_operand.hbm [shape: f32[1,32], index: 14, kind: input, shape index: {}]   ;;  %s5687_s15 = inlined_call_operand.hbm [shape: f32[1,32], index: 15, kind: input, shape index: {}]   ;;  %s5688_s16 = inlined_call_operand.hbm [shape: f32[1,32], index: 16, kind: input, shape index: {}]   ;;  %s5689_s17 = inlined_call_operand.hbm [shape: f32[32,128], index: 17, kind: input, shape index: {}]   ;;  %s5690_s18 = inlined_call_operand.vmem [shape: f32[1,128], index: 18, kind: input, shape index: {}]   ;;  %s5691_s19 = inlined_call_operand.vmem [shape: f32[128,32], index: 19, kind: input, shape index: {}]   ;;  %s5692_s20 = inlined_call_operand.vmem [shape: f32[1,32], index: 20, kind: input, shape index: {}]   ;;  %s5693_s21 = inlined_call_operand.hbm [shape: f32[2,16,32], index: 21, kind: output, shape index: {}]  }
   0x1   :  { %5725 = sst [smem:[#allocation40_spill]] %s5672_s0 }
   0x2   :  { %5726 = sst [smem:[#allocation41_spill]] %s5673_s1 }
   0x3   :  { %5727 = sst [smem:[#allocation42_spill]] %s5674_s2 }
   0x4   :  { %5728 = sst [smem:[#allocation43_spill]] %s5675_s3 }
   0x5   :  { %5729 = sst [smem:[#allocation44_spill]] %s5676_s4 }
   0x6   :  { %5730 = sst [smem:[#allocation45_spill]] %s5677_s5 }
   0x7   :  { %5731 = sst [smem:[#allocation46_spill]] %s5678_s6 }
   0x8   :  { %5732 = sst [smem:[#allocation47_spill]] %s5679_s7 }
   0x9   :  { %5733 = sst [smem:[#allocation48_spill]] %s5680_s8 }
   0xa   :  { %5734 = sst [smem:[#allocation49_spill]] %s5681_s9 }
   0xb   :  { %5735 = sst [smem:[#allocation50_spill]] %s5682_s10 }
   0xc   :  { %5736 = sst [smem:[#allocation51_spill]] %s5683_s11 }
   0xd   :  { %5737 = sst [smem:[#allocation52_spill]] %s5684_s12 }
   0xe   :  { %5738 = sst [smem:[#allocation53_spill]] %s5685_s13 }
   0xf   :  { %5739 = sst [smem:[#allocation54_spill]] %s5689_s17 }
  0x10   :  { %5740 = sst [smem:[#allocation55_spill]] %s5690_s18 }
  0x11   :  { %5741 = sst [smem:[#allocation56_spill]] %s5691_s19 }
  0x12   :  { %5742 = sst [smem:[#allocation57_spill]] %s5692_s20 }
  0x13   :  { %5743 = sst [smem:[#allocation58_spill]] %s5693_s21 }
  0x14   :  { %26 = vsyncpa [#allocation4], 0 }
  0x15   :  { %28 = vsyncpa [#allocation4 + $0x1], 0 }
  0x16   :  { %29 = vsyncpa [#allocation7], 0 }
  0x17   :  { %30 = vsyncpa [#allocation10], 0 }
  0x18   :  { %31 = vsyncpa [#allocation13], 0 }
  0x19   :  { %32 = vsyncpa [#allocation16], 0 }
  0x1a   :  { %33 = vsyncpa [#allocation19], 0 }
  0x1b   :  { %34 = vsyncpa [#allocation22], 0 }
  0x1c   :  { %35 = vsyncpa [#allocation5], 0 }
  0x1d   :  { %37 = vsyncpa [#allocation5 + $0x1], 0  ;;  %s4806_s2 = smov 0   ;;  %s4808_s25 = smov 0  }
  0x1e   :  { %s4810_s26 = smov 0   ;;  %s4812_s27 = smov 0  }
  0x1f   :  { %s4814_s3 = smov 0   ;;  %s4816_s28 = smov 0  }
  0x20   :  { %s4818_s29 = smov 0   ;;  %s4820_s0 = smov 0  }
  0x21   :  { %s4822_s4 = smov 0   ;;  %s4824_s30 = smov 0  }
  0x22   :  { %s4826_s5 = smov 0  }
  0x23 LB: > { %5744 = sst [smem:[#allocation33_spill]] %s4629_s2  ;;  %s5697_s22 = sadd.s32 4294967295, %s4669_s5   ;;  %s4669_s5 = sphi %s4826_s5, %s43_s5   ;;  %s4665_s30 = sphi %s4824_s30, %s5817_s30   ;;  %s4661_s4 = sphi %s4822_s4, %s5816_s4   ;;  %s4657_s0 = sphi %s4820_s0, %s5815_s0   ;;  %s4653_s29 = sphi %s4818_s29, %s5814_s29   ;;  %s4649_s28 = sphi %s4816_s28, %s5813_s28   ;;  %s4645_s3 = sphi %s4814_s3, %s5812_s3   ;;  %s4641_s27 = sphi %s4812_s27, %s5811_s27   ;;  %s4637_s26 = sphi %s4810_s26, %s5810_s26   ;;  %s4633_s25 = sphi %s4808_s25, %s5809_s25   ;;  %s4629_s2 = sphi %s4806_s2, %s5808_s2  }
  0x24   : > { %5745 = sst [smem:[#allocation34_spill]] %s4633_s25  ;;  %p3300_p0 = scmp.ge.s32.totalorder %s4669_s5, 1 }
  0x25   : > { %5746 = sst [smem:[#allocation35_spill]] %s4637_s26  ;;  %p4865_p1 = scmp.eq.s32.totalorder %s5697_s22, 0 }
  0x26   : > { %5747 = sst [smem:[#allocation36_spill]] %s4653_s29  ;;  %p556_p2 = scmp.lt.s32.totalorder %s4669_s5, 5 }
  0x27   : > { %5748 = sst [smem:[#allocation37_spill]] %s4657_s0  ;;  %s4671_s24 = smov [#allocation6]  }
  0x28   : > { %s5749_s23 = scalar_select %p4865_p1, 1, 0 }
  0x29   : > { %p4870_p3 = pnand %p3300_p0, %p556_p2  ;;  %s569_s21 = sshll.u32 %s4671_s24, 4  ;;  %s570_s21 = int_to_ptr.vmem [resolvable:$true] %s569_s21 }
  0x2a   : > { %5750 = sst [smem:[#allocation38_spill]] %s5749_s23  ;;  %s4672_s20 = smov [#allocation9]  }
  0x2b   : > { %s5751_s1 = scalar_select %p4870_p3, 1, 0 }
  0x2c   : > { %p3875_p4 = pneg %p4870_p3  ;;  %s590_s18 = sshll.u32 %s4672_s20, 4  ;;  %s4882_s18 = int_to_ptr.vmem [resolvable:$true] %s590_s18 }
  0x2d   : > { %5752 = sst [smem:[#allocation39_spill]] %s5751_s1  ;;  %s4673_s19 = smov [#allocation12]  }
  0x2e   : > { %p4878_p5 = pnand %p3875_p4, %p4865_p1  ;;  %s4884_s12 = sshll.u32 %s4673_s19, 4  ;;  %s618_s12 = int_to_ptr.vmem [resolvable:$true] %s4884_s12 }
  0x2f   : > { %s5754_s2 = sld [smem:[#allocation45_spill]] }
  0x30   : > { %p4894_p7 = pneg %p4878_p5 }
  0x35   : > { %s5755_s17 = smov %s5754_s2  ;;  %s4157_s24 = scalar_lea.hbm %s5754_s2, 16 }
  0x36   : > { %p4158_p6 = scmp.ne.s32.totalorder %s5755_s17, %s4157_s24  ;;  %p4164_p10 = scmp.lt.u32.totalorder %s4157_s24, %s5755_s17 }
  0x38   : > { %p4160_p8 = pnand %p4894_p7, %p4158_p6 }
  0x3a   : > { %p4161_p9 = pneg %p4160_p8 }
  0x3c   : > { %p4166_p11 = pnand %p4164_p10, %p4161_p9 }
  0x3e   : > { %4169 = shalt.err (!%p4166_p11)
}
  0x3f   : > { %s4170_s2 = scalar_lea.vmem %s570_s21, 16  ;;  %s4177_s25 = scalar_lea.vmem %s570_s21, 32 }
  0x40   : > { %p4171_p12 = scmp.ne.s32.totalorder %s570_s21, %s4170_s2  ;;  %p4178_p2 = scmp.lt.s32.totalorder %s570_s21, %s570_s21 }
  0x41   : > { %p4179_p4 = scmp.lt.s32.totalorder %s4177_s25, %s4170_s2 }
  0x42   : > { %p4173_p13 = pnand %p4171_p12, %p4894_p7 }
  0x43   : > { %p4180_p3 = por %p4179_p4, %p4178_p2 }
  0x44   : > { %p4174_p0 = pneg %p4173_p13 }
  0x46   : > { %p4181_p1 = pnand %p4180_p3, %p4174_p0 }
  0x48   : > { %4184 = shalt.err (!%p4181_p1)
}
  0x49   : > { %3878 = dma.hbm_to_vmem [thread:$0]  (!%p4878_p5), %s5755_s17, 16, %s570_s21, [#allocation7]  }
  0x4a   : > { %s5757_s7 = sld [smem:[#allocation47_spill]] }
  0x50   : > { %s4185_s24 = scalar_lea.hbm %s5757_s7, 512 }
  0x51   : > { %p4186_p6 = scmp.ne.s32.totalorder %s5757_s7, %s4185_s24  ;;  %p4192_p1 = scmp.lt.u32.totalorder %s4185_s24, %s5757_s7 }
  0x53   : > { %p4188_p8 = pnand %p4186_p6, %p4894_p7 }
  0x55   : > { %p4189_p9 = pneg %p4188_p8 }
  0x57   : > { %p4194_p3 = pnand %p4192_p1, %p4189_p9 }
  0x59   : > { %4197 = shalt.err (!%p4194_p3)
}
  0x5a   : > { %s4198_s21 = scalar_lea.vmem %s4882_s18, 512  ;;  %p4206_p13 = scmp.lt.s32.totalorder %s4882_s18, %s4882_s18 }
  0x5b   : > { %p4199_p10 = scmp.ne.s32.totalorder %s4882_s18, %s4198_s21  ;;  %p4207_p0 = scmp.lt.s32.totalorder %s4198_s21, %s4198_s21 }
  0x5d   : > { %p4201_p11 = pnand %p4199_p10, %p4894_p7  ;;  %p4208_p2 = por %p4207_p0, %p4206_p13 }
  0x5f   : > { %p4202_p12 = pneg %p4201_p11 }
  0x61   : > { %p4209_p4 = pnand %p4208_p2, %p4202_p12 }
  0x63   : > { %4212 = shalt.err (!%p4209_p4)
}
  0x64   : > { %s5712_s23 = smov 128   ;;  %s5714_s29 = smov 8  }
  0x65   : > { %3884 = dma.hbm_to_vmem [thread:$0]  (!%p4878_p5), %s5757_s7, 512, %s4882_s18, [#allocation10], %s5712_s23, %s5712_s23, %s5714_s29  }
  0x66   : > { %s5758_s9 = sld [smem:[#allocation49_spill]] }
  0x6c   : > { %s4213_s19 = scalar_lea.hbm %s5758_s9, 16 }
  0x6d   : > { %p4214_p6 = scmp.ne.s32.totalorder %s5758_s9, %s4213_s19  ;;  %p4220_p1 = scmp.lt.u32.totalorder %s4213_s19, %s5758_s9 }
  0x6f   : > { %p4216_p8 = pnand %p4214_p6, %p4894_p7 }
  0x71   : > { %p4217_p9 = pneg %p4216_p8 }
  0x73   : > { %p4222_p3 = pnand %p4220_p1, %p4217_p9 }
  0x75   : > { %4225 = shalt.err (!%p4222_p3)
}
  0x76   : > { %s4226_s0 = scalar_lea.vmem %s618_s12, 16  ;;  %s4233_s18 = scalar_lea.vmem %s618_s12, 32 }
  0x77   : > { %p4227_p10 = scmp.ne.s32.totalorder %s618_s12, %s4226_s0  ;;  %p4234_p13 = scmp.lt.s32.totalorder %s618_s12, %s618_s12 }
  0x78   : > { %p4235_p0 = scmp.lt.s32.totalorder %s4233_s18, %s4226_s0 }
  0x79   : > { %p4229_p11 = pnand %p4227_p10, %p4894_p7 }
  0x7a   : > { %p4236_p2 = por %p4235_p0, %p4234_p13 }
  0x7b   : > { %p4230_p12 = pneg %p4229_p11 }
  0x7d   : > { %p4237_p4 = pnand %p4236_p2, %p4230_p12 }
  0x7f   : > { %4240 = shalt.err (!%p4237_p4)
}
  0x80   : > { %3890 = dma.hbm_to_vmem [thread:$0]  (!%p4878_p5), %s5758_s9, 16, %s618_s12, [#allocation13]  }
  0x81   : > { %s4676_s17 = smov [#allocation15]   ;;  %s4677_s19 = smov [#allocation18]  }
  0x82   : > { %s639_s24 = sshll.u32 %s4676_s17, 4  ;;  %s666_s2 = sshll.u32 %s4677_s19, 4  ;;  %s640_s24 = int_to_ptr.vmem [resolvable:$true] %s639_s24  ;;  %s667_s2 = int_to_ptr.vmem [resolvable:$true] %s666_s2 }
  0x83   : > { %s5759_s11 = sld [smem:[#allocation51_spill]] }
  0x89   : > { %s4241_s23 = scalar_lea.hbm %s5759_s11, 16 }
  0x8a   : > { %p4242_p6 = scmp.ne.s32.totalorder %s5759_s11, %s4241_s23  ;;  %p4248_p1 = scmp.lt.u32.totalorder %s4241_s23, %s5759_s11 }
  0x8c   : > { %p4244_p8 = pnand %p4242_p6, %p4894_p7 }
  0x8e   : > { %p4245_p9 = pneg %p4244_p8 }
  0x90   : > { %p4250_p3 = pnand %p4248_p1, %p4245_p9 }
  0x92   : > { %4253 = shalt.err (!%p4250_p3)
}
  0x93   : > { %s4254_s12 = scalar_lea.vmem %s640_s24, 16  ;;  %s4261_s1 = scalar_lea.vmem %s640_s24, 32 }
  0x94   : > { %p4255_p10 = scmp.ne.s32.totalorder %s640_s24, %s4254_s12  ;;  %p4262_p13 = scmp.lt.s32.totalorder %s640_s24, %s640_s24 }
  0x95   : > { %p4263_p0 = scmp.lt.s32.totalorder %s4261_s1, %s4254_s12 }
  0x96   : > { %p4257_p11 = pnand %p4255_p10, %p4894_p7 }
  0x97   : > { %p4264_p2 = por %p4263_p0, %p4262_p13 }
  0x98   : > { %p4258_p12 = pneg %p4257_p11 }
  0x9a   : > { %p4265_p4 = pnand %p4264_p2, %p4258_p12 }
  0x9c   : > { %4268 = shalt.err (!%p4265_p4)
}
  0x9d   : > { %3896 = dma.hbm_to_vmem [thread:$0]  (!%p4878_p5), %s5759_s11, 16, %s640_s24, [#allocation16]  }
  0x9e   : > { %s4269_s25 = scalar_lea.hbm %s5686_s14, 16 }
  0x9f   : > { %p4270_p6 = scmp.ne.s32.totalorder %s5686_s14, %s4269_s25  ;;  %p4276_p1 = scmp.lt.u32.totalorder %s4269_s25, %s5686_s14 }
  0xa1   : > { %p4272_p8 = pnand %p4270_p6, %p4894_p7 }
  0xa3   : > { %p4273_p9 = pneg %p4272_p8 }
  0xa5   : > { %p4278_p3 = pnand %p4276_p1, %p4273_p9 }
  0xa7   : > { %4281 = shalt.err (!%p4278_p3)
}
  0xa8   : > { %s4282_s12 = scalar_lea.vmem %s667_s2, 16  ;;  %s4289_s24 = scalar_lea.vmem %s667_s2, 32 }
  0xa9   : > { %p4283_p10 = scmp.ne.s32.totalorder %s667_s2, %s4282_s12  ;;  %p4290_p13 = scmp.lt.s32.totalorder %s667_s2, %s667_s2 }
  0xaa   : > { %p4291_p0 = scmp.lt.s32.totalorder %s4289_s24, %s4282_s12 }
  0xab   : > { %p4285_p11 = pnand %p4283_p10, %p4894_p7 }
  0xac   : > { %p4292_p2 = por %p4291_p0, %p4290_p13 }
  0xad   : > { %p4286_p12 = pneg %p4285_p11 }
  0xaf   : > { %p4293_p4 = pnand %p4292_p2, %p4286_p12 }
  0xb1   : > { %4296 = shalt.err (!%p4293_p4)
}
  0xb2   : > { %3902 = dma.hbm_to_vmem [thread:$0]  (!%p4878_p5), %s5686_s14, 16, %s667_s2, [#allocation19]  }
  0xb3   : > { %s4678_s19 = smov [#allocation21]   ;;  %s4679_s29 = smov [#allocation8]  }
  0xb4   : > { %s688_s23 = sshll.u32 %s4678_s19, 4  ;;  %s580_s25 = sshll.u32 %s4679_s29, 4  ;;  %s689_s23 = int_to_ptr.vmem [resolvable:$true] %s688_s23  ;;  %s581_s25 = int_to_ptr.vmem [resolvable:$true] %s580_s25 }
  0xb5   : > { %s4297_s18 = scalar_lea.hbm %s5688_s16, 16 }
  0xb6   : > { %p4298_p6 = scmp.ne.s32.totalorder %s5688_s16, %s4297_s18  ;;  %p4304_p1 = scmp.lt.u32.totalorder %s4297_s18, %s5688_s16 }
  0xb8   : > { %p4300_p8 = pnand %p4298_p6, %p4894_p7 }
  0xba   : > { %p4301_p9 = pneg %p4300_p8 }
  0xbc   : > { %p4306_p3 = pnand %p4304_p1, %p4301_p9 }
  0xbe   : > { %4309 = shalt.err (!%p4306_p3)
}
  0xbf   : > { %s4310_s2 = scalar_lea.vmem %s689_s23, 16  ;;  %s4317_s17 = scalar_lea.vmem %s689_s23, 32 }
  0xc0   : > { %p4311_p10 = scmp.ne.s32.totalorder %s689_s23, %s4310_s2  ;;  %p4318_p13 = scmp.lt.s32.totalorder %s689_s23, %s689_s23 }
  0xc1   : > { %p4319_p0 = scmp.lt.s32.totalorder %s4317_s17, %s4310_s2 }
  0xc2   : > { %p4313_p11 = pnand %p4311_p10, %p4894_p7 }
  0xc3   : > { %p4320_p2 = por %p4319_p0, %p4318_p13 }
  0xc4   : > { %p4314_p12 = pneg %p4313_p11 }
  0xc6   : > { %p4321_p4 = pnand %p4320_p2, %p4314_p12 }
  0xc8   : > { %4324 = shalt.err (!%p4321_p4)
}
  0xc9   : > { %3908 = dma.hbm_to_vmem [thread:$0]  (!%p4878_p5), %s5688_s16, 16, %s689_s23, [#allocation22]  }
  0xca   : > { %s5760_s6 = sld [smem:[#allocation46_spill]] }
  0xd0   : > { %s4325_s18 = scalar_lea.hbm %s5760_s6, 16 }
  0xd1   : > { %p4326_p6 = scmp.ne.s32.totalorder %s5760_s6, %s4325_s18  ;;  %p4332_p1 = scmp.lt.u32.totalorder %s4325_s18, %s5760_s6 }
  0xd3   : > { %p4328_p8 = pnand %p4326_p6, %p4894_p7 }
  0xd5   : > { %p4329_p9 = pneg %p4328_p8 }
  0xd7   : > { %p4334_p3 = pnand %p4332_p1, %p4329_p9 }
  0xd9   : > { %4337 = shalt.err (!%p4334_p3)
}
  0xda   : > { %s4338_s2 = scalar_lea.vmem %s581_s25, 16  ;;  %s4345_s23 = scalar_lea.vmem %s581_s25, 32 }
  0xdb   : > { %p4339_p10 = scmp.ne.s32.totalorder %s581_s25, %s4338_s2  ;;  %p4346_p13 = scmp.lt.s32.totalorder %s581_s25, %s581_s25 }
  0xdc   : > { %p4347_p0 = scmp.lt.s32.totalorder %s4345_s23, %s4338_s2 }
  0xdd   : > { %p4341_p11 = pnand %p4339_p10, %p4894_p7 }
  0xde   : > { %p4348_p2 = por %p4347_p0, %p4346_p13 }
  0xdf   : > { %p4342_p12 = pneg %p4341_p11 }
  0xe1   : > { %p4349_p4 = pnand %p4348_p2, %p4342_p12 }
  0xe3   : > { %4352 = shalt.err (!%p4349_p4)
}
  0xe4   : > { %3881 = dma.hbm_to_vmem [thread:$0]  (!%p4878_p5), %s5760_s6, 16, %s581_s25, [#allocation7]  }
  0xe5   : > { %s4680_s29 = smov [#allocation11]   ;;  %s4681_s0 = smov [#allocation14]  }
  0xe6   : > { %s603_s21 = sshll.u32 %s4680_s29, 4  ;;  %s628_s18 = sshll.u32 %s4681_s0, 4  ;;  %s604_s21 = int_to_ptr.vmem [resolvable:$true] %s603_s21  ;;  %s629_s18 = int_to_ptr.vmem [resolvable:$true] %s628_s18 }
  0xe7   : > { %s5761_s8 = sld [smem:[#allocation48_spill]] }
  0xed   : > { %s4353_s24 = scalar_lea.hbm %s5761_s8, 512 }
  0xee   : > { %p4354_p6 = scmp.ne.s32.totalorder %s5761_s8, %s4353_s24  ;;  %p4360_p1 = scmp.lt.u32.totalorder %s4353_s24, %s5761_s8 }
  0xf0   : > { %p4356_p8 = pnand %p4354_p6, %p4894_p7 }
  0xf2   : > { %p4357_p9 = pneg %p4356_p8 }
  0xf4   : > { %p4362_p3 = pnand %p4360_p1, %p4357_p9 }
  0xf6   : > { %4365 = shalt.err (!%p4362_p3)
}
  0xf7   : > { %s4366_s25 = scalar_lea.vmem %s604_s21, 512  ;;  %p4374_p13 = scmp.lt.s32.totalorder %s604_s21, %s604_s21 }
  0xf8   : > { %p4367_p10 = scmp.ne.s32.totalorder %s604_s21, %s4366_s25  ;;  %p4375_p0 = scmp.lt.s32.totalorder %s4366_s25, %s4366_s25 }
  0xfa   : > { %p4369_p11 = pnand %p4367_p10, %p4894_p7  ;;  %p4376_p2 = por %p4375_p0, %p4374_p13 }
  0xfc   : > { %p4370_p12 = pneg %p4369_p11 }
  0xfe   : > { %p4377_p4 = pnand %p4376_p2, %p4370_p12 }
 0x100   : > { %4380 = shalt.err (!%p4377_p4)
}
 0x101   : > { %s5762_s19 = smov 8   ;;  %s5763_s29 = smov 128  }
 0x102   : > { %3887 = dma.hbm_to_vmem [thread:$0]  (!%p4878_p5), %s5761_s8, 512, %s604_s21, [#allocation10], %s5763_s29, %s5763_s29, %s5762_s19  }
 0x103   : > { %s5764_s10 = sld [smem:[#allocation50_spill]] }
 0x109   : > { %s4381_s1 = scalar_lea.hbm %s5764_s10, 16 }
 0x10a   : > { %p4382_p6 = scmp.ne.s32.totalorder %s5764_s10, %s4381_s1  ;;  %p4388_p1 = scmp.lt.u32.totalorder %s4381_s1, %s5764_s10 }
 0x10c   : > { %p4384_p8 = pnand %p4382_p6, %p4894_p7 }
 0x10e   : > { %p4385_p9 = pneg %p4384_p8 }
 0x110   : > { %p4390_p3 = pnand %p4388_p1, %p4385_p9 }
 0x112   : > { %4393 = shalt.err (!%p4390_p3)
}
 0x113   : > { %s4394_s0 = scalar_lea.vmem %s629_s18, 16  ;;  %s4401_s21 = scalar_lea.vmem %s629_s18, 32 }
 0x114   : > { %p4395_p10 = scmp.ne.s32.totalorder %s629_s18, %s4394_s0  ;;  %p4402_p13 = scmp.lt.s32.totalorder %s629_s18, %s629_s18 }
 0x115   : > { %p4403_p0 = scmp.lt.s32.totalorder %s4401_s21, %s4394_s0 }
 0x116   : > { %p4397_p11 = pnand %p4395_p10, %p4894_p7 }
 0x117   : > { %p4404_p2 = por %p4403_p0, %p4402_p13 }
 0x118   : > { %p4398_p12 = pneg %p4397_p11 }
 0x11a   : > { %p4405_p4 = pnand %p4404_p2, %p4398_p12 }
 0x11c   : > { %4408 = shalt.err (!%p4405_p4)
}
 0x11d   : > { %3893 = dma.hbm_to_vmem [thread:$0]  (!%p4878_p5), %s5764_s10, 16, %s629_s18, [#allocation13]  }
 0x11e   : > { %s4682_s24 = smov [#allocation17]   ;;  %s4683_s2 = smov [#allocation20]  }
 0x11f   : > { %s652_s1 = sshll.u32 %s4682_s24, 4  ;;  %s677_s23 = sshll.u32 %s4683_s2, 4  ;;  %s653_s1 = int_to_ptr.vmem [resolvable:$true] %s652_s1  ;;  %s678_s23 = int_to_ptr.vmem [resolvable:$true] %s677_s23 }
 0x120   : > { %s5765_s13 = sld [smem:[#allocation53_spill]] }
 0x126   : > { %s4409_s6 = scalar_lea.hbm %s5765_s13, 512 }
 0x127   : > { %p4410_p6 = scmp.ne.s32.totalorder %s5765_s13, %s4409_s6  ;;  %p4416_p1 = scmp.lt.u32.totalorder %s4409_s6, %s5765_s13 }
 0x129   : > { %p4412_p8 = pnand %p4410_p6, %p4894_p7 }
 0x12b   : > { %p4413_p9 = pneg %p4412_p8 }
 0x12d   : > { %p4418_p3 = pnand %p4416_p1, %p4413_p9 }
 0x12f   : > { %4421 = shalt.err (!%p4418_p3)
}
 0x130   : > { %s4422_s18 = scalar_lea.vmem %s653_s1, 512  ;;  %p4430_p13 = scmp.lt.s32.totalorder %s653_s1, %s653_s1 }
 0x131   : > { %p4423_p10 = scmp.ne.s32.totalorder %s653_s1, %s4422_s18  ;;  %p4431_p0 = scmp.lt.s32.totalorder %s4422_s18, %s4422_s18 }
 0x133   : > { %p4425_p11 = pnand %p4423_p10, %p4894_p7  ;;  %p4432_p2 = por %p4431_p0, %p4430_p13 }
 0x135   : > { %p4426_p12 = pneg %p4425_p11 }
 0x137   : > { %p4433_p4 = pnand %p4432_p2, %p4426_p12 }
 0x139   : > { %4436 = shalt.err (!%p4433_p4)
}
 0x13a   : > { %3899 = dma.hbm_to_vmem [thread:$0]  (!%p4878_p5), %s5765_s13, 512, %s653_s1, [#allocation16], %s5763_s29, %s5763_s29, %s5762_s19  }
 0x13b   : > { %s4437_s2 = scalar_lea.hbm %s5687_s15, 16 }
 0x13c   : > { %p4438_p6 = scmp.ne.s32.totalorder %s5687_s15, %s4437_s2  ;;  %p4444_p1 = scmp.lt.u32.totalorder %s4437_s2, %s5687_s15 }
 0x13e   : > { %p4440_p8 = pnand %p4438_p6, %p4894_p7 }
 0x140   : > { %p4441_p9 = pneg %p4440_p8 }
 0x142   : > { %p4446_p3 = pnand %p4444_p1, %p4441_p9 }
 0x144   : > { %4449 = shalt.err (!%p4446_p3)
}
 0x145   : > { %s4450_s26 = scalar_lea.vmem %s678_s23, 16  ;;  %s4457_s1 = scalar_lea.vmem %s678_s23, 32 }
 0x146   : > { %p4451_p10 = scmp.ne.s32.totalorder %s678_s23, %s4450_s26  ;;  %p4458_p13 = scmp.lt.s32.totalorder %s678_s23, %s678_s23 }
 0x147   : > { %p4459_p0 = scmp.lt.s32.totalorder %s4457_s1, %s4450_s26 }
 0x148   : > { %p4453_p11 = pnand %p4451_p10, %p4894_p7 }
 0x149   : > { %p4460_p2 = por %p4459_p0, %p4458_p13 }
 0x14a   : > { %p4454_p12 = pneg %p4453_p11 }
 0x14c   : > { %p4461_p4 = pnand %p4460_p2, %p4454_p12 }
 0x14e   : > { %4464 = shalt.err (!%p4461_p4)
}
 0x14f   : > { %3905 = dma.hbm_to_vmem [thread:$0]  (!%p4878_p5), %s5687_s15, 16, %s678_s23, [#allocation19]  }
 0x150   : > { %s4684_s6 = smov [#allocation23]   ;;  %s5766_s17 = sld [smem:[#allocation54_spill]] }
 0x151   : > { %s698_s12 = sshll.u32 %s4684_s6, 4  ;;  %s699_s12 = int_to_ptr.vmem [resolvable:$true] %s698_s12 }
 0x156   : > { %s4465_s25 = scalar_lea.hbm %s5766_s17, 512 }
 0x157   : > { %p4466_p6 = scmp.ne.s32.totalorder %s5766_s17, %s4465_s25  ;;  %p4472_p1 = scmp.lt.u32.totalorder %s4465_s25, %s5766_s17 }
 0x159   : > { %p4468_p8 = pnand %p4466_p6, %p4894_p7 }
 0x15b   : > { %p4469_p9 = pneg %p4468_p8 }
 0x15d   : > { %p4474_p3 = pnand %p4472_p1, %p4469_p9 }
 0x15f   : > { %4477 = shalt.err (!%p4474_p3)
}
 0x160   : > { %s4478_s23 = scalar_lea.vmem %s699_s12, 512  ;;  %p4486_p13 = scmp.lt.s32.totalorder %s699_s12, %s699_s12 }
 0x161   : > { %p4479_p10 = scmp.ne.s32.totalorder %s699_s12, %s4478_s23  ;;  %p4487_p0 = scmp.lt.s32.totalorder %s4478_s23, %s4478_s23 }
 0x163   : > { %p4481_p11 = pnand %p4479_p10, %p4894_p7  ;;  %p4488_p2 = por %p4487_p0, %p4486_p13 }
 0x165   : > { %p4482_p12 = pneg %p4481_p11 }
 0x167   : > { %p4489_p4 = pnand %p4488_p2, %p4482_p12 }
 0x169   : > { %4492 = shalt.err (!%p4489_p4)
}
 0x16a   : > { %s5767_s20 = sld [smem:[#allocation38_spill]]  ;;  %s5768_s22 = sld [smem:[#allocation35_spill]] }
 0x16b   : > { %3911 = dma.hbm_to_vmem [thread:$0]  (!%p4878_p5), %s5766_s17, 512, %s699_s12, [#allocation22], %s5763_s29, %s5763_s29, %s5762_s19  }
 0x16c   : > { %s3299_s6 = sadd.s32 4294967294, %s4669_s5   ;;  %s5769_s24 = sld [smem:[#allocation34_spill]] }
 0x16d   : > { %s52_s2 = sadd.s32 1, %s4661_s4  ;;  %s55_s25 = sadd.s32 1, %s4665_s30 }
 0x16e   : > { %p53_p7 = scmp.ge.s32.totalorder %s52_s2, 2  ;;  %s116_s0 = sadd.s32 1, %s4649_s28 }
 0x16f   : > { %p123_p6 = scmp.ne.s32.totalorder %s4649_s28, %s4645_s3  ;;  %p124_p8 = scmp.eq.s32.totalorder %s4669_s5, 0 }
 0x170   : > { %s5819_s2 = smov (%p53_p7, %s52_s2), 0  ;;  %s5821_s25 = smov (!%p53_p7, %s55_s25), %s4665_s30 }
 0x171   : > { %p129_p9 = scmp.ne.s32.totalorder %s4645_s3, %s4641_s27  ;;  %s5770_s12 = sld [smem:[#allocation33_spill]] }
 0x172   : > { %p57_p5 = scmp.ge.s32.totalorder %s5821_s25, 2  ;;  %s528_s21 = ssub.s32 %s4661_s4, %s5819_s2 }
 0x173   : > { %p5140_p1 = por %p124_p8, %p123_p6  ;;  %p5772_p3 = scmp.ne.s32.totalorder %s5767_s20, 0 }
 0x174   : > { %s5823_s25 = smov (%p57_p5, %s5821_s25), 0  ;;  %s532_s23 = sadd.s32 1, %s5768_s22 }
 0x175   : > { %p5146_p10 = por %p5772_p3, %p129_p9  ;;  %p542_p11 = scmp.ne.s32.totalorder %s5768_s22, %s5769_s24 }
 0x176   : > { %s113_s27 = ssub.s32 %s4665_s30, %s5823_s25  ;;  %s5774_s18 = sadd.s32 4294967295, %s4669_s5  }
 0x177   : > { %p543_p12 = scmp.eq.s32.totalorder %s5774_s18, 3  ;;  %p114_p13 = scmp.eq.s32.totalorder %s113_s27, 0 }
 0x178   : > { %s529_s7 = sor.u32 %s528_s21, %s113_s27  ;;  %p548_p4 = scmp.ne.s32.totalorder %s5769_s24, %s5770_s12 }
 0x179   : > { %p530_p0 = scmp.eq.s32.totalorder %s529_s7, 0  ;;  %p5159_p2 = por %p543_p12, %p542_p11 }
 0x17a   : > { %s5164_s8 = scalar_select %p114_p13, %s4649_s28, %s116_s0  }
 0x17b   : > { %s5775_s20 = scalar_select %p5159_p2, 1, 0 }
 0x17c   : > { %s5825_s22 = smov (!%p530_p0, %s5768_s22), %s532_s23  ;;  %p549_p7 = scmp.eq.s32.totalorder %s3299_s6, 3 }
 0x17d   : > { %p3932_p6 = scmp.lt.s32.totalorder %s4669_s5, 4  ;;  %s740_s9 = sand.u32 1, %s4649_s28  }
 0x17e   : > { %p5173_p8 = por %p549_p7, %p548_p4  ;;  %s3314_s18 = sshll.u32 %s740_s9, 4 }
 0x17f   : > { %s3394_s11 = sshll.u32 %s4665_s30, 8  ;;  %s5777_s7 = sld [smem:[#allocation42_spill]] }
 0x180   : > { %s5776_s10 = scalar_select %p5173_p8, 1, 0 }
 0x181   : > { %s744_s0 = scalar_lea.vmem [#allocation3], %s3314_s18  ;;  %p5185_p9 = pnand %p3932_p6, %p5140_p1 }
 0x182   : > { %s751_s24 = sshll.u32 %s744_s0, 4  ;;  %s5191_s12 = scalar_lea.sflag [#allocation4], %s740_s9  ;;  %s5189_s24 = int_to_ptr.vmem [resolvable:$true] %s751_s24 }
 0x183   : > { %p4495_p3 = pneg %p5185_p9 }
 0x185   : > { %s5181_s13 = scalar_lea.hbm %s5777_s7, %s3394_s11  ;;  %s4498_s18 = scalar_lea.hbm %s5777_s7, 512 }
 0x186   : > { %s4493_s23 = scalar_lea.hbm %s5181_s13, 256  ;;  %p4499_p1 = scmp.lt.u32.totalorder %s5181_s13, %s5777_s7 }
 0x187   : > { %p4494_p5 = scmp.ne.s32.totalorder %s5181_s13, %s4493_s23  ;;  %p4500_p13 = scmp.lt.u32.totalorder %s4498_s18, %s4493_s23 }
 0x188   : > { %p4502_p4 = scmp.lt.u32.totalorder %s4493_s23, %s5181_s13 }
 0x189   : > { %p4496_p11 = pnand %p4495_p3, %p4494_p5  ;;  %p4501_p0 = por %p4500_p13, %p4499_p1 }
 0x18b   : > { %p4497_p12 = pneg %p4496_p11  ;;  %p4503_p7 = por %p4502_p4, %p4501_p0 }
 0x18d   : > { %p4504_p6 = pnand %p4503_p7, %p4497_p12 }
 0x18f   : > { %4507 = shalt.err (!%p4504_p6)
}
 0x190   : > { %s4508_s9 = scalar_lea.vmem %s5189_s24, 256  ;;  %s4685_s0 = smov [#allocation3]  }
 0x191   : > { %p4509_p5 = scmp.ne.s32.totalorder %s5189_s24, %s4508_s9  ;;  %s4513_s11 = sshll.u32 %s4685_s0, 4  ;;  %s4514_s11 = int_to_ptr.vmem [resolvable:$false] %s4513_s11 }
 0x192   : > { %s4515_s26 = scalar_lea.vmem %s4514_s11, 512  ;;  %p4516_p2 = scmp.lt.s32.totalorder %s5189_s24, %s4514_s11 }
 0x193   : > { %p4511_p11 = pnand %p4509_p5, %p4495_p3  ;;  %p4517_p1 = scmp.lt.s32.totalorder %s4515_s26, %s4508_s9 }
 0x195   : > { %p4512_p8 = pneg %p4511_p11  ;;  %p4518_p13 = por %p4517_p1, %p4516_p2 }
 0x197   : > { %p4519_p0 = pnand %p4518_p13, %p4512_p8 }
 0x199   : > { %4522 = shalt.err (!%p4519_p0)
}
 0x19a   : > { %3915 = dma.hbm_to_vmem [thread:$0]  (!%p5185_p9), %s5181_s13, 256, %s5189_s24, %s5191_s12, %s5763_s29, %s5763_s29, %s5762_s19  }
 0x19b   : > { %s5779_s23 = sld [smem:[#allocation39_spill]] }
 0x1a1   : > { %p5780_p3 = scmp.ne.s32.totalorder %s5779_s23, 0 }
 0x1a2   : > { %s781_s18 = sand.u32 (!%p5780_p3), 1, %s4645_s3  }
 0x1a3   : > { %779 = sbr.rel (%p5780_p3) target bundleno = 7666 (0x1df2), region = 104  ;;  %s5225_s21 = sshll.u32 (!%p5780_p3), %s781_s18, 4 }
 0x1a4   : > { %s782_s27 = scalar_lea.sflag (!%p5780_p3), [#allocation4], %s781_s18  ;;  %s785_s9 = scalar_lea.vmem (!%p5780_p3), [#allocation3], %s5225_s21 }
 0x1aa   : > { %4596 = dma.done.wait (%p5146_p10), %s782_s27, 256  }
 0x1ab   : > { %4598 = vsyncadd (%p5146_p10), %s782_s27, 4294967040  ;;  %s5781_s6 = sld [smem:[#allocation38_spill]] }
 0x1b1   : > { %p5782_p2 = scmp.ne.s32.totalorder %s5781_s6, 0 }
 0x1b3   : > { %4600 = dma.done.wait (%p5782_p2), [#allocation7], 32  }
 0x1b4   : > { %4602 = vsyncadd (%p5782_p2), [#allocation7], 4294967264 }
 0x1b5   : > { %4604 = dma.done.wait (%p5782_p2), [#allocation10], 1024  }
 0x1b6   : > { %4606 = vsyncadd (%p5782_p2), [#allocation10], 4294966272 }
 0x1b7   : > { %4608 = dma.done.wait (%p5782_p2), [#allocation13], 32  }
 0x1b8   : > { %4610 = vsyncadd (%p5782_p2), [#allocation13], 4294967264 }
 0x1b9   : > { %4612 = dma.done.wait (%p5782_p2), [#allocation16], 528  }
 0x1ba   : > { %4614 = vsyncadd (%p5782_p2), [#allocation16], 4294966768 }
 0x1bb   : > { %4616 = dma.done.wait (%p5782_p2), [#allocation19], 32  }
 0x1bc   : > { %4618 = vsyncadd (%p5782_p2), [#allocation19], 4294967264 }
 0x1bd   : > { %4620 = dma.done.wait (%p5782_p2), [#allocation22], 528  }
 0x1be   : > { %4622 = vsyncadd (%p5782_p2), [#allocation22], 4294966768  ;;  %s5783_s13 = sld [smem:[#allocation37_spill]]  ;;  %s5784_s19 = sld [smem:[#allocation36_spill]]  ;;  %vm941_vm0 = vcmask 261120   ;;  %v970_v7 = vld [vmem:[#allocation9] sm:$0xff] }
 0x1bf   : > { %s5785_s23 = sld [smem:[#allocation40_spill]]  ;;  %v971_v8 = vld [vmem:[#allocation9 + $0x8] sm:$0xff]  ;;  %v972_v9 = vld [vmem:[#allocation9 + $0x10] sm:$0xff]  ;;  %v4686_v10 = vmov 0.0|0.0   ;;  %v973_v12 = vld [vmem:[#allocation9 + $0x18] sm:$0xff]  ;;  %vm4687_vm1 = vmmov 0  }
 0x1c0   : > { %3712 = vmatprep.subr.bf16.mxu0 %v4686_v10  ;;  %v3713_v11 = vpack.c.bf16 %v971_v8, %v970_v7  ;;  %v4688_v13 = vmov 0.0   ;;  %3718 = vmatprep.subr.bf16.mxu1 %v4686_v10  ;;  %v3716_v14 = vpack.c.bf16 %v973_v12, %v972_v9  ;;  %vm1051_vm2 = vcmask 64512   ;;  %v3338_v23 = vld [vmem:[#allocation6] ss:$0 sm:$0xff]  ;;  %v3339_v25 = vld [vmem:[#allocation8] ss:$0 sm:$0xff] }
 0x1c1   : > { %3502 = vmatprep.mubr.msk.f32.mxu0 %vm4687_vm1, %v4688_v13  ;;  %3509 = vmatprep.mubr.msk.f32.mxu1 %vm4687_vm1, %v4688_v13  ;;  %vm5286_vm3 = vmpackc.low %vm1051_vm2, %vm1051_vm2  ;;  %vm1131_vm4 = vcmask 130048   ;;  %v1049_v39 = vld [vmem:[%s785_s9] sm:$0xff]  ;;  %v1050_v40 = vld [vmem:[%s785_s9 + $0x8] sm:$0xff]  ;;  %s4690_s21 = smov 112   ;;  %s5720_s9 = smov 104   ;;  %vm1401_vm5 = vcmask 130112  }
 0x1c2   : > { %3714 = vmatpush3.bf16.msra.mxu0 %v3713_v11  ;;  %v3723_v41 = vpack.c.bf16 %v1050_v40, %v1049_v39  ;;  %v5331_v60 = vpack.i.bf16 %v1050_v40, %v1049_v39  ;;  %s5718_s11 = smov 16   ;;  %s5719_s26 = smov 8   ;;  %vm1587_vm6 = vcmask 195712   ;;  %vm1773_vm7 = vcmask 261312  }
 0x1c3   : > { %3715 = vmatprep.subr.bf16.mxu0 %v4686_v10  ;;  %s5789_s6 = sld [smem:[#allocation52_spill]]  ;;  %vm2056_vm8 = vcmask 195584   ;;  %s5800_s7 = sld [smem:[#allocation58_spill]] }
 0x1c4   : > { %p915_p10 = scmp.lt.s32.totalorder %s5783_s13, 1  ;;  %p917_p8 = scmp.lt.s32.totalorder %s5784_s19, 1 }
 0x1c5   : > { %p5801_p12 = scmp.ne.s32.totalorder %s5775_s20, 0 }
 0x1c6   : > { %s5259_s29 = scalar_select %p915_p10, %s5783_s13, 1  ;;  %3717 = vmatpush3.bf16.msra.mxu0 %v3716_v14 }
 0x1c7   : > { %s918_s1 = scalar_select %p917_p8, %s5784_s19, 1  ;;  %3729 = vmatprep.subr.bf16.mxu0 %v4686_v10 }
 0x1c8   : > { %s3332_s24 = sshll.u32 %s5259_s29, 1  ;;  %s3395_s27 = sshll.u32 %s5259_s29, 4 }
 0x1c9   : > { %s920_s12 = sadd.s32 %s3332_s24, %s918_s1  ;;  %s5786_s24 = sld [smem:[#allocation41_spill]] }
 0x1ca   : > { %s3333_s0 = sshll.u32 %s920_s12, 3  ;;  %s5790_s1 = sld [smem:[#allocation43_spill]] }
 0x1cb   : > { %s922_s18 = scalar_lea.vmem %s5785_s23, %s3333_s0  ;;  %s4689_s0 = smov 120  }
 0x1cc   : > { %v5266_v0 = vld [vmem:[%s922_s18] sm:$0xff]  ;;  %s5717_s23 = smov 24  }
 0x1cd   : > { %v942_v1 = vsel %vm941_vm0, %v5266_v0, 0.0 }
 0x1ce   : > { %943 = vadd.xlane.f32.xlu0 %v942_v1 }
 0x1cf   : > { %s927_s12 = scalar_lea.vmem %s5786_s24, %s3395_s27 }
 0x1d0   : > { %v1047_v15 = vld [vmem:[%s927_s12] sm:$0xff]  ;;  %v1048_v16 = vld [vmem:[%s927_s12 + $0x8] sm:$0xff] }
 0x1d1   : > { %v3719_v17 = vpack.c.bf16 %v1048_v16, %v1047_v15  ;;  %v5303_v33 = vpack.i.bf16 %v1048_v16, %v1047_v15 }
 0x1d3   : > { %3721 = vmatpush3.bf16.xpose.msk.msra.mxu1 %vm5286_vm3, %v3719_v17 }
 0x1d4   : > { %3722 = vmatprep.subr.bf16.mxu1 %v4686_v10 }
 0x25b   : > { %v944_v2 = vpop.xlane.xlu0 %943 }
 0x25c   : > { %v946_v3 = vmul.f32 0.03125, %v944_v2 }
 0x25e   : > { %v947_v4 = vsub.f32 %v5266_v0, %v946_v3 }
 0x260   : > { %v948_v5 = vmul.f32 %v947_v4, %v947_v4 }
 0x262   : > { %v949_v6 = vsel %vm941_vm0, %v948_v5, 0.0 }
 0x263   : > { %950 = vadd.xlane.f32.xlu0 %v949_v6 }
 0x279   : > { %4058 = vrot.lane.b32.xlu0 %v5303_v33, %s4689_s0 }
 0x2f0   : > { %v951_v19 = vpop.xlane.xlu0 %950 }
 0x2f1   : > { %v952_v20 = vmul.f32 0.03125, %v951_v19 }
 0x2f3   : > { %v953_v21 = vadd.f32 1e-05, %v952_v20 }
 0x2f4   : > { %v4059_v43 = vpop.permute.xlu0 %4058 }
 0x2f5   : > { %4117 = vrsqrt.f32 %v953_v21  ;;  %v4061_v44 = vunpack.i.h.bf16 %v4059_v43  ;;  %v4060_v45 = vunpack.i.l.bf16 %v4059_v43 }
 0x2f7   : > { %v3726_v47 = vpack.c.bf16 %v4061_v44, %v4060_v45 }
 0x2ff   : > { %v4118_v22 = vpop.eup %4117 }
 0x300   : > { %v955_v24 = vmul.f32 %v4118_v22, %v947_v4 }
 0x302   : > { %v962_v26 = vmul.f32 %v3338_v23, %v955_v24 }
 0x304   : > { %v969_v27 = vadd.f32 %v3339_v25, %v962_v26 }
 0x306   : > { %3503 = vmatmul.mubr.msk.f32.vlgmr.msra.gmra.mrb[0].mxu0 %vm941_vm0, %v969_v27 }
 0x307   : > { %3530 = vmatprep.mubr.msk.f32.mxu0 %vm4687_vm1, %v4688_v13 }
 0x3d9   : > { %v5296_v28 = vpop.f32.mrb[0].mxu0 }
 0x3da   : > { %v3504_v29 = vpop.f32.mrb[1].mxu0  ;;  %3510 = vmatmul.mubr.msk.f32.vlgmr.msra.gmra.mrb[0].mxu1 %vm1051_vm2, %v5296_v28 }
 0x3db   : > { %3516 = vmatprep.mubr.msk.f32.mxu1 %vm4687_vm1, %v4688_v13  ;;  %3724 = vmatpush3.bf16.msra.mxu1 %v3723_v41 }
 0x3dc   : > { %3725 = vmatprep.subr.bf16.mxu1 %v4686_v10 }
 0x4ad   : > { %v1127_v30 = vpop.f32.mrb[0].mxu1 }
 0x4ae   : > { %v3511_v31 = vpop.f32.mrb[1].mxu1  ;;  %v1132_v32 = vsel %vm1131_vm4, %v1127_v30, -inf }
 0x4af   : > { %1133 = vmax.xlane.f32.xlu1 %v1132_v32 }
 0x53c   : > { %v1134_v34 = vpop.xlane.xlu1 %1133 }
 0x53d   : > { %v1135_v35 = vsub.f32 %v1127_v30, %v1134_v34 }
 0x53f   : > { %v1136_v36 = vmul.f32 1.442695, %v1135_v35 }
 0x541   : > { %4119 = vpow2.f32 %v1136_v36 }
 0x54b   : > { %v4120_v37 = vpop.eup %4119 }
 0x54c   : > { %v1138_v38 = vsel %vm1131_vm4, %v4120_v37, 0.0 }
 0x54d   : > { %1139 = vadd.xlane.f32.xlu1 %v1138_v38 }
 0x55e   : > { %1221 = vrot.lane.b32.xlu1 %v5296_v28, %s4689_s0 }
 0x5da   : > { %v1140_v42 = vpop.xlane.xlu1 %1139 }
 0x5db   : > { %4121 = vrcp.f32 %v1140_v42 }
 0x5de   : > { %v1222_v49 = vpop.permute.xlu1 %1221 }
 0x5e5   : > { %v4122_v46 = vpop.eup %4121 }
 0x5e6   : > { %v1142_v48 = vmul.f32 %v4122_v46, %v4120_v37 }
 0x5e8   : > { %3517 = vmatmul.mubr.msk.f32.vlgmr.msra.gmra.mrb[2].mxu1 %vm1131_vm4, %v1142_v48 }
 0x5e9   : > { %3728 = vmatpush3.bf16.xpose.msk.msra.mxu1 %vm5286_vm3, %v3726_v47  ;;  %3523 = vmatprep.mubr.msk.f32.mxu1 %vm4687_vm1, %v4688_v13 }
 0x5ea   : > { %3736 = vmatprep.subr.bf16.mxu1 %v4686_v10 }
 0x5f0   : > { %3524 = vmatmul.mubr.msk.f32.vlgmr.msra.gmra.mrb[4].mxu1 %vm1051_vm2, %v1222_v49 }
 0x5f1   : > { %3544 = vmatprep.mubr.msk.f32.mxu1 %vm4687_vm1, %v4688_v13 }
 0x6bb   : > { %v1212_v50 = vpop.f32.mrb[2].mxu1 }
 0x6bc   : > { %1216 = vst.msk [vmem:[#allocation2] sm:$0xff] %vm1051_vm2, %v1212_v50  ;;  %v3518_v51 = vpop.f32.mrb[3].mxu1 }
 0x6c3   : > { %v1301_v52 = vpop.f32.mrb[4].mxu1 }
 0x6c4   : > { %v3525_v53 = vpop.f32.mrb[5].mxu1  ;;  %v1305_v54 = vsel %vm1131_vm4, %v1301_v52, -inf }
 0x6c5   : > { %1306 = vmax.xlane.f32.xlu1 %v1305_v54  ;;  %v1776_v54 = vld [vmem:[#allocation11] sm:$0xff] }
 0x6d6   : > { %4068 = vrot.lane.b32.xlu1 %v5303_v33, %s4690_s21 }
 0x6da   : > { %1407 = vrot.lane.b32.xlu1 %v5296_v28, %s4690_s21 }
 0x752   : > { %v1307_v55 = vpop.xlane.xlu1 %1306 }
 0x753   : > { %v1308_v56 = vsub.f32 %v1301_v52, %v1307_v55  ;;  %v1777_v55 = vld [vmem:[#allocation11 + $0x8] sm:$0xff] }
 0x755   : > { %v1309_v57 = vmul.f32 1.442695, %v1308_v56  ;;  %v3747_v56 = vpack.c.bf16 %v1777_v55, %v1776_v54 }
 0x756   : > { %v4069_v3 = vpop.permute.xlu1 %4068 }
 0x757   : > { %4123 = vpow2.f32 %v1309_v57  ;;  %v4071_v4 = vunpack.i.h.bf16 %v4069_v3  ;;  %v4070_v5 = vunpack.i.l.bf16 %v4069_v3  ;;  %v1778_v57 = vld [vmem:[#allocation11 + $0x10] sm:$0xff] }
 0x759   : > { %v3733_v8 = vpack.c.bf16 %v4071_v4, %v4070_v5 }
 0x75a   : > { %v1408_v9 = vpop.permute.xlu1 %1407 }
 0x761   : > { %v4124_v58 = vpop.eup %4123 }
 0x762   : > { %v1311_v59 = vsel %vm1131_vm4, %v4124_v58, 0.0 }
 0x763   : > { %1312 = vadd.xlane.f32.xlu0 %v1311_v59 }
 0x779   : > { %4063 = vrot.lane.b32.xlu0 %v5331_v60, %s4689_s0 }
 0x7f0   : > { %v1313_v61 = vpop.xlane.xlu0 %1312 }
 0x7f1   : > { %4125 = vrcp.f32 %v1313_v61 }
 0x7f4   : > { %v4064_v62 = vpop.permute.xlu0 %4063 }
 0x7f5   : > { %v4066_v63 = vunpack.i.h.bf16 %v4064_v62  ;;  %v4065_v1 = vunpack.i.l.bf16 %v4064_v62 }
 0x7f7   : > { %v3730_v2 = vpack.c.bf16 %v4066_v63, %v4065_v1 }
 0x7f9   : > { %3731 = vmatpush3.bf16.msra.mxu0 %v3730_v2  ;;  %v3358_v2 = vld [vmem:[#allocation12] ss:$0 sm:$0xff] }
 0x7fa   : > { %3732 = vmatprep.subr.bf16.mxu0 %v4686_v10 }
 0x7fb   : > { %v4126_v6 = vpop.eup %4125 }
 0x7fc   : > { %v1315_v7 = vmul.f32 %v4126_v6, %v4124_v58  ;;  %v1779_v58 = vld [vmem:[#allocation11 + $0x18] sm:$0xff] }
 0x7fd   : > { %v3750_v59 = vpack.c.bf16 %v1779_v58, %v1778_v57 }
 0x7fe   : > { %3531 = vmatmul.mubr.msk.f32.vlgmr.msra.gmra.mrb[2].mxu0 %vm1131_vm4, %v1315_v7 }
 0x7ff   : > { %3537 = vmatprep.mubr.msk.f32.mxu0 %vm4687_vm1, %v4688_v13 }
 0x802   : > { %3735 = vmatpush3.bf16.xpose.msk.msra.mxu0 %vm5286_vm3, %v3733_v8 }
 0x803   : > { %3743 = vmatprep.subr.bf16.mxu0 %v4686_v10 }
 0x809   : > { %3538 = vmatmul.mubr.msk.f32.vlgmr.msra.gmra.mrb[4].mxu0 %vm1051_vm2, %v1408_v9 }
 0x80a   : > { %3558 = vmatprep.mubr.msk.f32.mxu0 %vm4687_vm1, %v4688_v13 }
 0x8d1   : > { %v1393_v11 = vpop.f32.mrb[2].mxu0 }
 0x8d2   : > { %v3532_v12 = vpop.f32.mrb[3].mxu0 }
 0x8dc   : > { %v1487_v14 = vpop.f32.mrb[4].mxu0 }
 0x8dd   : > { %v3539_v15 = vpop.f32.mrb[5].mxu0  ;;  %v1491_v16 = vsel %vm1131_vm4, %v1487_v14, -inf }
 0x8de   : > { %1492 = vmax.xlane.f32.xlu1 %v1491_v16  ;;  %v1893_v16 = vld [vmem:[%s5789_s6 + $0x10] sm:$0xff] }
 0x8ef   : > { %4078 = vrot.lane.b32.xlu1 %v5303_v33, %s5720_s9 }
 0x8f3   : > { %1593 = vrot.lane.b32.xlu1 %v5296_v28, %s5720_s9 }
 0x96b   : > { %v1493_v17 = vpop.xlane.xlu1 %1492 }
 0x96c   : > { %v1494_v19 = vsub.f32 %v1487_v14, %v1493_v17  ;;  %v1892_v14 = vld [vmem:[%s5789_s6 + $0x8] sm:$0xff]  ;;  %v1894_v17 = vld [vmem:[%s5789_s6 + $0x18] sm:$0xff] }
 0x96e   : > { %v1495_v20 = vmul.f32 1.442695, %v1494_v19  ;;  %v3756_v19 = vpack.c.bf16 %v1894_v17, %v1893_v16 }
 0x96f   : > { %v4079_v29 = vpop.permute.xlu1 %4078 }
 0x970   : > { %4127 = vpow2.f32 %v1495_v20  ;;  %v4081_v28 = vunpack.i.h.bf16 %v4079_v29  ;;  %v4080_v30 = vunpack.i.l.bf16 %v4079_v29 }
 0x972   : > { %v3740_v33 = vpack.c.bf16 %v4081_v28, %v4080_v30  ;;  %v3360_v28 = vld [vmem:[#allocation15] ss:$0 sm:$0xff] }
 0x973   : > { %v1594_v34 = vpop.permute.xlu1 %1593 }
 0x97a   : > { %v4128_v21 = vpop.eup %4127 }
 0x97b   : > { %v1497_v22 = vsel %vm1131_vm4, %v4128_v21, 0.0 }
 0x97c   : > { %1498 = vadd.xlane.f32.xlu0 %v1497_v22 }
 0x992   : > { %4073 = vrot.lane.b32.xlu0 %v5331_v60, %s4690_s21 }
 0xa09   : > { %v1499_v23 = vpop.xlane.xlu0 %1498 }
 0xa0a   : > { %4129 = vrcp.f32 %v1499_v23 }
 0xa0d   : > { %v4074_v24 = vpop.permute.xlu0 %4073 }
 0xa0e   : > { %v4076_v25 = vunpack.i.h.bf16 %v4074_v24  ;;  %v4075_v26 = vunpack.i.l.bf16 %v4074_v24 }
 0xa10   : > { %v3737_v27 = vpack.c.bf16 %v4076_v25, %v4075_v26  ;;  %v3359_v25 = vld [vmem:[#allocation14] ss:$0 sm:$0xff] }
 0xa12   : > { %3738 = vmatpush3.bf16.msra.mxu1 %v3737_v27 }
 0xa13   : > { %3739 = vmatprep.subr.bf16.mxu1 %v4686_v10 }
 0xa14   : > { %v4130_v31 = vpop.eup %4129 }
 0xa15   : > { %v1501_v32 = vmul.f32 %v4130_v31, %v4128_v21 }
 0xa17   : > { %3545 = vmatmul.mubr.msk.f32.vlgmr.msra.gmra.mrb[6].mxu1 %vm1131_vm4, %v1501_v32 }
 0xa18   : > { %3551 = vmatprep.mubr.msk.f32.mxu1 %vm4687_vm1, %v4688_v13 }
 0xa1b   : > { %3742 = vmatpush3.bf16.xpose.msk.msra.mxu1 %vm5286_vm3, %v3740_v33 }
 0xa1c   : > { %3752 = vmatprep.subr.bf16.mxu1 %v4686_v10 }
 0xa22   : > { %3552 = vmatmul.mubr.msk.f32.vlgmr.msra.gmra.mrb[8].mxu1 %vm1051_vm2, %v1594_v34 }
 0xa23   : > { %3580 = vmatprep.mubr.msk.f32.mxu1 %vm4687_vm1, %v4688_v13 }
 0xaea   : > { %v1579_v35 = vpop.f32.mrb[6].mxu1 }
 0xaeb   : > { %v3546_v36 = vpop.f32.mrb[7].mxu1 }
 0xaf5   : > { %v1673_v37 = vpop.f32.mrb[8].mxu1 }
 0xaf6   : > { %v3553_v38 = vpop.f32.mrb[9].mxu1  ;;  %v1677_v39 = vsel %vm1131_vm4, %v1673_v37, -inf }
 0xaf7   : > { %1678 = vmax.xlane.f32.xlu0 %v1677_v39 }
 0xb0d   : > { %4083 = vrot.lane.b32.xlu0 %v5331_v60, %s5720_s9  ;;  %s3822_s9 = smul.u32 24, %s5259_s29  ;;  %s5792_s29 = smov 104  }
 0xb0f   : > { %s932_s24 = scalar_lea.vmem %s5790_s1, %s3822_s9  ;;  %s5796_s1 = sld [smem:[#allocation56_spill]] }
 0xb10   : > { %v5409_v20 = vld [vmem:[%s932_s24 + $0x10] sm:$0xff]  ;;  %v1968_v27 = vld [vmem:[%s932_s24] sm:$0xff]  ;;  %v1969_v29 = vld [vmem:[%s932_s24 + $0x8] sm:$0xff]  ;;  %s5798_s24 = sld [smem:[#allocation55_spill]] }
 0xb11   : > { %1584 = vrot.lane.b32.xlu0 %v1579_v35, %s5718_s11  ;;  %v3759_v31 = vpack.c.bf16 %v1969_v29, %v1968_v27 }
 0xb84   : > { %v1679_v40 = vpop.xlane.xlu0 %1678 }
 0xb85   : > { %v1680_v41 = vsub.f32 %v1673_v37, %v1679_v40 }
 0xb87   : > { %v1681_v42 = vmul.f32 1.442695, %v1680_v41 }
 0xb88   : > { %v4084_v43 = vpop.permute.xlu0 %4083 }
 0xb89   : > { %4131 = vpow2.f32 %v1681_v42  ;;  %v4086_v44 = vunpack.i.h.bf16 %v4084_v43  ;;  %v4085_v45 = vunpack.i.l.bf16 %v4084_v43 }
 0xb8b   : > { %v3744_v46 = vpack.c.bf16 %v4086_v44, %v4085_v45 }
 0xb8c   : > { %v1585_v51 = vpop.permute.xlu0 %1584 }
 0xb8d   : > { %3745 = vmatpush3.bf16.msra.mxu0 %v3744_v46  ;;  %v5438_v46 = vpack.i.bf16 %v1969_v29, %v1968_v27 }
 0xb8e   : > { %3746 = vmatprep.subr.bf16.mxu0 %v4686_v10 }
 0xb93   : > { %v4132_v47 = vpop.eup %4131 }
 0xb94   : > { %v1683_v48 = vsel %vm1131_vm4, %v4132_v47, 0.0 }
 0xb95   : > { %1684 = vadd.xlane.f32.xlu1 %v1683_v48 }
 0xba6   : > { %1398 = vrot.lane.b32.xlu1 %v1393_v11, %s5719_s26 }
 0xc22   : > { %v1685_v49 = vpop.xlane.xlu1 %1684 }
 0xc23   : > { %4133 = vrcp.f32 %v1685_v49 }
 0xc26   : > { %v1399_v50 = vpop.permute.xlu1 %1398 }
 0xc27   : > { %1402 = vst.msk [vmem:[#allocation2] sm:$0xff] %vm1401_vm5, %v1399_v50 }
 0xc28   : > { %1588 = vst.msk [vmem:[#allocation2] sm:$0xff] %vm1587_vm6, %v1585_v51 }
 0xc2d   : > { %v4134_v52 = vpop.eup %4133 }
 0xc2e   : > { %v1687_v53 = vmul.f32 %v4134_v52, %v4132_v47 }
 0xc30   : > { %3559 = vmatmul.mubr.msk.f32.vlgmr.msra.gmra.mrb[6].mxu0 %vm1131_vm4, %v1687_v53 }
 0xc31   : > { %3569 = vmatprep.mubr.msk.f32.mxu0 %vm4687_vm1, %v4688_v13  ;;  %3748 = vmatpush3.bf16.msra.mxu0 %v3747_v56 }
 0xc32   : > { %3749 = vmatprep.subr.bf16.mxu0 %v4686_v10 }
 0xc35   : > { %3751 = vmatpush3.bf16.msra.mxu0 %v3750_v59 }
 0xc36   : > { %3769 = vmatprep.subr.bf16.mxu0 %v4686_v10 }
 0xd03   : > { %v1765_v60 = vpop.f32.mrb[6].mxu0 }
 0xd04   : > { %1770 = vrot.lane.b32.xlu1 %v1765_v60, %s5717_s23  ;;  %v3560_v61 = vpop.f32.mrb[7].mxu0  ;;  %s5791_s23 = sld [smem:[#allocation44_spill]] }
 0xd0a   : > { %s937_s12 = scalar_lea.vmem %s5791_s23, %s3822_s9  ;;  %s5795_s9 = smov 24  }
 0xd0b   : > { %v1971_v43 = vld [vmem:[%s937_s12] sm:$0xff]  ;;  %v1972_v44 = vld [vmem:[%s937_s12 + $0x8] sm:$0xff]  ;;  %v5440_v47 = vld [vmem:[%s937_s12 + $0x10] sm:$0xff]  ;;  %s3390_s23 = sshll.u32 %s5783_s13, 1 }
 0xd0c   : > { %v3763_v45 = vpack.c.bf16 %v1972_v44, %v1971_v43  ;;  %s3043_s12 = sadd.s32 %s5784_s19, %s3390_s23 }
 0xd0d   : > { %s3391_s18 = sshll.u32 %s3043_s12, 7 }
 0xd76   : > { %v1771_v62 = vpop.permute.xlu1 %1770 }
 0xd77   : > { %1774 = vst.msk [vmem:[#allocation2] sm:$0xff] %vm1773_vm7, %v1771_v62 }
 0xd7e   : > { %v1775_v63 = vld [vmem:[#allocation2] sm:$0xff] }
 0xd7f   : > { %3570 = vmatmul.mubr.msk.f32.vlgmr.msra.gmra.mrb[8].mxu0 %vm941_vm0, %v1775_v63 }
 0xd80   : > { %3616 = vmatprep.mubr.msk.f32.mxu0 %vm4687_vm1, %v4688_v13 }
 0xe52   : > { %v1849_v1 = vpop.f32.mrb[8].mxu0 }
 0xe53   : > { %v1853_v3 = vadd.f32 %v1849_v1, %v5266_v0  ;;  %v3571_v4 = vpop.f32.mrb[9].mxu0  ;;  %v1891_v0 = vld [vmem:[%s5789_s6] sm:$0xff] }
 0xe54   : > { %v3753_v15 = vpack.c.bf16 %v1892_v14, %v1891_v0  ;;  %v5468_v4 = vpack.i.bf16 %v1972_v44, %v1971_v43 }
 0xe55   : > { %v5383_v5 = vadd.f32 %v3358_v2, %v1853_v3 }
 0xe56   : > { %3754 = vmatpush3.bf16.msra.mxu1 %v3753_v15 }
 0xe57   : > { %v1864_v6 = vsel %vm941_vm0, %v5383_v5, 0.0  ;;  %3755 = vmatprep.subr.bf16.mxu1 %v4686_v10 }
 0xe58   : > { %1865 = vadd.xlane.f32.xlu0 %v1864_v6 }
 0xe5a   : > { %3757 = vmatpush3.bf16.msra.mxu1 %v3756_v19 }
 0xe5b   : > { %3758 = vmatprep.subr.bf16.mxu1 %v4686_v10 }
 0xee5   : > { %v1866_v7 = vpop.xlane.xlu0 %1865 }
 0xee6   : > { %v1867_v8 = vmul.f32 0.03125, %v1866_v7 }
 0xee8   : > { %v1868_v9 = vsub.f32 %v5383_v5, %v1867_v8 }
 0xeea   : > { %v1869_v11 = vmul.f32 %v1868_v9, %v1868_v9 }
 0xeec   : > { %v1870_v12 = vsel %vm941_vm0, %v1869_v11, 0.0 }
 0xeed   : > { %1871 = vadd.xlane.f32.xlu1 %v1870_v12 }
 0xefe   : > { %2157 = vrot.lane.b32.xlu1 %v5409_v20, %s4689_s0 }
 0xf7a   : > { %v1872_v21 = vpop.xlane.xlu1 %1871 }
 0xf7b   : > { %v1873_v22 = vmul.f32 0.03125, %v1872_v21 }
 0xf7d   : > { %v1874_v23 = vadd.f32 1e-05, %v1873_v22 }
 0xf7e   : > { %v2158_v55 = vpop.permute.xlu1 %2157 }
 0xf7f   : > { %4135 = vrsqrt.f32 %v1874_v23 }
 0xf89   : > { %v4136_v24 = vpop.eup %4135 }
 0xf8a   : > { %v1876_v26 = vmul.f32 %v4136_v24, %v1868_v9 }
 0xf8c   : > { %v1883_v30 = vmul.f32 %v3359_v25, %v1876_v26 }
 0xf8e   : > { %v1890_v32 = vadd.f32 %v3360_v28, %v1883_v30 }
 0xf90   : > { %3581 = vmatmul.mubr.msk.f32.vlgmr.msra.gmra.mrb[10].mxu1 %vm941_vm0, %v1890_v32 }
 0xf91   : > { %3761 = vmatpush3.bf16.xpose.msk.msra.mxu1 %vm5286_vm3, %v3759_v31  ;;  %3589 = vmatprep.mubr.msk.f32.mxu1 %vm4687_vm1, %v4688_v13 }
 0xf92   : > { %3587 = vmatprep.subr.mxu1 %v4688_v13 }
 0xf99   : > { %3588 = vmatpush3.xpose.msk.msra.mxu1 %vm1051_vm2, %v5409_v20 }
 0xf9a   : > { %3762 = vmatprep.subr.bf16.mxu1 %v4686_v10 }
0x1063   : > { %v5422_v33 = vpop.f32.mrb[10].mxu1 }
0x1064   : > { %2148 = vrot.lane.b32.xlu1 %v5422_v33, %s4689_s0  ;;  %v3582_v34 = vpop.f32.mrb[11].mxu1  ;;  %3590 = vmatmul.mubr.msk.f32.vlgmr.msra.gmra.mrb[12].mxu1 %vm1051_vm2, %v5422_v33 }
0x1065   : > { %3598 = vmatprep.mubr.msk.f32.mxu1 %vm4687_vm1, %v4688_v13  ;;  %3764 = vmatpush3.bf16.msra.mxu1 %v3763_v45 }
0x1066   : > { %3596 = vmatprep.subr.mxu1 %v4688_v13 }
0x1069   : > { %3597 = vmatpush3.msra.mxu1 %v5440_v47 }
0x106a   : > { %3765 = vmatprep.subr.bf16.mxu1 %v4686_v10 }
0x10d6   : > { %v2149_v56 = vpop.permute.xlu1 %2148 }
0x1137   : > { %v2052_v35 = vpop.f32.mrb[12].mxu1 }
0x1138   : > { %v3591_v36 = vpop.f32.mrb[13].mxu1  ;;  %v2057_v37 = vsel %vm2056_vm8, %v2052_v35, -inf }
0x1139   : > { %2058 = vmax.xlane.f32.xlu0 %v2057_v37 }
0x11c6   : > { %v2059_v38 = vpop.xlane.xlu0 %2058 }
0x11c7   : > { %v2060_v39 = vsub.f32 %v2052_v35, %v2059_v38 }
0x11c9   : > { %v2061_v40 = vmul.f32 1.442695, %v2060_v39 }
0x11cb   : > { %4137 = vpow2.f32 %v2061_v40 }
0x11d5   : > { %v4138_v41 = vpop.eup %4137 }
0x11d6   : > { %v2063_v42 = vsel %vm2056_vm8, %v4138_v41, 0.0 }
0x11d7   : > { %2064 = vadd.xlane.f32.xlu0 %v2063_v42 }
0x11ed   : > { %4088 = vrot.lane.b32.xlu0 %v5438_v46, %s4689_s0 }
0x1264   : > { %v2065_v48 = vpop.xlane.xlu0 %2064 }
0x1265   : > { %4139 = vrcp.f32 %v2065_v48 }
0x1268   : > { %v4089_v49 = vpop.permute.xlu0 %4088 }
0x1269   : > { %v4091_v50 = vunpack.i.h.bf16 %v4089_v49  ;;  %v4090_v51 = vunpack.i.l.bf16 %v4089_v49 }
0x126b   : > { %v3766_v53 = vpack.c.bf16 %v4091_v50, %v4090_v51 }
0x126f   : > { %v4140_v52 = vpop.eup %4139 }
0x1270   : > { %v2067_v54 = vmul.f32 %v4140_v52, %v4138_v41 }
0x1272   : > { %3599 = vmatmul.mubr.msk.f32.vlgmr.msra.gmra.mrb[14].mxu1 %vm2056_vm8, %v2067_v54 }
0x1273   : > { %3768 = vmatpush3.bf16.xpose.msk.msra.mxu1 %vm5286_vm3, %v3766_v53  ;;  %3607 = vmatprep.mubr.msk.f32.mxu1 %vm4687_vm1, %v4688_v13 }
0x1274   : > { %3605 = vmatprep.subr.mxu1 %v4688_v13 }
0x127b   : > { %3606 = vmatpush3.xpose.msk.msra.mxu1 %vm1051_vm2, %v2158_v55 }
0x127c   : > { %3776 = vmatprep.subr.bf16.mxu1 %v4686_v10 }
0x127e   : > { %3608 = vmatmul.mubr.msk.f32.vlgmr.msra.gmra.mrb[16].mxu1 %vm1051_vm2, %v2149_v56 }
0x127f   : > { %3634 = vmatprep.mubr.msk.f32.mxu1 %vm4687_vm1, %v4688_v13 }
0x1345   : > { %v2137_v57 = vpop.f32.mrb[14].mxu1 }
0x1346   : > { %2141 = vst.msk [vmem:[#allocation2] sm:$0xff] %vm1051_vm2, %v2137_v57  ;;  %v3600_v58 = vpop.f32.mrb[15].mxu1 }
0x1351   : > { %v2233_v59 = vpop.f32.mrb[16].mxu1 }
0x1352   : > { %v3609_v60 = vpop.f32.mrb[17].mxu1  ;;  %v2237_v61 = vsel %vm2056_vm8, %v2233_v59, -inf }
0x1353   : > { %2238 = vmax.xlane.f32.xlu1 %v2237_v61 }
0x1364   : > { %2255 = vrot.lane.b32.xlu1 %v5440_v47, %s4689_s0 }
0x1368   : > { %4098 = vrot.lane.b32.xlu1 %v5438_v46, %s4690_s21 }
0x136c   : > { %2344 = vrot.lane.b32.xlu1 %v5422_v33, %s4690_s21 }
0x1370   : > { %2451 = vrot.lane.b32.xlu1 %v5440_v47, %s4690_s21 }
0x13e0   : > { %v2239_v62 = vpop.xlane.xlu1 %2238 }
0x13e1   : > { %v2240_v63 = vsub.f32 %v2233_v59, %v2239_v62 }
0x13e3   : > { %v2241_v1 = vmul.f32 1.442695, %v2240_v63 }
0x13e4   : > { %v2256_v8 = vpop.permute.xlu1 %2255 }
0x13e5   : > { %4141 = vpow2.f32 %v2241_v1 }
0x13e8   : > { %v4099_v14 = vpop.permute.xlu1 %4098 }
0x13e9   : > { %v4101_v15 = vunpack.i.h.bf16 %v4099_v14  ;;  %v4100_v16 = vunpack.i.l.bf16 %v4099_v14 }
0x13eb   : > { %v3773_v19 = vpack.c.bf16 %v4101_v15, %v4100_v16  ;;  %v3383_v15 = vld [vmem:[#allocation18] ss:$0 sm:$0xff] }
0x13ec   : > { %v2345_v22 = vpop.permute.xlu1 %2344 }
0x13ef   : > { %v4142_v2 = vpop.eup %4141 }
0x13f0   : > { %v2243_v3 = vsel %vm2056_vm8, %v4142_v2, 0.0  ;;  %v2452_v36 = vpop.permute.xlu1 %2451 }
0x13f1   : > { %2244 = vadd.xlane.f32.xlu0 %v2243_v3  ;;  %v2732_v3 = vld [vmem:[#allocation17 + $0x8] sm:$0xff] }
0x1407   : > { %4093 = vrot.lane.b32.xlu0 %v5468_v4, %s4689_s0  ;;  %s5793_s0 = smov 8  }
0x140b   : > { %2353 = vrot.lane.b32.xlu0 %v5409_v20, %s4690_s21 }
0x147e   : > { %v2245_v6 = vpop.xlane.xlu0 %2244 }
0x147f   : > { %4143 = vrcp.f32 %v2245_v6  ;;  %v2733_v6 = vld [vmem:[#allocation17 + $0x10] sm:$0xff] }
0x1482   : > { %v4094_v7 = vpop.permute.xlu0 %4093 }
0x1483   : > { %v4096_v9 = vunpack.i.h.bf16 %v4094_v7  ;;  %v4095_v11 = vunpack.i.l.bf16 %v4094_v7  ;;  %v2734_v7 = vld [vmem:[#allocation17 + $0x18] sm:$0xff] }
0x1485   : > { %v3770_v12 = vpack.c.bf16 %v4096_v9, %v4095_v11 }
0x1486   : > { %v2354_v21 = vpop.permute.xlu0 %2353 }
0x1487   : > { %3771 = vmatpush3.bf16.msra.mxu0 %v3770_v12 }
0x1488   : > { %3614 = vmatprep.subr.mxu0 %v4688_v13 }
0x1489   : > { %v4144_v0 = vpop.eup %4143 }
0x148a   : > { %v2247_v17 = vmul.f32 %v4144_v0, %v4142_v2  ;;  %v2731_v2 = vld [vmem:[#allocation17] sm:$0xff] }
0x148b   : > { %3615 = vmatpush3.msra.mxu0 %v2256_v8  ;;  %v3790_v8 = vpack.c.bf16 %v2734_v7, %v2733_v6 }
0x148c   : > { %3617 = vmatmul.mubr.msk.f32.vlgmr.msra.gmra.mrb[10].mxu0 %vm2056_vm8, %v2247_v17  ;;  %3772 = vmatprep.subr.bf16.mxu0 %v4686_v10 }
0x148d   : > { %3625 = vmatprep.mubr.msk.f32.mxu0 %vm4687_vm1, %v4688_v13 }
0x1492   : > { %3775 = vmatpush3.bf16.xpose.msk.msra.mxu0 %vm5286_vm3, %v3773_v19 }
0x1493   : > { %3623 = vmatprep.subr.mxu0 %v4688_v13 }
0x149a   : > { %3624 = vmatpush3.xpose.msk.msra.mxu0 %vm1051_vm2, %v2354_v21 }
0x149b   : > { %3783 = vmatprep.subr.bf16.mxu0 %v4686_v10 }
0x149d   : > { %3626 = vmatmul.mubr.msk.f32.vlgmr.msra.gmra.mrb[12].mxu0 %vm1051_vm2, %v2345_v22 }
0x149e   : > { %3652 = vmatprep.mubr.msk.f32.mxu0 %vm4687_vm1, %v4688_v13 }
0x155f   : > { %v2329_v23 = vpop.f32.mrb[10].mxu0 }
0x1560   : > { %v3618_v24 = vpop.f32.mrb[11].mxu0 }
0x1570   : > { %v2429_v25 = vpop.f32.mrb[12].mxu0 }
0x1571   : > { %v3627_v26 = vpop.f32.mrb[13].mxu0  ;;  %v2433_v27 = vsel %vm2056_vm8, %v2429_v25, -inf }
0x1572   : > { %2434 = vmax.xlane.f32.xlu0 %v2433_v27  ;;  %v2847_v27 = vld [vmem:[#allocation23 + $0x8] sm:$0xff] }
0x1588   : > { %4103 = vrot.lane.b32.xlu0 %v5468_v4, %s4690_s21  ;;  %s5794_s21 = smov 16  }
0x158c   : > { %4108 = vrot.lane.b32.xlu0 %v5438_v46, %s5792_s29 }
0x1590   : > { %2540 = vrot.lane.b32.xlu0 %v5422_v33, %s5792_s29 }
0x15ff   : > { %v2435_v29 = vpop.xlane.xlu0 %2434 }
0x1600   : > { %v2436_v28 = vsub.f32 %v2429_v25, %v2435_v29 }
0x1602   : > { %v2437_v30 = vmul.f32 1.442695, %v2436_v28  ;;  %v2849_v28 = vld [vmem:[#allocation23 + $0x18] sm:$0xff] }
0x1603   : > { %v4104_v31 = vpop.permute.xlu0 %4103 }
0x1604   : > { %4145 = vpow2.f32 %v2437_v30  ;;  %v4106_v32 = vunpack.i.h.bf16 %v4104_v31  ;;  %v4105_v34 = vunpack.i.l.bf16 %v4104_v31  ;;  %v2935_v31 = vld [vmem:[%s5796_s1] sm:$0xff] }
0x1606   : > { %v3777_v35 = vpack.c.bf16 %v4106_v32, %v4105_v34  ;;  %v2936_v32 = vld [vmem:[%s5796_s1 + $0x8] sm:$0xff]  ;;  %v2937_v34 = vld [vmem:[%s5796_s1 + $0x10] sm:$0xff] }
0x1607   : > { %v4109_v39 = vpop.permute.xlu0 %4108 }
0x1608   : > { %3778 = vmatpush3.bf16.msra.mxu1 %v3777_v35  ;;  %v4111_v40 = vunpack.i.h.bf16 %v4109_v39  ;;  %v4110_v41 = vunpack.i.l.bf16 %v4109_v39  ;;  %v3799_v35 = vpack.c.bf16 %v2936_v32, %v2935_v31 }
0x1609   : > { %3632 = vmatprep.subr.mxu1 %v4688_v13 }
0x160a   : > { %v3780_v43 = vpack.c.bf16 %v4111_v40, %v4110_v41 }
0x160c   : > { %3633 = vmatpush3.msra.mxu1 %v2452_v36  ;;  %v2938_v36 = vld [vmem:[%s5796_s1 + $0x18] sm:$0xff] }
0x160d   : > { %3779 = vmatprep.subr.bf16.mxu1 %v4686_v10 }
0x160e   : > { %v4146_v37 = vpop.eup %4145 }
0x160f   : > { %v2439_v38 = vsel %vm2056_vm8, %v4146_v37, 0.0 }
0x1610   : > { %2440 = vadd.xlane.f32.xlu1 %v2439_v38  ;;  %v2939_v38 = vld [vmem:[%s5796_s1 + $0x20] sm:$0xff] }
0x1621   : > { %2549 = vrot.lane.b32.xlu1 %v5409_v20, %s5792_s29  ;;  %v2541_v20 = vpop.permute.xlu0 %2540 }
0x169d   : > { %v2441_v33 = vpop.xlane.xlu1 %2440 }
0x169e   : > { %4147 = vrcp.f32 %v2441_v33  ;;  %v2940_v33 = vld [vmem:[%s5796_s1 + $0x28] sm:$0xff] }
0x169f   : > { %v3805_v39 = vpack.c.bf16 %v2940_v33, %v2939_v38 }
0x16a1   : > { %v2550_v45 = vpop.permute.xlu1 %2549 }
0x16a8   : > { %v4148_v42 = vpop.eup %4147 }
0x16a9   : > { %v2443_v44 = vmul.f32 %v4148_v42, %v4146_v37  ;;  %v3802_v37 = vpack.c.bf16 %v2938_v36, %v2937_v34 }
0x16ab   : > { %3635 = vmatmul.mubr.msk.f32.vlgmr.msra.gmra.mrb[18].mxu1 %vm2056_vm8, %v2443_v44  ;;  %v3384_v44 = vld [vmem:[#allocation20] ss:$0 sm:$0xff] }
0x16ac   : > { %3782 = vmatpush3.bf16.xpose.msk.msra.mxu1 %vm5286_vm3, %v3780_v43  ;;  %3643 = vmatprep.mubr.msk.f32.mxu1 %vm4687_vm1, %v4688_v13 }
0x16ad   : > { %3641 = vmatprep.subr.mxu1 %v4688_v13 }
0x16b4   : > { %3642 = vmatpush3.xpose.msk.msra.mxu1 %vm1051_vm2, %v2550_v45 }
0x16b5   : > { %3792 = vmatprep.subr.bf16.mxu1 %v4686_v10 }
0x16b7   : > { %3644 = vmatmul.mubr.msk.f32.vlgmr.msra.gmra.mrb[20].mxu1 %vm1051_vm2, %v2541_v20  ;;  %v3385_v20 = vld [vmem:[#allocation21] ss:$0 sm:$0xff] }
0x16b8   : > { %3674 = vmatprep.mubr.msk.f32.mxu1 %vm4687_vm1, %v4688_v13 }
0x177e   : > { %v2525_v46 = vpop.f32.mrb[18].mxu1 }
0x177f   : > { %v3636_v48 = vpop.f32.mrb[19].mxu1 }
0x178a   : > { %v2625_v18 = vpop.f32.mrb[20].mxu1 }
0x178b   : > { %v3645_v49 = vpop.f32.mrb[21].mxu1  ;;  %v2629_v50 = vsel %vm2056_vm8, %v2625_v18, -inf }
0x178c   : > { %2630 = vmax.xlane.f32.xlu1 %v2629_v50  ;;  %v2942_v49 = vld [vmem:[%s5796_s1 + $0x38] sm:$0xff] }
0x179d   : > { %2647 = vrot.lane.b32.xlu1 %v5440_v47, %s5792_s29 }
0x17a1   : > { %2334 = vrot.lane.b32.xlu1 %v2329_v23, %s5793_s0  ;;  %s5797_s0 = sld [smem:[#allocation34_spill]] }
0x17a7   : > { %s912_s11 = sand.u32 1, %s5797_s0   ;;  %s5609_s0 = scalar_lea.hbm %s5800_s7, %s3391_s18 }
0x17a8   : > { %s3331_s26 = sshll.u32 %s912_s11, 3  ;;  %s3032_s13 = scalar_lea.sflag [#allocation5], %s912_s11 }
0x17a9   : > { %s914_s27 = scalar_lea.vmem [#allocation24], %s3331_s26  ;;  %s4695_s26 = smov [#allocation24]  }
0x17aa   : > { %s4527_s23 = sshll.u32 %s4695_s26, 4  ;;  %s4528_s23 = int_to_ptr.vmem [resolvable:$false] %s4527_s23 }
0x17ab   : > { %s4529_s12 = scalar_lea.vmem %s4528_s23, 256 }
0x1819   : > { %v2631_v51 = vpop.xlane.xlu1 %2630 }
0x181a   : > { %v2632_v52 = vsub.f32 %v2625_v18, %v2631_v51  ;;  %v2941_v18 = vld [vmem:[%s5796_s1 + $0x30] sm:$0xff]  ;;  %v2943_v51 = vld [vmem:[%s5796_s1 + $0x40] sm:$0xff] }
0x181b   : > { %v3808_v50 = vpack.c.bf16 %v2942_v49, %v2941_v18 }
0x181c   : > { %v2633_v53 = vmul.f32 1.442695, %v2632_v52  ;;  %v2944_v52 = vld [vmem:[%s5796_s1 + $0x48] sm:$0xff] }
0x181d   : > { %v2648_v54 = vpop.permute.xlu1 %2647 }
0x181e   : > { %4149 = vpow2.f32 %v2633_v53  ;;  %v3811_v53 = vpack.c.bf16 %v2944_v52, %v2943_v51 }
0x1821   : > { %v2335_v55 = vpop.permute.xlu1 %2334 }
0x1822   : > { %2337 = vst.msk [vmem:[#allocation2] sm:$0xff] %vm1401_vm5, %v2335_v55  ;;  %v2946_v55 = vld [vmem:[%s5796_s1 + $0x58] sm:$0xff] }
0x1828   : > { %v4150_v56 = vpop.eup %4149 }
0x1829   : > { %v2635_v57 = vsel %vm2056_vm8, %v4150_v56, 0.0 }
0x182a   : > { %2636 = vadd.xlane.f32.xlu0 %v2635_v57  ;;  %v2947_v57 = vld [vmem:[%s5796_s1 + $0x60] sm:$0xff] }
0x1840   : > { %4113 = vrot.lane.b32.xlu0 %v5468_v4, %s5792_s29  ;;  %v3787_v4 = vpack.c.bf16 %v2732_v3, %v2731_v2 }
0x1844   : > { %2530 = vrot.lane.b32.xlu0 %v2525_v46, %s5794_s21 }
0x18b7   : > { %v2637_v47 = vpop.xlane.xlu0 %2636 }
0x18b8   : > { %4151 = vrcp.f32 %v2637_v47  ;;  %v2948_v47 = vld [vmem:[%s5796_s1 + $0x68] sm:$0xff] }
0x18bb   : > { %v4114_v58 = vpop.permute.xlu0 %4113 }
0x18bc   : > { %v4116_v59 = vunpack.i.h.bf16 %v4114_v58  ;;  %v4115_v60 = vunpack.i.l.bf16 %v4114_v58  ;;  %v3817_v58 = vpack.c.bf16 %v2948_v47, %v2947_v57 }
0x18be   : > { %v3784_v61 = vpack.c.bf16 %v4116_v59, %v4115_v60  ;;  %v2949_v59 = vld [vmem:[%s5796_s1 + $0x70] sm:$0xff]  ;;  %v2950_v60 = vld [vmem:[%s5796_s1 + $0x78] sm:$0xff] }
0x18bf   : > { %v2531_v62 = vpop.permute.xlu0 %2530 }
0x18c0   : > { %2533 = vst.msk [vmem:[#allocation2] sm:$0xff] %vm1587_vm6, %v2531_v62  ;;  %3785 = vmatpush3.bf16.msra.mxu0 %v3784_v61  ;;  %v3820_v61 = vpack.c.bf16 %v2950_v60, %v2949_v59  ;;  %v3386_v62 = vld [vmem:[%s5798_s24] ss:$0 sm:$0xff]  ;;  %s3047_s24 = sshll.u32 %s914_s27, 4  ;;  %s5611_s24 = int_to_ptr.vmem [resolvable:$true] %s3047_s24 }
0x18c1   : > { %3650 = vmatprep.subr.mxu0 %v4688_v13  ;;  %s4523_s19 = scalar_lea.vmem %s5611_s24, 128  ;;  %p4530_p6 = scmp.lt.s32.totalorder %s5611_s24, %s4528_s23 }
0x18c2   : > { %v4152_v63 = vpop.eup %4151  ;;  %p4524_p9 = scmp.ne.s32.totalorder %s5611_s24, %s4523_s19  ;;  %p4531_p5 = scmp.lt.s32.totalorder %s4529_s12, %s4523_s19 }
0x18c3   : > { %v2639_v1 = vmul.f32 %v4152_v63, %v4150_v56 }
0x18c4   : > { %3651 = vmatpush3.msra.mxu0 %v2648_v54  ;;  %v2945_v54 = vld [vmem:[%s5796_s1 + $0x50] sm:$0xff]  ;;  %p4525_p4 = pnand %p4524_p9, %p5801_p12  ;;  %p4532_p11 = por %p4531_p5, %p4530_p6 }
0x18c5   : > { %3653 = vmatmul.mubr.msk.f32.vlgmr.msra.gmra.mrb[14].mxu0 %vm2056_vm8, %v2639_v1  ;;  %3786 = vmatprep.subr.bf16.mxu0 %v4686_v10  ;;  %v3814_v56 = vpack.c.bf16 %v2946_v55, %v2945_v54 }
0x18c6   : > { %3663 = vmatprep.mubr.msk.f32.mxu0 %vm4687_vm1, %v4688_v13  ;;  %3788 = vmatpush3.bf16.msra.mxu0 %v3787_v4  ;;  %p4526_p7 = pneg %p4525_p4 }
0x18c7   : > { %3789 = vmatprep.subr.bf16.mxu0 %v4686_v10 }
0x18c8   : > { %p4533_p1 = pnand %p4532_p11, %p4526_p7 }
0x18ca   : > { %3791 = vmatpush3.bf16.msra.mxu0 %v3790_v8 }
0x18cb   : > { %3798 = vmatprep.subr.bf16.mxu0 %v4686_v10 }
0x1998   : > { %v2721_v9 = vpop.f32.mrb[14].mxu0 }
0x1999   : > { %2726 = vrot.lane.b32.xlu1 %v2721_v9, %s5795_s9  ;;  %v3654_v11 = vpop.f32.mrb[15].mxu0  ;;  %s5799_s9 = sld [smem:[#allocation57_spill]] }
0x199f   : > { %v3388_v9 = vld [vmem:[%s5799_s9] ss:$0 sm:$0xff] }
0x1a0b   : > { %v2727_v12 = vpop.permute.xlu1 %2726 }
0x1a0c   : > { %2729 = vst.msk [vmem:[#allocation2] sm:$0xff] %vm1773_vm7, %v2727_v12 }
0x1a13   : > { %v2730_v0 = vld [vmem:[#allocation2] sm:$0xff] }
0x1a14   : > { %3664 = vmatmul.mubr.msk.f32.vlgmr.msra.gmra.mrb[16].mxu0 %vm941_vm0, %v2730_v0 }
0x1a15   : > { %3709 = vmatprep.mubr.msk.f32.mxu0 %vm4687_vm1, %v4688_v13  ;;  %v2846_v13 = vld [vmem:[#allocation23] sm:$0xff]  ;;  %3800 = vmatpush3.bf16.msra.mxu0 %v3799_v35 }
0x1a16   : > { %v3793_v29 = vpack.c.bf16 %v2847_v27, %v2846_v13  ;;  %3801 = vmatprep.subr.bf16.mxu0 %v4686_v10 }
0x1a18   : > { %3794 = vmatpush3.bf16.msra.mxu1 %v3793_v29 }
0x1a19   : > { %3795 = vmatprep.subr.bf16.mxu1 %v4686_v10  ;;  %3803 = vmatpush3.bf16.msra.mxu0 %v3802_v37 }
0x1a1a   : > { %3804 = vmatprep.subr.bf16.mxu0 %v4686_v10 }
0x1a1d   : > { %3806 = vmatpush3.bf16.msra.mxu0 %v3805_v39 }
0x1a1e   : > { %3807 = vmatprep.subr.bf16.mxu0 %v4686_v10 }
0x1a21   : > { %3809 = vmatpush3.bf16.msra.mxu0 %v3808_v50 }
0x1a22   : > { %3810 = vmatprep.subr.bf16.mxu0 %v4686_v10 }
0x1a25   : > { %3812 = vmatpush3.bf16.msra.mxu0 %v3811_v53 }
0x1a26   : > { %3813 = vmatprep.subr.bf16.mxu0 %v4686_v10 }
0x1a29   : > { %3815 = vmatpush3.bf16.msra.mxu0 %v3814_v56 }
0x1a2a   : > { %3816 = vmatprep.subr.bf16.mxu0 %v4686_v10 }
0x1a2d   : > { %3818 = vmatpush3.bf16.msra.mxu0 %v3817_v58 }
0x1a2e   : > { %3819 = vmatprep.subr.bf16.mxu0 %v4686_v10 }
0x1a31   : > { %3821 = vmatpush3.bf16.msra.mxu0 %v3820_v61 }
0x1ae7   : > { %v2804_v14 = vpop.f32.mrb[16].mxu0 }
0x1ae8   : > { %v2808_v16 = vadd.f32 %v2804_v14, %v5383_v5  ;;  %v3665_v17 = vpop.f32.mrb[17].mxu0  ;;  %v2848_v5 = vld [vmem:[#allocation23 + $0x10] sm:$0xff] }
0x1ae9   : > { %v3796_v30 = vpack.c.bf16 %v2849_v28, %v2848_v5 }
0x1aea   : > { %v5533_v19 = vadd.f32 %v3383_v15, %v2808_v16 }
0x1aeb   : > { %3797 = vmatpush3.bf16.msra.mxu1 %v3796_v30 }
0x1aec   : > { %v2819_v21 = vsel %vm941_vm0, %v5533_v19, 0.0 }
0x1aed   : > { %2820 = vadd.xlane.f32.xlu0 %v2819_v21 }
0x1b7a   : > { %v2821_v22 = vpop.xlane.xlu0 %2820 }
0x1b7b   : > { %v2822_v23 = vmul.f32 0.03125, %v2821_v22 }
0x1b7d   : > { %v2823_v24 = vsub.f32 %v5533_v19, %v2822_v23 }
0x1b7f   : > { %v2824_v25 = vmul.f32 %v2823_v24, %v2823_v24 }
0x1b81   : > { %v2825_v26 = vsel %vm941_vm0, %v2824_v25, 0.0 }
0x1b82   : > { %2826 = vadd.xlane.f32.xlu1 %v2825_v26 }
0x1c0f   : > { %v2827_v40 = vpop.xlane.xlu1 %2826 }
0x1c10   : > { %v2828_v41 = vmul.f32 0.03125, %v2827_v40 }
0x1c12   : > { %v2829_v42 = vadd.f32 1e-05, %v2828_v41 }
0x1c14   : > { %4153 = vrsqrt.f32 %v2829_v42 }
0x1c1e   : > { %v4154_v43 = vpop.eup %4153 }
0x1c1f   : > { %v2831_v45 = vmul.f32 %v4154_v43, %v2823_v24 }
0x1c21   : > { %v2838_v46 = vmul.f32 %v3384_v44, %v2831_v45 }
0x1c23   : > { %v2845_v48 = vadd.f32 %v3385_v20, %v2838_v46 }
0x1c25   : > { %3675 = vmatmul.mubr.msk.f32.vlgmr.msra.gmra.mrb[22].mxu1 %vm941_vm0, %v2845_v48 }
0x1cf8   : > { %v2926_v63 = vpop.f32.mrb[22].mxu1 }
0x1cf9   : > { %v2927_v1 = vadd.f32 %v3386_v62, %v2926_v63  ;;  %v3676_v10 = vpop.f32.mrb[23].mxu1 }
0x1cfb   : > { %v2931_v2 = vmul.f32 0.70710677, %v2927_v1  ;;  %v2930_v4 = vmul.f32 0.5, %v2927_v1 }
0x1cfd   : > { %4155 = verf.f32 %v2931_v2 }
0x1d07   : > { %v4156_v3 = vpop.eup %4155 }
0x1d08   : > { %v2933_v6 = vadd.f32 1.0, %v4156_v3 }
0x1d0a   : > { %v2934_v7 = vmul.f32 %v2933_v6, %v2930_v4 }
0x1d0c   : > { %3710 = vmatmul.mubr.f32.vlgmr.msra.gmra.mrb[18].mxu0 %v2934_v7 }
0x1ddf   : > { %v3017_v8 = vpop.f32.mrb[18].mxu0 }
0x1de0   : > { %v3021_v11 = vadd.f32 %v3017_v8, %v5533_v19  ;;  %v3711_v12 = vpop.f32.mrb[19].mxu0 }
0x1de2   : > { %v3029_v0 = vadd.f32 %v3388_v9, %v3021_v11 }
0x1de4   : > { %3030 = vst.msk [vmem:[%s914_s27] sm:$0xff] %vm941_vm0, %v3029_v0 }
0x1de5   : > { %4536 = shalt.err (!%p4533_p1)
}
0x1de6   : > { %s4537_s6 = scalar_lea.hbm %s5609_s0, 128  ;;  %s4541_s29 = scalar_lea.hbm %s5800_s7, 512 }
0x1de7   : > { %p4538_p13 = scmp.ne.s32.totalorder %s5609_s0, %s4537_s6  ;;  %p4542_p2 = scmp.lt.u32.totalorder %s5609_s0, %s5800_s7 }
0x1de8   : > { %p4543_p10 = scmp.lt.u32.totalorder %s4541_s29, %s4537_s6  ;;  %p4545_p9 = scmp.lt.u32.totalorder %s4537_s6, %s5609_s0 }
0x1de9   : > { %p4539_p0 = pnand %p4538_p13, %p5801_p12 }
0x1dea   : > { %p4544_p8 = por %p4543_p10, %p4542_p2 }
0x1deb   : > { %p4540_p3 = pneg %p4539_p0 }
0x1dec   : > { %p4546_p4 = por %p4545_p9, %p4544_p8 }
0x1dee   : > { %p4547_p7 = pnand %p4546_p4, %p4540_p3 }
0x1df0   : > { %4550 = shalt.err (!%p4547_p7)
}
0x1df1   : > { %3873 = dma.vmem_to_hbm [thread:$0]  (%p5801_p12), %s5611_s24, 128, %s5609_s0, %s3032_s13  }
0x1df2 PF: > { %s5802_s18 = sld [smem:[#allocation33_spill]]  ;;  %p3945_p6 = scmp.ge.s32.totalorder %s4669_s5, 2 }
0x1df3   : > { %p5803_p5 = scmp.ne.s32.totalorder %s5776_s10, 0 }
0x1df5   : > { %p3917_p11 = pnand %p3945_p6, %p5803_p5 }
0x1df8   : > { %s3059_s27 = sand.u32 1, %s5802_s18  }
0x1df9   : > { %s3060_s19 = scalar_lea.sflag [#allocation5], %s3059_s27 }
0x1dfa   : > { %4624 = dma.done.wait (!%p3917_p11), %s3060_s19, 128  }
0x1dfb   : > { %4626 = vsyncadd (!%p3917_p11), %s3060_s19, 4294967168  ;;  %s43_s5 = sadd.s32 1, %s4669_s5   ;;  %s5804_s26 = sld [smem:[#allocation34_spill]] }
0x1dfc   : > { %p40_p1 = scmp.ge.s32.totalorder %s43_s5, 6   ;;  %s5805_s23 = sld [smem:[#allocation35_spill]] }
0x1dfd   : > { %s5806_s20 = smov %s5819_s2  ;;  %s5807_s24 = smov %s5823_s25 }
0x1dfe   : > { %s5811_s27 = smov %s4645_s3  ;;  %s5812_s3 = smov %s4649_s28 }
0x1dff   : > { %s5813_s28 = smov %s5164_s8  ;;  %s5814_s29 = smov %s4661_s4 }
0x1e00   : > { %s5815_s0 = smov %s4665_s30  ;;  %s5816_s4 = smov %s5806_s20 }
0x1e01   : > { %s5808_s2 = smov %s5804_s26  ;;  %s5810_s26 = smov %s5825_s22 }
0x1e02   : > { %s5809_s25 = smov %s5805_s23  ;;  %s5817_s30 = smov %s5807_s24 }
0x1e03   :  { %42 = sbr.rel (!%p40_p1) target bundleno = 35 (0x23), region = 209 }
0x1e0a   :  { %3065 = vsyncpa [#allocation4], 1 }
0x1e0b   :  { %3067 = vsyncpa [#allocation4 + $0x1], 1 }
0x1e0c   :  { %3068 = vsyncpa [#allocation7], 1 }
0x1e0d   :  { %3069 = vsyncpa [#allocation10], 1 }
0x1e0e   :  { %3070 = vsyncpa [#allocation13], 1 }
0x1e0f   :  { %3071 = vsyncpa [#allocation16], 1 }
0x1e10   :  { %3072 = vsyncpa [#allocation19], 1 }
0x1e11   :  { %3073 = vsyncpa [#allocation22], 1 }
0x1e12   :  { %3074 = vsyncpa [#allocation5], 1 }
0x1e13   :  { %3076 = vsyncpa [#allocation5 + $0x1], 1 }

</bundles_post_ra>
